<compile_context>
chip_gen: v6e
topology: v6e:2x2x1
jax: 0.10.0
libtpu: 0.0.40
codegen_flags: <defaults>
</compile_context>

<pallas_src>
import functools
import math

import jax
import jax.numpy as jnp
from jax.experimental import pallas as pl
from jax.experimental.pallas import tpu as pltpu

LN_EPS = 1e-6
VMEM_LIMIT_BYTES = 48 * 1024 * 1024  # leave headroom on v7x (64 MiB physical per TC)


# ----------------------------------------------------------------------------
# In-kernel helpers (all f32 math on values already resident in VMEM/vregs)
# ----------------------------------------------------------------------------
def _layernorm_f32(x, gamma, beta):
    mean = jnp.mean(x, axis=-1, keepdims=True)
    xc = x - mean
    var = jnp.mean(xc * xc, axis=-1, keepdims=True)
    inv = jax.lax.rsqrt(var + LN_EPS)
    return xc * inv * gamma + beta


def _erf_f32(x):
    # Abramowitz & Stegun 7.1.26 rational approximation, |error| <= 1.5e-7.
    p = 0.3275911
    a1, a2, a3, a4, a5 = 0.254829592, -0.284496736, 1.421413741, -1.453152027, 1.061405429
    ax = jnp.abs(x)
    t = 1.0 / (1.0 + p * ax)
    poly = ((((a5 * t + a4) * t + a3) * t + a2) * t + a1) * t
    y = 1.0 - poly * jnp.exp(-(ax * ax))
    return jnp.where(x < 0.0, -y, y)


def _gelu_exact(x):
    # Matches torch.nn.functional.gelu default (exact erf GELU) to ~1e-7.
    return 0.5 * x * (1.0 + _erf_f32(x * 0.7071067811865476))


# ----------------------------------------------------------------------------
# Fused encoder kernel: one grid step == one transformer Block
# ----------------------------------------------------------------------------
def _encoder_kernel(x_ref, ln1_g_ref, ln1_b_ref, w_qkv_ref, b_qkv_ref,
                    w_o_ref, b_o_ref, ln2_g_ref, ln2_b_ref,
                    w_fc1_ref, b_fc1_ref, w_fc2_ref, b_fc2_ref,
                    norm_g_ref, norm_b_ref,
                    out_ref, x_scratch,
                    *, num_heads, head_dim, batch, seq):
    layer = pl.program_id(0)
    hsz = num_heads * head_dim
    scale = 1.0 / math.sqrt(head_dim)

    @pl.when(layer == 0)
    def _():
        x_scratch[...] = x_ref[...]

    # ----- attention sub-block: x <- x + W_o @ MHA(LN1(x)) -----
    x = x_scratch[...]                                                   # (M, H) f32
    xn = _layernorm_f32(x, ln1_g_ref[0], ln1_b_ref[0])
    qkv = jnp.dot(xn.astype(jnp.bfloat16), w_qkv_ref[0],
                  preferred_element_type=jnp.float32) + b_qkv_ref[0]     # (M, 3H) f32

    for b in range(batch):                                   # static, unrolled
        r0 = b * seq
        qkv_b = qkv[r0:r0 + seq, :]                                      # (N, 3H)
        acc_b = jnp.zeros((seq, hsz), jnp.float32)
        for h in range(num_heads):                            # static, unrolled
            c0 = h * head_dim
            q = qkv_b[:, c0:c0 + head_dim].astype(jnp.bfloat16)
            k = qkv_b[:, hsz + c0:hsz + c0 + head_dim].astype(jnp.bfloat16)
            v = qkv_b[:, 2 * hsz + c0:2 * hsz + c0 + head_dim].astype(jnp.bfloat16)
            # scores: contract head dim of both operands (no K transpose)
            s = jax.lax.dot_general(q, k, (((1,), (1,)), ((), ())),
                                    preferred_element_type=jnp.float32) * scale
            m = jnp.max(s, axis=-1, keepdims=True)
            e = jnp.exp(s - m)
            p = e * pl.reciprocal(jnp.sum(e, axis=-1, keepdims=True), approx=True)
            # TODO(synk): attn_dropout is identity (eval mode).
            ctx = jnp.dot(p.astype(jnp.bfloat16), v,
                          preferred_element_type=jnp.float32)            # (N, dh)
            # accumulate output projection per head against matching W_o rows
            acc_b = acc_b + jnp.dot(ctx.astype(jnp.bfloat16),
                                    w_o_ref[0, c0:c0 + head_dim, :],
                                    preferred_element_type=jnp.float32)  # (N, H)
        x_scratch[r0:r0 + seq, :] = x[r0:r0 + seq, :] + acc_b + b_o_ref[0]
    # TODO(synk): proj_dropout is identity (eval mode).

    # ----- MLP sub-block: x <- x + fc2(gelu(fc1(LN2(x)))) -----
    x = x_scratch[...]
    xn2 = _layernorm_f32(x, ln2_g_ref[0], ln2_b_ref[0])
    h1 = jnp.dot(xn2.astype(jnp.bfloat16), w_fc1_ref[0],
                 preferred_element_type=jnp.float32) + b_fc1_ref[0]
    h1 = _gelu_exact(h1)
    mlp = jnp.dot(h1.astype(jnp.bfloat16), w_fc2_ref[0],
                  preferred_element_type=jnp.float32) + b_fc2_ref[0]
    # TODO(synk): MLP dropout is identity (eval mode).
    x_new = x + mlp
    x_scratch[...] = x_new

    # ----- final encoder_norm fused into the last layer's grid step -----
    @pl.when(layer == pl.num_programs(0) - 1)
    def _():
        out_ref[...] = _layernorm_f32(
            x_new, norm_g_ref[...], norm_b_ref[...]).astype(out_ref.dtype)


# ----------------------------------------------------------------------------
# Encoder forward (eval mode, vis=False)
# ----------------------------------------------------------------------------
def encoder_forward(hidden_states, params, *, num_heads):
    """hidden_states: (B, N, H) -> (encoded (B, N, H), attn_weights [])."""
    B, N, H = hidden_states.shape
    head_dim = H // num_heads
    M = B * N
    L = params["w_qkv"].shape[0]
    mlp_dim = params["w_fc1"].shape[-1]

    x2d = hidden_states.reshape(M, H).astype(jnp.float32)

    per_layer = lambda l: (l, 0, 0)
    const2 = lambda l: (0, 0)

    kernel = functools.partial(_encoder_kernel, num_heads=num_heads,
                               head_dim=head_dim, batch=B, seq=N)

    out = pl.pallas_call(
        kernel,
        grid=(L,),
        in_specs=[
            pl.BlockSpec((M, H), const2),                # x (only consumed at layer 0)
            pl.BlockSpec((1, 1, H), per_layer),          # ln1 gamma
            pl.BlockSpec((1, 1, H), per_layer),          # ln1 beta
            pl.BlockSpec((1, H, 3 * H), per_layer),      # fused QKV weight (bf16)
            pl.BlockSpec((1, 1, 3 * H), per_layer),      # fused QKV bias
            pl.BlockSpec((1, H, H), per_layer),          # W_o (bf16)
            pl.BlockSpec((1, 1, H), per_layer),          # b_o
            pl.BlockSpec((1, 1, H), per_layer),          # ln2 gamma
            pl.BlockSpec((1, 1, H), per_layer),          # ln2 beta
            pl.BlockSpec((1, H, mlp_dim), per_layer),    # fc1 weight (bf16)
            pl.BlockSpec((1, 1, mlp_dim), per_layer),    # fc1 bias
            pl.BlockSpec((1, mlp_dim, H), per_layer),    # fc2 weight (bf16)
            pl.BlockSpec((1, 1, H), per_layer),          # fc2 bias
            pl.BlockSpec((1, H), const2),                # encoder_norm gamma
            pl.BlockSpec((1, H), const2),                # encoder_norm beta
        ],
        out_specs=pl.BlockSpec((M, H), const2),
        out_shape=jax.ShapeDtypeStruct((M, H), jnp.float32),
        scratch_shapes=[pltpu.VMEM((M, H), jnp.float32)],   # activation carried in VMEM
        compiler_params=pltpu.CompilerParams(
            dimension_semantics=("arbitrary",),              # layers are sequential
            vmem_limit_bytes=VMEM_LIMIT_BYTES,
        ),
    )(x2d,
      params["ln1_g"], params["ln1_b"], params["w_qkv"], params["b_qkv"],
      params["w_o"], params["b_o"], params["ln2_g"], params["ln2_b"],
      params["w_fc1"], params["b_fc1"], params["w_fc2"], params["b_fc2"],
      params["norm_g"], params["norm_b"])

    # vis=False in the reference -> attention weights are not collected.
    return out.reshape(B, N, H), []


# ----------------------------------------------------------------------------
# Parameter construction (random, Xavier-style like the reference init), stacked
# along a leading num_layers axis so one pallas_call can iterate the layers.
# ----------------------------------------------------------------------------
def make_encoder_params(key, *, num_layers, hidden, mlp_dim):
    def xavier(k, fan_in, fan_out):
        lim = math.sqrt(6.0 / (fan_in + fan_out))
        return jax.random.uniform(k, (fan_in, fan_out), jnp.float32, -lim, lim)

    lists = {k: [] for k in ("w_qkv", "b_qkv", "w_o", "b_o",
                             "w_fc1", "b_fc1", "w_fc2", "b_fc2")}
    keys = jax.random.split(key, num_layers)
    for i in range(num_layers):
        ks = jax.random.split(keys[i], 12)
        wq, wk, wv = (xavier(ks[0], hidden, hidden), xavier(ks[1], hidden, hidden),
                      xavier(ks[2], hidden, hidden))
        bq = jax.random.normal(ks[3], (hidden,), jnp.float32) * 0.02
        bk = jax.random.normal(ks[4], (hidden,), jnp.float32) * 0.02
        bv = jax.random.normal(ks[5], (hidden,), jnp.float32) * 0.02
        lists["w_qkv"].append(jnp.concatenate([wq, wk, wv], axis=1).astype(jnp.bfloat16))
        lists["b_qkv"].append(jnp.concatenate([bq, bk, bv]).reshape(1, 3 * hidden))
        lists["w_o"].append(xavier(ks[6], hidden, hidden).astype(jnp.bfloat16))
        lists["b_o"].append((jax.random.normal(ks[7], (hidden,), jnp.float32) * 0.02
                             ).reshape(1, hidden))
        lists["w_fc1"].append(xavier(ks[8], hidden, mlp_dim).astype(jnp.bfloat16))
        lists["b_fc1"].append((jax.random.normal(ks[9], (mlp_dim,), jnp.float32) * 1e-6
                               ).reshape(1, mlp_dim))
        lists["w_fc2"].append(xavier(ks[10], mlp_dim, hidden).astype(jnp.bfloat16))
        lists["b_fc2"].append((jax.random.normal(ks[11], (hidden,), jnp.float32) * 1e-6
                               ).reshape(1, hidden))

    params = {k: jnp.stack(v) for k, v in lists.items()}
    params["ln1_g"] = jnp.ones((num_layers, 1, hidden), jnp.float32)
    params["ln1_b"] = jnp.zeros((num_layers, 1, hidden), jnp.float32)
    params["ln2_g"] = jnp.ones((num_layers, 1, hidden), jnp.float32)
    params["ln2_b"] = jnp.zeros((num_layers, 1, hidden), jnp.float32)
    params["norm_g"] = jnp.ones((1, hidden), jnp.float32)
    params["norm_b"] = jnp.zeros((1, hidden), jnp.float32)
    return params


if __name__ == "__main__":
    key = jax.random.PRNGKey(0)
    kx, kp = jax.random.split(key)

    # Small ViT-style config: batch=2, seq=16 tokens, hidden=256, 2 heads
    # (head_dim=128, lane-aligned), mlp_dim=512, 2 layers.
    B, N, H = 2, 16, 256
    NUM_HEADS, MLP_DIM, NUM_LAYERS = 2, 512, 2

    x = jax.random.normal(kx, (B, N, H), jnp.float32)
    params = make_encoder_params(kp, num_layers=NUM_LAYERS, hidden=H, mlp_dim=MLP_DIM)

    fwd = jax.jit(functools.partial(encoder_forward, num_heads=NUM_HEADS))
    encoded, attn_weights = fwd(x, params)
    encoded = jax.block_until_ready(encoded)

    assert encoded.shape == (B, N, H) and encoded.dtype == jnp.float32
    assert attn_weights == []    # vis=False
    print("KERNEL_OK")
</pallas_src>

<mosaic_0001>
module attributes {stable_mosaic.version = 11 : i64} {
  func.func @_encoder_kernel(%arg0: i32, %arg1: memref<32x256xf32, #tpu.memory_space<vmem>>, %arg2: memref<1x1x256xf32, #tpu.memory_space<vmem>>, %arg3: memref<1x1x256xf32, #tpu.memory_space<vmem>>, %arg4: memref<1x256x768xbf16, #tpu.memory_space<vmem>>, %arg5: memref<1x1x768xf32, #tpu.memory_space<vmem>>, %arg6: memref<1x256x256xbf16, #tpu.memory_space<vmem>>, %arg7: memref<1x1x256xf32, #tpu.memory_space<vmem>>, %arg8: memref<1x1x256xf32, #tpu.memory_space<vmem>>, %arg9: memref<1x1x256xf32, #tpu.memory_space<vmem>>, %arg10: memref<1x256x512xbf16, #tpu.memory_space<vmem>>, %arg11: memref<1x1x512xf32, #tpu.memory_space<vmem>>, %arg12: memref<1x512x256xbf16, #tpu.memory_space<vmem>>, %arg13: memref<1x1x256xf32, #tpu.memory_space<vmem>>, %arg14: memref<1x256xf32, #tpu.memory_space<vmem>>, %arg15: memref<1x256xf32, #tpu.memory_space<vmem>>, %arg16: memref<32x256xf32, #tpu.memory_space<vmem>>, %arg17: memref<32x256xf32, #tpu.memory_space<vmem>>) attributes {dimension_semantics = [#tpu.dimension_semantics<arbitrary>], iteration_bounds = array<i64: 2>, scalar_prefetch = 0 : i64, scratch_operands = 1 : i64, tpu.core_type = #tpu.core_type<tc>, window_params = [{pipeline_mode = #tpu.pipeline_mode<synchronous>, transform_indices = @transform_0, window_bounds = array<i64: 32, 256>}, {transform_indices = @transform_1, window_bounds = array<i64: 1, 1, 256>}, {transform_indices = @transform_2, window_bounds = array<i64: 1, 1, 256>}, {transform_indices = @transform_3, window_bounds = array<i64: 1, 256, 768>}, {transform_indices = @transform_4, window_bounds = array<i64: 1, 1, 768>}, {transform_indices = @transform_5, window_bounds = array<i64: 1, 256, 256>}, {transform_indices = @transform_6, window_bounds = array<i64: 1, 1, 256>}, {transform_indices = @transform_7, window_bounds = array<i64: 1, 1, 256>}, {transform_indices = @transform_8, window_bounds = array<i64: 1, 1, 256>}, {transform_indices = @transform_9, window_bounds = array<i64: 1, 256, 512>}, {transform_indices = @transform_10, window_bounds = array<i64: 1, 1, 512>}, {transform_indices = @transform_11, window_bounds = array<i64: 1, 512, 256>}, {transform_indices = @transform_12, window_bounds = array<i64: 1, 1, 256>}, {pipeline_mode = #tpu.pipeline_mode<synchronous>, transform_indices = @transform_13, window_bounds = array<i64: 1, 256>}, {pipeline_mode = #tpu.pipeline_mode<synchronous>, transform_indices = @transform_14, window_bounds = array<i64: 1, 256>}, {pipeline_mode = #tpu.pipeline_mode<synchronous>, transform_indices = @transform_15, window_bounds = array<i64: 32, 256>}]} {
    %c0_i32 = arith.constant 0 : i32
    %0 = arith.cmpi eq, %arg0, %c0_i32 : i32
    %1 = arith.extui %0 : i1 to i32
    %c0_i32_0 = arith.constant 0 : i32
    %2 = arith.cmpi ne, %1, %c0_i32_0 : i32
    scf.if %2 {
      %c0_110 = arith.constant 0 : index
      %c0_111 = arith.constant 0 : index
      %244 = vector.load %arg1[%c0_110, %c0_111] : memref<32x256xf32, #tpu.memory_space<vmem>>, vector<32x256xf32>
      %c0_112 = arith.constant 0 : index
      %c0_113 = arith.constant 0 : index
      %245 = vector.load %arg17[%c0_112, %c0_113] : memref<32x256xf32, #tpu.memory_space<vmem>>, vector<32x256xf32>
      tpu.vector_store %arg17[%c0_112, %c0_113], %244 {strides = array<i32>} : memref<32x256xf32, #tpu.memory_space<vmem>>, vector<32x256xf32>,
    } else {
    }
    %c0 = arith.constant 0 : index
    %c0_1 = arith.constant 0 : index
    %3 = vector.load %arg17[%c0, %c0_1] : memref<32x256xf32, #tpu.memory_space<vmem>>, vector<32x256xf32>
    %c0_2 = arith.constant 0 : index
    %c0_3 = arith.constant 0 : index
    %c0_4 = arith.constant 0 : index
    %4 = vector.load %arg2[%c0_2, %c0_3, %c0_4] : memref<1x1x256xf32, #tpu.memory_space<vmem>>, vector<1x1x256xf32>
    %5 = vector.shape_cast %4 : vector<1x1x256xf32> to vector<1x256xf32>
    %c0_5 = arith.constant 0 : index
    %c0_6 = arith.constant 0 : index
    %c0_7 = arith.constant 0 : index
    %6 = vector.load %arg3[%c0_5, %c0_6, %c0_7] : memref<1x1x256xf32, #tpu.memory_space<vmem>>, vector<1x1x256xf32>
    %7 = vector.shape_cast %6 : vector<1x1x256xf32> to vector<1x256xf32>
    %cst = arith.constant dense<0.000000e+00> : vector<32xf32>
    %8 = vector.multi_reduction <add>, %3, %cst [1] : vector<32x256xf32> to vector<32xf32>
    %9 = vector.shape_cast %8 : vector<32xf32> to vector<32x1xf32>
    %cst_8 = arith.constant 2.560000e+02 : f32
    %10 = vector.broadcast %cst_8 : f32 to vector<32x1xf32>
    %11 = arith.divf %9, %10 : vector<32x1xf32>
    %12 = vector.broadcast %11 : vector<32x1xf32> to vector<32x256xf32>
    %13 = arith.subf %3, %12 : vector<32x256xf32>
    %14 = arith.mulf %13, %13 : vector<32x256xf32>
    %cst_9 = arith.constant dense<0.000000e+00> : vector<32xf32>
    %15 = vector.multi_reduction <add>, %14, %cst_9 [1] : vector<32x256xf32> to vector<32xf32>
    %16 = vector.shape_cast %15 : vector<32xf32> to vector<32x1xf32>
    %cst_10 = arith.constant 2.560000e+02 : f32
    %17 = vector.broadcast %cst_10 : f32 to vector<32x1xf32>
    %18 = arith.divf %16, %17 : vector<32x1xf32>
    %cst_11 = arith.constant 9.99999997E-7 : f32
    %19 = vector.broadcast %cst_11 : f32 to vector<32x1xf32>
    %20 = arith.addf %18, %19 : vector<32x1xf32>
    %21 = math.rsqrt %20 : vector<32x1xf32>
    %22 = vector.broadcast %21 : vector<32x1xf32> to vector<32x256xf32>
    %23 = arith.mulf %13, %22 : vector<32x256xf32>
    %24 = vector.broadcast %5 : vector<1x256xf32> to vector<32x256xf32>
    %25 = arith.mulf %23, %24 : vector<32x256xf32>
    %26 = vector.broadcast %7 : vector<1x256xf32> to vector<32x256xf32>
    %27 = arith.addf %25, %26 : vector<32x256xf32>
    %28 = arith.truncf %27 : vector<32x256xf32> to vector<32x256xbf16>
    %c0_12 = arith.constant 0 : index
    %c0_13 = arith.constant 0 : index
    %c0_14 = arith.constant 0 : index
    %29 = vector.load %arg4[%c0_12, %c0_13, %c0_14] : memref<1x256x768xbf16, #tpu.memory_space<vmem>>, vector<1x256x768xbf16>
    %30 = vector.shape_cast %29 : vector<1x256x768xbf16> to vector<256x768xbf16>
    %cst_15 = arith.constant dense<0.000000e+00> : vector<32x768xf32>
    %31 = tpu.matmul %28, %30, %cst_15 {dimension_numbers = #tpu.dot_dimension_numbers<[1], [0], [0], [1], [0, 0, 1, 1], [], []>} : vector<32x256xbf16>, vector<256x768xbf16>, vector<32x768xf32> -> vector<32x768xf32>
    %c0_16 = arith.constant 0 : index
    %c0_17 = arith.constant 0 : index
    %c0_18 = arith.constant 0 : index
    %32 = vector.load %arg5[%c0_16, %c0_17, %c0_18] : memref<1x1x768xf32, #tpu.memory_space<vmem>>, vector<1x1x768xf32>
    %33 = vector.shape_cast %32 : vector<1x1x768xf32> to vector<1x768xf32>
    %34 = vector.broadcast %33 : vector<1x768xf32> to vector<32x768xf32>
    %35 = arith.addf %31, %34 : vector<32x768xf32>
    %36 = vector.extract_strided_slice %35 {offsets = [0, 0], sizes = [16, 768], strides = [1, 1]} : vector<32x768xf32> to vector<16x768xf32>
    %cst_19 = arith.constant 0.000000e+00 : f32
    %37 = vector.broadcast %cst_19 : f32 to vector<16x256xf32>
    %38 = vector.extract_strided_slice %36 {offsets = [0, 0], sizes = [16, 128], strides = [1, 1]} : vector<16x768xf32> to vector<16x128xf32>
    %39 = arith.truncf %38 : vector<16x128xf32> to vector<16x128xbf16>
    %40 = vector.extract_strided_slice %36 {offsets = [0, 256], sizes = [16, 128], strides = [1, 1]} : vector<16x768xf32> to vector<16x128xf32>
    %41 = arith.truncf %40 : vector<16x128xf32> to vector<16x128xbf16>
    %42 = vector.extract_strided_slice %36 {offsets = [0, 512], sizes = [16, 128], strides = [1, 1]} : vector<16x768xf32> to vector<16x128xf32>
    %43 = arith.truncf %42 : vector<16x128xf32> to vector<16x128xbf16>
    %cst_20 = arith.constant dense<0.000000e+00> : vector<16x16xf32>
    %44 = tpu.matmul %39, %41, %cst_20 {dimension_numbers = #tpu.dot_dimension_numbers<[1], [1], [0], [0], [0, 0, 1, 0], [], []>} : vector<16x128xbf16>, vector<16x128xbf16>, vector<16x16xf32> -> vector<16x16xf32>
    %cst_21 = arith.constant 0.0883883461 : f32
    %45 = vector.broadcast %cst_21 : f32 to vector<16x16xf32>
    %46 = arith.mulf %44, %45 : vector<16x16xf32>
    %cst_22 = arith.constant dense<0xFF800000> : vector<16xf32>
    %47 = vector.multi_reduction <maximumf>, %46, %cst_22 [1] : vector<16x16xf32> to vector<16xf32>
    %48 = vector.shape_cast %47 : vector<16xf32> to vector<16x1xf32>
    %49 = vector.broadcast %48 : vector<16x1xf32> to vector<16x16xf32>
    %50 = arith.subf %46, %49 : vector<16x16xf32>
    %51 = math.exp %50 : vector<16x16xf32>
    %cst_23 = arith.constant dense<0.000000e+00> : vector<16xf32>
    %52 = vector.multi_reduction <add>, %51, %cst_23 [1] : vector<16x16xf32> to vector<16xf32>
    %53 = vector.shape_cast %52 : vector<16xf32> to vector<16x1xf32>
    %54 = tpu.reciprocal %53 {approx = true} : vector<16x1xf32> -> vector<16x1xf32>
    %55 = vector.broadcast %54 : vector<16x1xf32> to vector<16x16xf32>
    %56 = arith.mulf %51, %55 : vector<16x16xf32>
    %57 = arith.truncf %56 : vector<16x16xf32> to vector<16x16xbf16>
    %cst_24 = arith.constant dense<0.000000e+00> : vector<16x128xf32>
    %58 = tpu.matmul %57, %43, %cst_24 {dimension_numbers = #tpu.dot_dimension_numbers<[1], [0], [0], [1], [0, 0, 1, 1], [], []>} : vector<16x16xbf16>, vector<16x128xbf16>, vector<16x128xf32> -> vector<16x128xf32>
    %59 = arith.truncf %58 : vector<16x128xf32> to vector<16x128xbf16>
    %c0_25 = arith.constant 0 : index
    %c0_26 = arith.constant 0 : index
    %c0_27 = arith.constant 0 : index
    %60 = vector.load %arg6[%c0_25, %c0_26, %c0_27] : memref<1x256x256xbf16, #tpu.memory_space<vmem>>, vector<1x128x256xbf16>
    %61 = vector.shape_cast %60 : vector<1x128x256xbf16> to vector<128x256xbf16>
    %cst_28 = arith.constant dense<0.000000e+00> : vector<16x256xf32>
    %62 = tpu.matmul %59, %61, %cst_28 {dimension_numbers = #tpu.dot_dimension_numbers<[1], [0], [0], [1], [0, 0, 1, 1], [], []>} : vector<16x128xbf16>, vector<128x256xbf16>, vector<16x256xf32> -> vector<16x256xf32>
    %63 = arith.addf %37, %62 : vector<16x256xf32>
    %64 = vector.extract_strided_slice %36 {offsets = [0, 128], sizes = [16, 128], strides = [1, 1]} : vector<16x768xf32> to vector<16x128xf32>
    %65 = arith.truncf %64 : vector<16x128xf32> to vector<16x128xbf16>
    %66 = vector.extract_strided_slice %36 {offsets = [0, 384], sizes = [16, 128], strides = [1, 1]} : vector<16x768xf32> to vector<16x128xf32>
    %67 = arith.truncf %66 : vector<16x128xf32> to vector<16x128xbf16>
    %68 = vector.extract_strided_slice %36 {offsets = [0, 640], sizes = [16, 128], strides = [1, 1]} : vector<16x768xf32> to vector<16x128xf32>
    %69 = arith.truncf %68 : vector<16x128xf32> to vector<16x128xbf16>
    %cst_29 = arith.constant dense<0.000000e+00> : vector<16x16xf32>
    %70 = tpu.matmul %65, %67, %cst_29 {dimension_numbers = #tpu.dot_dimension_numbers<[1], [1], [0], [0], [0, 0, 1, 0], [], []>} : vector<16x128xbf16>, vector<16x128xbf16>, vector<16x16xf32> -> vector<16x16xf32>
    %cst_30 = arith.constant 0.0883883461 : f32
    %71 = vector.broadcast %cst_30 : f32 to vector<16x16xf32>
    %72 = arith.mulf %70, %71 : vector<16x16xf32>
    %cst_31 = arith.constant dense<0xFF800000> : vector<16xf32>
    %73 = vector.multi_reduction <maximumf>, %72, %cst_31 [1] : vector<16x16xf32> to vector<16xf32>
    %74 = vector.shape_cast %73 : vector<16xf32> to vector<16x1xf32>
    %75 = vector.broadcast %74 : vector<16x1xf32> to vector<16x16xf32>
    %76 = arith.subf %72, %75 : vector<16x16xf32>
    %77 = math.exp %76 : vector<16x16xf32>
    %cst_32 = arith.constant dense<0.000000e+00> : vector<16xf32>
    %78 = vector.multi_reduction <add>, %77, %cst_32 [1] : vector<16x16xf32> to vector<16xf32>
    %79 = vector.shape_cast %78 : vector<16xf32> to vector<16x1xf32>
    %80 = tpu.reciprocal %79 {approx = true} : vector<16x1xf32> -> vector<16x1xf32>
    %81 = vector.broadcast %80 : vector<16x1xf32> to vector<16x16xf32>
    %82 = arith.mulf %77, %81 : vector<16x16xf32>
    %83 = arith.truncf %82 : vector<16x16xf32> to vector<16x16xbf16>
    %cst_33 = arith.constant dense<0.000000e+00> : vector<16x128xf32>
    %84 = tpu.matmul %83, %69, %cst_33 {dimension_numbers = #tpu.dot_dimension_numbers<[1], [0], [0], [1], [0, 0, 1, 1], [], []>} : vector<16x16xbf16>, vector<16x128xbf16>, vector<16x128xf32> -> vector<16x128xf32>
    %85 = arith.truncf %84 : vector<16x128xf32> to vector<16x128xbf16>
    %c0_34 = arith.constant 0 : index
    %c128 = arith.constant 128 : index
    %c0_35 = arith.constant 0 : index
    %86 = vector.load %arg6[%c0_34, %c128, %c0_35] : memref<1x256x256xbf16, #tpu.memory_space<vmem>>, vector<1x128x256xbf16>
    %87 = vector.shape_cast %86 : vector<1x128x256xbf16> to vector<128x256xbf16>
    %cst_36 = arith.constant dense<0.000000e+00> : vector<16x256xf32>
    %88 = tpu.matmul %85, %87, %cst_36 {dimension_numbers = #tpu.dot_dimension_numbers<[1], [0], [0], [1], [0, 0, 1, 1], [], []>} : vector<16x128xbf16>, vector<128x256xbf16>, vector<16x256xf32> -> vector<16x256xf32>
    %89 = arith.addf %63, %88 : vector<16x256xf32>
    %90 = vector.extract_strided_slice %3 {offsets = [0, 0], sizes = [16, 256], strides = [1, 1]} : vector<32x256xf32> to vector<16x256xf32>
    %91 = arith.addf %90, %89 : vector<16x256xf32>
    %c0_37 = arith.constant 0 : index
    %c0_38 = arith.constant 0 : index
    %c0_39 = arith.constant 0 : index
    %92 = vector.load %arg7[%c0_37, %c0_38, %c0_39] : memref<1x1x256xf32, #tpu.memory_space<vmem>>, vector<1x1x256xf32>
    %93 = vector.shape_cast %92 : vector<1x1x256xf32> to vector<1x256xf32>
    %94 = vector.broadcast %93 : vector<1x256xf32> to vector<16x256xf32>
    %95 = arith.addf %91, %94 : vector<16x256xf32>
    %c0_40 = arith.constant 0 : index
    %c0_41 = arith.constant 0 : index
    %96 = vector.load %arg17[%c0_40, %c0_41] : memref<32x256xf32, #tpu.memory_space<vmem>>, vector<16x256xf32>
    tpu.vector_store %arg17[%c0_40, %c0_41], %95 {strides = array<i32>} : memref<32x256xf32, #tpu.memory_space<vmem>>, vector<16x256xf32>,
    %97 = vector.extract_strided_slice %35 {offsets = [16, 0], sizes = [16, 768], strides = [1, 1]} : vector<32x768xf32> to vector<16x768xf32>
    %cst_42 = arith.constant 0.000000e+00 : f32
    %98 = vector.broadcast %cst_42 : f32 to vector<16x256xf32>
    %99 = vector.extract_strided_slice %97 {offsets = [0, 0], sizes = [16, 128], strides = [1, 1]} : vector<16x768xf32> to vector<16x128xf32>
    %100 = arith.truncf %99 : vector<16x128xf32> to vector<16x128xbf16>
    %101 = vector.extract_strided_slice %97 {offsets = [0, 256], sizes = [16, 128], strides = [1, 1]} : vector<16x768xf32> to vector<16x128xf32>
    %102 = arith.truncf %101 : vector<16x128xf32> to vector<16x128xbf16>
    %103 = vector.extract_strided_slice %97 {offsets = [0, 512], sizes = [16, 128], strides = [1, 1]} : vector<16x768xf32> to vector<16x128xf32>
    %104 = arith.truncf %103 : vector<16x128xf32> to vector<16x128xbf16>
    %cst_43 = arith.constant dense<0.000000e+00> : vector<16x16xf32>
    %105 = tpu.matmul %100, %102, %cst_43 {dimension_numbers = #tpu.dot_dimension_numbers<[1], [1], [0], [0], [0, 0, 1, 0], [], []>} : vector<16x128xbf16>, vector<16x128xbf16>, vector<16x16xf32> -> vector<16x16xf32>
    %cst_44 = arith.constant 0.0883883461 : f32
    %106 = vector.broadcast %cst_44 : f32 to vector<16x16xf32>
    %107 = arith.mulf %105, %106 : vector<16x16xf32>
    %cst_45 = arith.constant dense<0xFF800000> : vector<16xf32>
    %108 = vector.multi_reduction <maximumf>, %107, %cst_45 [1] : vector<16x16xf32> to vector<16xf32>
    %109 = vector.shape_cast %108 : vector<16xf32> to vector<16x1xf32>
    %110 = vector.broadcast %109 : vector<16x1xf32> to vector<16x16xf32>
    %111 = arith.subf %107, %110 : vector<16x16xf32>
    %112 = math.exp %111 : vector<16x16xf32>
    %cst_46 = arith.constant dense<0.000000e+00> : vector<16xf32>
    %113 = vector.multi_reduction <add>, %112, %cst_46 [1] : vector<16x16xf32> to vector<16xf32>
    %114 = vector.shape_cast %113 : vector<16xf32> to vector<16x1xf32>
    %115 = tpu.reciprocal %114 {approx = true} : vector<16x1xf32> -> vector<16x1xf32>
    %116 = vector.broadcast %115 : vector<16x1xf32> to vector<16x16xf32>
    %117 = arith.mulf %112, %116 : vector<16x16xf32>
    %118 = arith.truncf %117 : vector<16x16xf32> to vector<16x16xbf16>
    %cst_47 = arith.constant dense<0.000000e+00> : vector<16x128xf32>
    %119 = tpu.matmul %118, %104, %cst_47 {dimension_numbers = #tpu.dot_dimension_numbers<[1], [0], [0], [1], [0, 0, 1, 1], [], []>} : vector<16x16xbf16>, vector<16x128xbf16>, vector<16x128xf32> -> vector<16x128xf32>
    %120 = arith.truncf %119 : vector<16x128xf32> to vector<16x128xbf16>
    %c0_48 = arith.constant 0 : index
    %c0_49 = arith.constant 0 : index
    %c0_50 = arith.constant 0 : index
    %121 = vector.load %arg6[%c0_48, %c0_49, %c0_50] : memref<1x256x256xbf16, #tpu.memory_space<vmem>>, vector<1x128x256xbf16>
    %122 = vector.shape_cast %121 : vector<1x128x256xbf16> to vector<128x256xbf16>
    %cst_51 = arith.constant dense<0.000000e+00> : vector<16x256xf32>
    %123 = tpu.matmul %120, %122, %cst_51 {dimension_numbers = #tpu.dot_dimension_numbers<[1], [0], [0], [1], [0, 0, 1, 1], [], []>} : vector<16x128xbf16>, vector<128x256xbf16>, vector<16x256xf32> -> vector<16x256xf32>
    %124 = arith.addf %98, %123 : vector<16x256xf32>
    %125 = vector.extract_strided_slice %97 {offsets = [0, 128], sizes = [16, 128], strides = [1, 1]} : vector<16x768xf32> to vector<16x128xf32>
    %126 = arith.truncf %125 : vector<16x128xf32> to vector<16x128xbf16>
    %127 = vector.extract_strided_slice %97 {offsets = [0, 384], sizes = [16, 128], strides = [1, 1]} : vector<16x768xf32> to vector<16x128xf32>
    %128 = arith.truncf %127 : vector<16x128xf32> to vector<16x128xbf16>
    %129 = vector.extract_strided_slice %97 {offsets = [0, 640], sizes = [16, 128], strides = [1, 1]} : vector<16x768xf32> to vector<16x128xf32>
    %130 = arith.truncf %129 : vector<16x128xf32> to vector<16x128xbf16>
    %cst_52 = arith.constant dense<0.000000e+00> : vector<16x16xf32>
    %131 = tpu.matmul %126, %128, %cst_52 {dimension_numbers = #tpu.dot_dimension_numbers<[1], [1], [0], [0], [0, 0, 1, 0], [], []>} : vector<16x128xbf16>, vector<16x128xbf16>, vector<16x16xf32> -> vector<16x16xf32>
    %cst_53 = arith.constant 0.0883883461 : f32
    %132 = vector.broadcast %cst_53 : f32 to vector<16x16xf32>
    %133 = arith.mulf %131, %132 : vector<16x16xf32>
    %cst_54 = arith.constant dense<0xFF800000> : vector<16xf32>
    %134 = vector.multi_reduction <maximumf>, %133, %cst_54 [1] : vector<16x16xf32> to vector<16xf32>
    %135 = vector.shape_cast %134 : vector<16xf32> to vector<16x1xf32>
    %136 = vector.broadcast %135 : vector<16x1xf32> to vector<16x16xf32>
    %137 = arith.subf %133, %136 : vector<16x16xf32>
    %138 = math.exp %137 : vector<16x16xf32>
    %cst_55 = arith.constant dense<0.000000e+00> : vector<16xf32>
    %139 = vector.multi_reduction <add>, %138, %cst_55 [1] : vector<16x16xf32> to vector<16xf32>
    %140 = vector.shape_cast %139 : vector<16xf32> to vector<16x1xf32>
    %141 = tpu.reciprocal %140 {approx = true} : vector<16x1xf32> -> vector<16x1xf32>
    %142 = vector.broadcast %141 : vector<16x1xf32> to vector<16x16xf32>
    %143 = arith.mulf %138, %142 : vector<16x16xf32>
    %144 = arith.truncf %143 : vector<16x16xf32> to vector<16x16xbf16>
    %cst_56 = arith.constant dense<0.000000e+00> : vector<16x128xf32>
    %145 = tpu.matmul %144, %130, %cst_56 {dimension_numbers = #tpu.dot_dimension_numbers<[1], [0], [0], [1], [0, 0, 1, 1], [], []>} : vector<16x16xbf16>, vector<16x128xbf16>, vector<16x128xf32> -> vector<16x128xf32>
    %146 = arith.truncf %145 : vector<16x128xf32> to vector<16x128xbf16>
    %c0_57 = arith.constant 0 : index
    %c128_58 = arith.constant 128 : index
    %c0_59 = arith.constant 0 : index
    %147 = vector.load %arg6[%c0_57, %c128_58, %c0_59] : memref<1x256x256xbf16, #tpu.memory_space<vmem>>, vector<1x128x256xbf16>
    %148 = vector.shape_cast %147 : vector<1x128x256xbf16> to vector<128x256xbf16>
    %cst_60 = arith.constant dense<0.000000e+00> : vector<16x256xf32>
    %149 = tpu.matmul %146, %148, %cst_60 {dimension_numbers = #tpu.dot_dimension_numbers<[1], [0], [0], [1], [0, 0, 1, 1], [], []>} : vector<16x128xbf16>, vector<128x256xbf16>, vector<16x256xf32> -> vector<16x256xf32>
    %150 = arith.addf %124, %149 : vector<16x256xf32>
    %151 = vector.extract_strided_slice %3 {offsets = [16, 0], sizes = [16, 256], strides = [1, 1]} : vector<32x256xf32> to vector<16x256xf32>
    %152 = arith.addf %151, %150 : vector<16x256xf32>
    %c0_61 = arith.constant 0 : index
    %c0_62 = arith.constant 0 : index
    %c0_63 = arith.constant 0 : index
    %153 = vector.load %arg7[%c0_61, %c0_62, %c0_63] : memref<1x1x256xf32, #tpu.memory_space<vmem>>, vector<1x1x256xf32>
    %154 = vector.shape_cast %153 : vector<1x1x256xf32> to vector<1x256xf32>
    %155 = vector.broadcast %154 : vector<1x256xf32> to vector<16x256xf32>
    %156 = arith.addf %152, %155 : vector<16x256xf32>
    %c16 = arith.constant 16 : index
    %c0_64 = arith.constant 0 : index
    %157 = vector.load %arg17[%c16, %c0_64] : memref<32x256xf32, #tpu.memory_space<vmem>>, vector<16x256xf32>
    tpu.vector_store %arg17[%c16, %c0_64], %156 {strides = array<i32>} : memref<32x256xf32, #tpu.memory_space<vmem>>, vector<16x256xf32>,
    %c0_65 = arith.constant 0 : index
    %c0_66 = arith.constant 0 : index
    %158 = vector.load %arg17[%c0_65, %c0_66] : memref<32x256xf32, #tpu.memory_space<vmem>>, vector<32x256xf32>
    %c0_67 = arith.constant 0 : index
    %c0_68 = arith.constant 0 : index
    %c0_69 = arith.constant 0 : index
    %159 = vector.load %arg8[%c0_67, %c0_68, %c0_69] : memref<1x1x256xf32, #tpu.memory_space<vmem>>, vector<1x1x256xf32>
    %160 = vector.shape_cast %159 : vector<1x1x256xf32> to vector<1x256xf32>
    %c0_70 = arith.constant 0 : index
    %c0_71 = arith.constant 0 : index
    %c0_72 = arith.constant 0 : index
    %161 = vector.load %arg9[%c0_70, %c0_71, %c0_72] : memref<1x1x256xf32, #tpu.memory_space<vmem>>, vector<1x1x256xf32>
    %162 = vector.shape_cast %161 : vector<1x1x256xf32> to vector<1x256xf32>
    %cst_73 = arith.constant dense<0.000000e+00> : vector<32xf32>
    %163 = vector.multi_reduction <add>, %158, %cst_73 [1] : vector<32x256xf32> to vector<32xf32>
    %164 = vector.shape_cast %163 : vector<32xf32> to vector<32x1xf32>
    %cst_74 = arith.constant 2.560000e+02 : f32
    %165 = vector.broadcast %cst_74 : f32 to vector<32x1xf32>
    %166 = arith.divf %164, %165 : vector<32x1xf32>
    %167 = vector.broadcast %166 : vector<32x1xf32> to vector<32x256xf32>
    %168 = arith.subf %158, %167 : vector<32x256xf32>
    %169 = arith.mulf %168, %168 : vector<32x256xf32>
    %cst_75 = arith.constant dense<0.000000e+00> : vector<32xf32>
    %170 = vector.multi_reduction <add>, %169, %cst_75 [1] : vector<32x256xf32> to vector<32xf32>
    %171 = vector.shape_cast %170 : vector<32xf32> to vector<32x1xf32>
    %cst_76 = arith.constant 2.560000e+02 : f32
    %172 = vector.broadcast %cst_76 : f32 to vector<32x1xf32>
    %173 = arith.divf %171, %172 : vector<32x1xf32>
    %cst_77 = arith.constant 9.99999997E-7 : f32
    %174 = vector.broadcast %cst_77 : f32 to vector<32x1xf32>
    %175 = arith.addf %173, %174 : vector<32x1xf32>
    %176 = math.rsqrt %175 : vector<32x1xf32>
    %177 = vector.broadcast %176 : vector<32x1xf32> to vector<32x256xf32>
    %178 = arith.mulf %168, %177 : vector<32x256xf32>
    %179 = vector.broadcast %160 : vector<1x256xf32> to vector<32x256xf32>
    %180 = arith.mulf %178, %179 : vector<32x256xf32>
    %181 = vector.broadcast %162 : vector<1x256xf32> to vector<32x256xf32>
    %182 = arith.addf %180, %181 : vector<32x256xf32>
    %183 = arith.truncf %182 : vector<32x256xf32> to vector<32x256xbf16>
    %c0_78 = arith.constant 0 : index
    %c0_79 = arith.constant 0 : index
    %c0_80 = arith.constant 0 : index
    %184 = vector.load %arg10[%c0_78, %c0_79, %c0_80] : memref<1x256x512xbf16, #tpu.memory_space<vmem>>, vector<1x256x512xbf16>
    %185 = vector.shape_cast %184 : vector<1x256x512xbf16> to vector<256x512xbf16>
    %cst_81 = arith.constant dense<0.000000e+00> : vector<32x512xf32>
    %186 = tpu.matmul %183, %185, %cst_81 {dimension_numbers = #tpu.dot_dimension_numbers<[1], [0], [0], [1], [0, 0, 1, 1], [], []>} : vector<32x256xbf16>, vector<256x512xbf16>, vector<32x512xf32> -> vector<32x512xf32>
    %c0_82 = arith.constant 0 : index
    %c0_83 = arith.constant 0 : index
    %c0_84 = arith.constant 0 : index
    %187 = vector.load %arg11[%c0_82, %c0_83, %c0_84] : memref<1x1x512xf32, #tpu.memory_space<vmem>>, vector<1x1x512xf32>
    %188 = vector.shape_cast %187 : vector<1x1x512xf32> to vector<1x512xf32>
    %189 = vector.broadcast %188 : vector<1x512xf32> to vector<32x512xf32>
    %190 = arith.addf %186, %189 : vector<32x512xf32>
    %cst_85 = arith.constant 5.000000e-01 : f32
    %191 = vector.broadcast %cst_85 : f32 to vector<32x512xf32>
    %192 = arith.mulf %191, %190 : vector<32x512xf32>
    %cst_86 = arith.constant 0.707106769 : f32
    %193 = vector.broadcast %cst_86 : f32 to vector<32x512xf32>
    %194 = arith.mulf %190, %193 : vector<32x512xf32>
    %195 = math.absf %194 : vector<32x512xf32>
    %cst_87 = arith.constant 0.327591091 : f32
    %196 = vector.broadcast %cst_87 : f32 to vector<32x512xf32>
    %197 = arith.mulf %196, %195 : vector<32x512xf32>
    %cst_88 = arith.constant 1.000000e+00 : f32
    %198 = vector.broadcast %cst_88 : f32 to vector<32x512xf32>
    %199 = arith.addf %198, %197 : vector<32x512xf32>
    %cst_89 = arith.constant 1.000000e+00 : f32
    %200 = vector.broadcast %cst_89 : f32 to vector<32x512xf32>
    %201 = arith.divf %200, %199 : vector<32x512xf32>
    %cst_90 = arith.constant 1.06140542 : f32
    %202 = vector.broadcast %cst_90 : f32 to vector<32x512xf32>
    %203 = arith.mulf %202, %201 : vector<32x512xf32>
    %cst_91 = arith.constant -1.45315206 : f32
    %204 = vector.broadcast %cst_91 : f32 to vector<32x512xf32>
    %205 = arith.addf %203, %204 : vector<32x512xf32>
    %206 = arith.mulf %205, %201 : vector<32x512xf32>
    %cst_92 = arith.constant 1.42141378 : f32
    %207 = vector.broadcast %cst_92 : f32 to vector<32x512xf32>
    %208 = arith.addf %206, %207 : vector<32x512xf32>
    %209 = arith.mulf %208, %201 : vector<32x512xf32>
    %cst_93 = arith.constant -0.284496725 : f32
    %210 = vector.broadcast %cst_93 : f32 to vector<32x512xf32>
    %211 = arith.addf %209, %210 : vector<32x512xf32>
    %212 = arith.mulf %211, %201 : vector<32x512xf32>
    %cst_94 = arith.constant 0.254829586 : f32
    %213 = vector.broadcast %cst_94 : f32 to vector<32x512xf32>
    %214 = arith.addf %212, %213 : vector<32x512xf32>
    %215 = arith.mulf %214, %201 : vector<32x512xf32>
    %216 = arith.mulf %195, %195 : vector<32x512xf32>
    %cst_95 = arith.constant 0.000000e+00 : f32
    %217 = vector.broadcast %cst_95 : f32 to vector<32x512xf32>
    %218 = arith.subf %217, %216 : vector<32x512xf32>
    %219 = math.exp %218 : vector<32x512xf32>
    %220 = arith.mulf %215, %219 : vector<32x512xf32>
    %cst_96 = arith.constant 1.000000e+00 : f32
    %221 = vector.broadcast %cst_96 : f32 to vector<32x512xf32>
    %222 = arith.subf %221, %220 : vector<32x512xf32>
    %cst_97 = arith.constant 0.000000e+00 : f32
    %223 = vector.broadcast %cst_97 : f32 to vector<32x512xf32>
    %224 = arith.cmpf olt, %194, %223 : vector<32x512xf32>
    %cst_98 = arith.constant 0.000000e+00 : f32
    %225 = vector.broadcast %cst_98 : f32 to vector<32x512xf32>
    %226 = arith.subf %225, %222 : vector<32x512xf32>
    %227 = arith.select %224, %226, %222 : vector<32x512xi1>, vector<32x512xf32>
    %cst_99 = arith.constant 1.000000e+00 : f32
    %228 = vector.broadcast %cst_99 : f32 to vector<32x512xf32>
    %229 = arith.addf %228, %227 : vector<32x512xf32>
    %230 = arith.mulf %192, %229 : vector<32x512xf32>
    %231 = arith.truncf %230 : vector<32x512xf32> to vector<32x512xbf16>
    %c0_100 = arith.constant 0 : index
    %c0_101 = arith.constant 0 : index
    %c0_102 = arith.constant 0 : index
    %232 = vector.load %arg12[%c0_100, %c0_101, %c0_102] : memref<1x512x256xbf16, #tpu.memory_space<vmem>>, vector<1x512x256xbf16>
    %233 = vector.shape_cast %232 : vector<1x512x256xbf16> to vector<512x256xbf16>
    %cst_103 = arith.constant dense<0.000000e+00> : vector<32x256xf32>
    %234 = tpu.matmul %231, %233, %cst_103 {dimension_numbers = #tpu.dot_dimension_numbers<[1], [0], [0], [1], [0, 0, 1, 1], [], []>} : vector<32x512xbf16>, vector<512x256xbf16>, vector<32x256xf32> -> vector<32x256xf32>
    %c0_104 = arith.constant 0 : index
    %c0_105 = arith.constant 0 : index
    %c0_106 = arith.constant 0 : index
    %235 = vector.load %arg13[%c0_104, %c0_105, %c0_106] : memref<1x1x256xf32, #tpu.memory_space<vmem>>, vector<1x1x256xf32>
    %236 = vector.shape_cast %235 : vector<1x1x256xf32> to vector<1x256xf32>
    %237 = vector.broadcast %236 : vector<1x256xf32> to vector<32x256xf32>
    %238 = arith.addf %234, %237 : vector<32x256xf32>
    %239 = arith.addf %158, %238 : vector<32x256xf32>
    %c0_107 = arith.constant 0 : index
    %c0_108 = arith.constant 0 : index
    %240 = vector.load %arg17[%c0_107, %c0_108] : memref<32x256xf32, #tpu.memory_space<vmem>>, vector<32x256xf32>
    tpu.vector_store %arg17[%c0_107, %c0_108], %239 {strides = array<i32>} : memref<32x256xf32, #tpu.memory_space<vmem>>, vector<32x256xf32>,
    %c1_i32 = arith.constant 1 : i32
    %241 = arith.cmpi eq, %arg0, %c1_i32 : i32
    %242 = arith.extui %241 : i1 to i32
    %c0_i32_109 = arith.constant 0 : i32
    %243 = arith.cmpi ne, %242, %c0_i32_109 : i32
    scf.if %243 {
      %c0_110 = arith.constant 0 : index
      %c0_111 = arith.constant 0 : index
      %244 = vector.load %arg14[%c0_110, %c0_111] : memref<1x256xf32, #tpu.memory_space<vmem>>, vector<1x256xf32>
      %c0_112 = arith.constant 0 : index
      %c0_113 = arith.constant 0 : index
      %245 = vector.load %arg15[%c0_112, %c0_113] : memref<1x256xf32, #tpu.memory_space<vmem>>, vector<1x256xf32>
      %cst_114 = arith.constant dense<0.000000e+00> : vector<32xf32>
      %246 = vector.multi_reduction <add>, %239, %cst_114 [1] : vector<32x256xf32> to vector<32xf32>
      %247 = vector.shape_cast %246 : vector<32xf32> to vector<32x1xf32>
      %cst_115 = arith.constant 2.560000e+02 : f32
      %248 = vector.broadcast %cst_115 : f32 to vector<32x1xf32>
      %249 = arith.divf %247, %248 : vector<32x1xf32>
      %250 = vector.broadcast %249 : vector<32x1xf32> to vector<32x256xf32>
      %251 = arith.subf %239, %250 : vector<32x256xf32>
      %252 = arith.mulf %251, %251 : vector<32x256xf32>
      %cst_116 = arith.constant dense<0.000000e+00> : vector<32xf32>
      %253 = vector.multi_reduction <add>, %252, %cst_116 [1] : vector<32x256xf32> to vector<32xf32>
      %254 = vector.shape_cast %253 : vector<32xf32> to vector<32x1xf32>
      %cst_117 = arith.constant 2.560000e+02 : f32
      %255 = vector.broadcast %cst_117 : f32 to vector<32x1xf32>
      %256 = arith.divf %254, %255 : vector<32x1xf32>
      %cst_118 = arith.constant 9.99999997E-7 : f32
      %257 = vector.broadcast %cst_118 : f32 to vector<32x1xf32>
      %258 = arith.addf %256, %257 : vector<32x1xf32>
      %259 = math.rsqrt %258 : vector<32x1xf32>
      %260 = vector.broadcast %259 : vector<32x1xf32> to vector<32x256xf32>
      %261 = arith.mulf %251, %260 : vector<32x256xf32>
      %262 = vector.broadcast %244 : vector<1x256xf32> to vector<32x256xf32>
      %263 = arith.mulf %261, %262 : vector<32x256xf32>
      %264 = vector.broadcast %245 : vector<1x256xf32> to vector<32x256xf32>
      %265 = arith.addf %263, %264 : vector<32x256xf32>
      %c0_119 = arith.constant 0 : index
      %c0_120 = arith.constant 0 : index
      %266 = vector.load %arg16[%c0_119, %c0_120] : memref<32x256xf32, #tpu.memory_space<vmem>>, vector<32x256xf32>
      tpu.vector_store %arg16[%c0_119, %c0_120], %265 {strides = array<i32>} : memref<32x256xf32, #tpu.memory_space<vmem>>, vector<32x256xf32>,
    } else {
    }
    return
  }
  func.func @transform_0(%arg0: i32) -> (i32, i32) {
    %c0_i32 = arith.constant 0 : i32
    %c0_i32_0 = arith.constant 0 : i32
    %c0_i32_1 = arith.constant 0 : i32
    return %c0_i32, %c0_i32_0 : i32, i32
  }
  func.func @transform_1(%arg0: i32) -> (i32, i32, i32) {
    %c0_i32 = arith.constant 0 : i32
    %c0_i32_0 = arith.constant 0 : i32
    %c0_i32_1 = arith.constant 0 : i32
    return %arg0, %c0_i32, %c0_i32_0 : i32, i32, i32
  }
  func.func @transform_2(%arg0: i32) -> (i32, i32, i32) {
    %c0_i32 = arith.constant 0 : i32
    %c0_i32_0 = arith.constant 0 : i32
    %c0_i32_1 = arith.constant 0 : i32
    return %arg0, %c0_i32, %c0_i32_0 : i32, i32, i32
  }
  func.func @transform_3(%arg0: i32) -> (i32, i32, i32) {
    %c0_i32 = arith.constant 0 : i32
    %c0_i32_0 = arith.constant 0 : i32
    %c0_i32_1 = arith.constant 0 : i32
    return %arg0, %c0_i32, %c0_i32_0 : i32, i32, i32
  }
  func.func @transform_4(%arg0: i32) -> (i32, i32, i32) {
    %c0_i32 = arith.constant 0 : i32
    %c0_i32_0 = arith.constant 0 : i32
    %c0_i32_1 = arith.constant 0 : i32
    return %arg0, %c0_i32, %c0_i32_0 : i32, i32, i32
  }
  func.func @transform_5(%arg0: i32) -> (i32, i32, i32) {
    %c0_i32 = arith.constant 0 : i32
    %c0_i32_0 = arith.constant 0 : i32
    %c0_i32_1 = arith.constant 0 : i32
    return %arg0, %c0_i32, %c0_i32_0 : i32, i32, i32
  }
  func.func @transform_6(%arg0: i32) -> (i32, i32, i32) {
    %c0_i32 = arith.constant 0 : i32
    %c0_i32_0 = arith.constant 0 : i32
    %c0_i32_1 = arith.constant 0 : i32
    return %arg0, %c0_i32, %c0_i32_0 : i32, i32, i32
  }
  func.func @transform_7(%arg0: i32) -> (i32, i32, i32) {
    %c0_i32 = arith.constant 0 : i32
    %c0_i32_0 = arith.constant 0 : i32
    %c0_i32_1 = arith.constant 0 : i32
    return %arg0, %c0_i32, %c0_i32_0 : i32, i32, i32
  }
  func.func @transform_8(%arg0: i32) -> (i32, i32, i32) {
    %c0_i32 = arith.constant 0 : i32
    %c0_i32_0 = arith.constant 0 : i32
    %c0_i32_1 = arith.constant 0 : i32
    return %arg0, %c0_i32, %c0_i32_0 : i32, i32, i32
  }
  func.func @transform_9(%arg0: i32) -> (i32, i32, i32) {
    %c0_i32 = arith.constant 0 : i32
    %c0_i32_0 = arith.constant 0 : i32
    %c0_i32_1 = arith.constant 0 : i32
    return %arg0, %c0_i32, %c0_i32_0 : i32, i32, i32
  }
  func.func @transform_10(%arg0: i32) -> (i32, i32, i32) {
    %c0_i32 = arith.constant 0 : i32
    %c0_i32_0 = arith.constant 0 : i32
    %c0_i32_1 = arith.constant 0 : i32
    return %arg0, %c0_i32, %c0_i32_0 : i32, i32, i32
  }
  func.func @transform_11(%arg0: i32) -> (i32, i32, i32) {
    %c0_i32 = arith.constant 0 : i32
    %c0_i32_0 = arith.constant 0 : i32
    %c0_i32_1 = arith.constant 0 : i32
    return %arg0, %c0_i32, %c0_i32_0 : i32, i32, i32
  }
  func.func @transform_12(%arg0: i32) -> (i32, i32, i32) {
    %c0_i32 = arith.constant 0 : i32
    %c0_i32_0 = arith.constant 0 : i32
    %c0_i32_1 = arith.constant 0 : i32
    return %arg0, %c0_i32, %c0_i32_0 : i32, i32, i32
  }
  func.func @transform_13(%arg0: i32) -> (i32, i32) {
    %c0_i32 = arith.constant 0 : i32
    %c0_i32_0 = arith.constant 0 : i32
    %c0_i32_1 = arith.constant 0 : i32
    return %c0_i32, %c0_i32_0 : i32, i32
  }
  func.func @transform_14(%arg0: i32) -> (i32, i32) {
    %c0_i32 = arith.constant 0 : i32
    %c0_i32_0 = arith.constant 0 : i32
    %c0_i32_1 = arith.constant 0 : i32
    return %c0_i32, %c0_i32_0 : i32, i32
  }
  func.func @transform_15(%arg0: i32) -> (i32, i32) {
    %c0_i32 = arith.constant 0 : i32
    %c0_i32_0 = arith.constant 0 : i32
    %c0_i32_1 = arith.constant 0 : i32
    return %c0_i32, %c0_i32_0 : i32, i32
  }
}

</mosaic_0001>

<bundles_post_ra>
// kernel: encoder_forward.1
= control target key start
LH: loop header
LB: loop body
LE: loop exit
PB: predicated region body
PF: predicated region fallthrough
CT: control target
= control target key end

     0   :  { %s7845_s0 = inlined_call_operand.hbm [shape: f32[32,256], index: 0, kind: input, shape index: {}]   ;;  %s7846_s1 = inlined_call_operand.vmem [shape: f32[2,1,256], index: 1, kind: input, shape index: {}]   ;;  %s7847_s2 = inlined_call_operand.vmem [shape: f32[2,1,256], index: 2, kind: input, shape index: {}]   ;;  %s7848_s3 = inlined_call_operand.hbm [shape: bf16[2,256,768], index: 3, kind: input, shape index: {}]   ;;  %s7849_s4 = inlined_call_operand.hbm [shape: f32[2,1,768], index: 4, kind: input, shape index: {}]   ;;  %s7850_s5 = inlined_call_operand.hbm [shape: bf16[2,256,256], index: 5, kind: input, shape index: {}]   ;;  %s7851_s6 = inlined_call_operand.hbm [shape: f32[2,1,256], index: 6, kind: input, shape index: {}]   ;;  %s7852_s7 = inlined_call_operand.vmem [shape: f32[2,1,256], index: 7, kind: input, shape index: {}]   ;;  %s7853_s8 = inlined_call_operand.hbm [shape: f32[2,1,256], index: 8, kind: input, shape index: {}]   ;;  %s7854_s9 = inlined_call_operand.hbm [shape: bf16[2,256,512], index: 9, kind: input, shape index: {}]   ;;  %s7855_s10 = inlined_call_operand.hbm [shape: f32[2,1,512], index: 10, kind: input, shape index: {}]   ;;  %s7856_s11 = inlined_call_operand.hbm [shape: bf16[2,512,256], index: 11, kind: input, shape index: {}]   ;;  %s7857_s12 = inlined_call_operand.hbm [shape: f32[2,1,256], index: 12, kind: input, shape index: {}]   ;;  %s7858_s13 = inlined_call_operand.vmem [shape: f32[1,256], index: 13, kind: input, shape index: {}]   ;;  %s7859_s14 = inlined_call_operand.vmem [shape: f32[1,256], index: 14, kind: input, shape index: {}]   ;;  %s7860_s15 = inlined_call_operand.hbm [shape: f32[32,256], index: 15, kind: output, shape index: {}]  }
   0x1   :  { %7877 = sst [smem:[#allocation34_spill]] %s7846_s1 }
   0x2   :  { %7878 = sst [smem:[#allocation35_spill]] %s7847_s2 }
   0x3   :  { %7879 = sst [smem:[#allocation36_spill]] %s7848_s3 }
   0x4   :  { %7880 = sst [smem:[#allocation37_spill]] %s7850_s5 }
   0x5   :  { %7881 = sst [smem:[#allocation38_spill]] %s7852_s7 }
   0x6   :  { %7882 = sst [smem:[#allocation39_spill]] %s7853_s8 }
   0x7   :  { %7883 = sst [smem:[#allocation40_spill]] %s7855_s10 }
   0x8   :  { %7884 = sst [smem:[#allocation41_spill]] %s7858_s13 }
   0x9   :  { %7885 = sst [smem:[#allocation42_spill]] %s7859_s14 }
   0xa   :  { %7886 = sst [smem:[#allocation43_spill]] %s7860_s15 }
   0xb   :  { %20 = vsyncpa [#allocation4], 0 }
   0xc   :  { %21 = vsyncpa [#allocation7], 0 }
   0xd   :  { %23 = vsyncpa [#allocation7 + $0x1], 0 }
   0xe   :  { %24 = vsyncpa [#allocation10], 0 }
   0xf   :  { %26 = vsyncpa [#allocation10 + $0x1], 0 }
  0x10   :  { %27 = vsyncpa [#allocation13], 0 }
  0x11   :  { %29 = vsyncpa [#allocation13 + $0x1], 0 }
  0x12   :  { %30 = vsyncpa [#allocation16], 0 }
  0x13   :  { %32 = vsyncpa [#allocation16 + $0x1], 0 }
  0x14   :  { %33 = vsyncpa [#allocation19], 0 }
  0x15   :  { %35 = vsyncpa [#allocation19 + $0x1], 0 }
  0x16   :  { %36 = vsyncpa [#allocation5], 0  ;;  %s6310_s18 = smov 0   ;;  %s6312_s19 = smov 0  }
  0x17   :  { %s6314_s20 = smov 0   ;;  %s6316_s21 = smov 0  }
  0x18 LB: > { %7887 = sst [smem:[#allocation28_spill]] %s6198_s19  ;;  %s6331_s22 = sadd.s32 1, %s6206_s21   ;;  %s6206_s21 = sphi %s6316_s21, %s7929_s21   ;;  %s6202_s20 = sphi %s6314_s20, %s7932_s20   ;;  %s6198_s19 = sphi %s6312_s19, %s7931_s19   ;;  %s6194_s18 = sphi %s6310_s18, %s7930_s18  }
  0x19   : > { %7888 = sst [smem:[#allocation29_spill]] %s6202_s20  ;;  %s122_s23 = sadd.s32 1, %s6202_s20 }
  0x1a   : > { %7889 = sst [smem:[#allocation30_spill]] %s6331_s22  ;;  %s119_s24 = ssub.s32 %s6206_s21, %s6331_s22 }
  0x1b   : > { %p129_p0 = scmp.ne.s32.totalorder %s6202_s20, %s6198_s19  ;;  %p120_p1 = scmp.eq.s32.totalorder %s119_s24, 0 }
  0x1c   : > { %p130_p2 = scmp.eq.s32.totalorder %s6206_s21, 0  ;;  %p5285_p3 = scmp.lt.s32.totalorder %s6206_s21, 2 }
  0x1d   : > { %s6341_s25 = scalar_select %p120_p1, %s6202_s20, %s122_s23  }
  0x1e   : > { %p131_p4 = por %p130_p2, %p129_p0  ;;  %s6344_s26 = sand.u32 1, %s6206_s21  }
  0x1f   : > { %7890 = sst [smem:[#allocation31_spill]] %s6341_s25  ;;  %s6347_s27 = sand.u32 1, %s6202_s20  }
  0x20   : > { %s5220_s28 = smul.u32 768, %s6347_s27  ;;  %p6350_p5 = pnand %p5285_p3, %p131_p4 }
  0x21   : > { %s5221_s30 = smul.u32 12288, %s6206_s21  ;;  %s7892_s3 = sld [smem:[#allocation36_spill]] }
  0x22   : > { %s493_s23 = scalar_lea.vmem [#allocation6], %s5220_s28  ;;  %p6367_p7 = pneg %p6350_p5 }
  0x23   : > { %s500_s25 = sshll.u32 %s493_s23, 4  ;;  %s6360_s25 = int_to_ptr.vmem [resolvable:$true] %s500_s25 }
  0x27   : > { %s6358_s24 = scalar_lea.hbm %s7892_s3, %s5221_s30  ;;  %s5851_s17 = scalar_lea.hbm %s7892_s3, 24576 }
  0x28   : > { %s5846_s22 = scalar_lea.hbm %s6358_s24, 12288  ;;  %p5852_p10 = scmp.lt.s32.totalorder %s6358_s24, %s7892_s3 }
  0x29   : > { %p5847_p6 = scmp.ne.s32.totalorder %s6358_s24, %s5846_s22  ;;  %p5853_p11 = scmp.lt.s32.totalorder %s5851_s17, %s5846_s22 }
  0x2b   : > { %p5849_p8 = pnand %p6367_p7, %p5847_p6  ;;  %p5854_p12 = por %p5853_p11, %p5852_p10 }
  0x2d   : > { %p5850_p9 = pneg %p5849_p8 }
  0x2f   : > { %p5855_p13 = pnand %p5854_p12, %p5850_p9 }
  0x31   : > { %5858 = shalt.err (!%p5855_p13)
}
  0x32   : > { %s5859_s20 = scalar_lea.vmem %s6360_s25, 12288  ;;  %s6208_s14 = smov [#allocation6]  }
  0x33   : > { %p5860_p0 = scmp.ne.s32.totalorder %s6360_s25, %s5859_s20  ;;  %s5864_s30 = sshll.u32 %s6208_s14, 4  ;;  %s5865_s30 = int_to_ptr.vmem [resolvable:$false] %s5864_s30 }
  0x34   : > { %s5866_s16 = scalar_lea.vmem %s5865_s30, 24576  ;;  %p5867_p3 = scmp.lt.s32.totalorder %s6360_s25, %s5865_s30 }
  0x35   : > { %p5862_p1 = pnand %p5860_p0, %p6367_p7  ;;  %p5868_p4 = scmp.lt.s32.totalorder %s5866_s16, %s5859_s20 }
  0x37   : > { %p5863_p2 = pneg %p5862_p1  ;;  %p5869_p6 = por %p5868_p4, %p5867_p3 }
  0x39   : > { %p5870_p8 = pnand %p5869_p6, %p5863_p2 }
  0x3b   : > { %5873 = shalt.err (!%p5870_p8)
}
  0x3c   : > { %s6209_s22 = smov 384   ;;  %s6210_s17 = smov 24  }
  0x3d   : > { %s7894_s14 = scalar_lea.sflag [#allocation7], %s6344_s26  ;;  %s4818_s28 = sshll.u32 %s6347_s27, 8 }
  0x3e   : > { %5259 = dma.hbm_to_vmem [thread:$0]  (!%p6350_p5), %s6358_s24, 12288, %s6360_s25, %s7894_s14, %s6209_s22, %s6209_s22, %s6210_s17  }
  0x3f   : > { %s5149_s23 = sshll.u32 %s6206_s21, 12  ;;  %s7895_s5 = sld [smem:[#allocation37_spill]] }
  0x40   : > { %s533_s3 = scalar_lea.vmem [#allocation9], %s4818_s28  ;;  %s6401_s7 = sshll.u32 %s6347_s27, 1 }
  0x41   : > { %s540_s13 = sshll.u32 %s533_s3, 4  ;;  %s7866_s2 = scalar_lea.sflag [#allocation10], %s6344_s26  ;;  %s6398_s13 = int_to_ptr.vmem [resolvable:$true] %s540_s13 }
  0x45   : > { %s6396_s16 = scalar_lea.hbm %s7895_s5, %s5149_s23  ;;  %s5879_s22 = scalar_lea.hbm %s7895_s5, 8192 }
  0x46   : > { %s5874_s1 = scalar_lea.hbm %s6396_s16, 4096  ;;  %p5880_p12 = scmp.lt.s32.totalorder %s6396_s16, %s7895_s5 }
  0x47   : > { %p5875_p9 = scmp.ne.s32.totalorder %s6396_s16, %s5874_s1  ;;  %p5881_p13 = scmp.lt.s32.totalorder %s5879_s22, %s5874_s1 }
  0x49   : > { %p5877_p10 = pnand %p5875_p9, %p6367_p7  ;;  %p5882_p0 = por %p5881_p13, %p5880_p12 }
  0x4b   : > { %p5878_p11 = pneg %p5877_p10 }
  0x4d   : > { %p5883_p1 = pnand %p5882_p0, %p5878_p11 }
  0x4f   : > { %5886 = shalt.err (!%p5883_p1)
}
  0x50   : > { %s5887_s3 = scalar_lea.vmem %s6398_s13, 4096  ;;  %s6211_s28 = smov [#allocation9]  }
  0x51   : > { %p5888_p2 = scmp.ne.s32.totalorder %s6398_s13, %s5887_s3  ;;  %s5892_s23 = sshll.u32 %s6211_s28, 4  ;;  %s5893_s23 = int_to_ptr.vmem [resolvable:$false] %s5892_s23 }
  0x52   : > { %s5894_s20 = scalar_lea.vmem %s5893_s23, 8192  ;;  %p5895_p6 = scmp.lt.s32.totalorder %s6398_s13, %s5893_s23 }
  0x53   : > { %p5890_p3 = pnand %p5888_p2, %p6367_p7  ;;  %p5896_p8 = scmp.lt.s32.totalorder %s5894_s20, %s5887_s3 }
  0x55   : > { %p5891_p4 = pneg %p5890_p3  ;;  %p5897_p9 = por %p5896_p8, %p5895_p6 }
  0x57   : > { %p5898_p10 = pnand %p5897_p9, %p5891_p4 }
  0x59   : > { %5901 = shalt.err (!%p5898_p10)
}
  0x5a   : > { %s7864_s1 = smov 128   ;;  %s7865_s30 = smov 8  }
  0x5b   : > { %5265 = dma.hbm_to_vmem [thread:$0]  (!%p6350_p5), %s6396_s16, 4096, %s6398_s13, %s7866_s2, %s7864_s1, %s7864_s1, %s7865_s30  }
  0x5c   : > { %s6430_s25 = sshll.u32 %s6206_s21, 5  ;;  %s7896_s8 = sld [smem:[#allocation39_spill]] }
  0x5d   : > { %s580_s14 = scalar_lea.vmem [#allocation12], %s6401_s7  ;;  %s4830_s28 = sshll.u32 %s6347_s27, 2 }
  0x5e   : > { %s588_s3 = sshll.u32 %s580_s14, 4  ;;  %s589_s3 = int_to_ptr.vmem [resolvable:$true] %s588_s3 }
  0x62   : > { %s6436_s17 = scalar_lea.hbm %s7896_s8, %s6430_s25  ;;  %s5907_s1 = scalar_lea.hbm %s7896_s8, 64 }
  0x63   : > { %s5902_s20 = scalar_lea.hbm %s6436_s17, 32  ;;  %p5908_p0 = scmp.lt.s32.totalorder %s6436_s17, %s7896_s8 }
  0x64   : > { %p5903_p11 = scmp.ne.s32.totalorder %s6436_s17, %s5902_s20  ;;  %p5909_p1 = scmp.lt.s32.totalorder %s5907_s1, %s5902_s20 }
  0x66   : > { %p5905_p12 = pnand %p5903_p11, %p6367_p7  ;;  %p5910_p2 = por %p5909_p1, %p5908_p0 }
  0x68   : > { %p5906_p13 = pneg %p5905_p12 }
  0x6a   : > { %p5911_p3 = pnand %p5910_p2, %p5906_p13 }
  0x6c   : > { %5914 = shalt.err (!%p5911_p3)
}
  0x6d   : > { %s5915_s14 = scalar_lea.vmem %s589_s3, 32  ;;  %s6214_s30 = smov [#allocation12]  }
  0x6e   : > { %p5916_p4 = scmp.ne.s32.totalorder %s589_s3, %s5915_s14  ;;  %s5920_s2 = sshll.u32 %s6214_s30, 4  ;;  %s5921_s2 = int_to_ptr.vmem [resolvable:$false] %s5920_s2 }
  0x6f   : > { %s5922_s23 = scalar_lea.vmem %s5921_s2, 64  ;;  %p5923_p9 = scmp.lt.s32.totalorder %s589_s3, %s5921_s2 }
  0x70   : > { %p5918_p6 = pnand %p5916_p4, %p6367_p7  ;;  %p5924_p10 = scmp.lt.s32.totalorder %s5922_s23, %s5915_s14 }
  0x72   : > { %p5919_p8 = pneg %p5918_p6  ;;  %p5925_p11 = por %p5924_p10, %p5923_p9 }
  0x74   : > { %p5926_p12 = pnand %p5925_p11, %p5919_p8 }
  0x76   : > { %5929 = shalt.err (!%p5926_p12)
}
  0x77   : > { %s7897_s1 = scalar_lea.sflag [#allocation13], %s6344_s26  ;;  %s5153_s20 = sshll.u32 %s6206_s21, 6 }
  0x78   : > { %5271 = dma.hbm_to_vmem [thread:$0]  (!%p6350_p5), %s6436_s17, 32, %s589_s3, %s7897_s1  }
  0x79   : > { %s7898_s10 = sld [smem:[#allocation40_spill]]  ;;  %s620_s2 = scalar_lea.vmem [#allocation15], %s4830_s28 }
  0x7a   : > { %s628_s23 = sshll.u32 %s620_s2, 4  ;;  %s7867_s24 = scalar_lea.sflag [#allocation16], %s6344_s26  ;;  %s629_s23 = int_to_ptr.vmem [resolvable:$true] %s628_s23 }
  0x7f   : > { %s6463_s30 = scalar_lea.hbm %s7898_s10, %s5153_s20  ;;  %s5935_s3 = scalar_lea.hbm %s7898_s10, 128 }
  0x80   : > { %s5930_s22 = scalar_lea.hbm %s6463_s30, 64  ;;  %p5936_p2 = scmp.lt.s32.totalorder %s6463_s30, %s7898_s10 }
  0x81   : > { %p5931_p13 = scmp.ne.s32.totalorder %s6463_s30, %s5930_s22  ;;  %p5937_p3 = scmp.lt.s32.totalorder %s5935_s3, %s5930_s22 }
  0x83   : > { %p5933_p0 = pnand %p5931_p13, %p6367_p7  ;;  %p5938_p4 = por %p5937_p3, %p5936_p2 }
  0x85   : > { %p5934_p1 = pneg %p5933_p0 }
  0x87   : > { %p5939_p6 = pnand %p5938_p4, %p5934_p1 }
  0x89   : > { %5942 = shalt.err (!%p5939_p6)
}
  0x8a   : > { %s5943_s28 = scalar_lea.vmem %s629_s23, 64  ;;  %s6215_s20 = smov [#allocation15]  }
  0x8b   : > { %p5944_p8 = scmp.ne.s32.totalorder %s629_s23, %s5943_s28  ;;  %s5948_s16 = sshll.u32 %s6215_s20, 4  ;;  %s5949_s16 = int_to_ptr.vmem [resolvable:$false] %s5948_s16 }
  0x8c   : > { %s5950_s2 = scalar_lea.vmem %s5949_s16, 128  ;;  %p5951_p11 = scmp.lt.s32.totalorder %s629_s23, %s5949_s16 }
  0x8d   : > { %p5946_p9 = pnand %p5944_p8, %p6367_p7  ;;  %p5952_p12 = scmp.lt.s32.totalorder %s5950_s2, %s5943_s28 }
  0x8f   : > { %p5947_p10 = pneg %p5946_p9  ;;  %p5953_p13 = por %p5952_p12, %p5951_p11 }
  0x91   : > { %p5954_p0 = pnand %p5953_p13, %p5947_p10 }
  0x93   : > { %5957 = shalt.err (!%p5954_p0)
}
  0x94   : > { %5277 = dma.hbm_to_vmem [thread:$0]  (!%p6350_p5), %s6463_s30, 64, %s629_s23, %s7867_s24  }
  0x95   : > { %s6485_s22 = sadd.s32 4294967295, %s6206_s21   ;;  %p135_p1 = scmp.ne.s32.totalorder %s6198_s19, %s6194_s18 }
  0x96   : > { %7899 = sst [smem:[#allocation32_spill]] %s6485_s22  ;;  %p7874_p2 = scmp.eq.s32.totalorder %s6485_s22, 0 }
  0x97   : > { %p4813_p3 = scmp.ge.s32.totalorder %s6206_s21, 1  ;;  %p443_p4 = scmp.lt.s32.totalorder %s6206_s21, 3 }
  0x98   : > { %p6494_p6 = por %p7874_p2, %p135_p1  ;;  %s6216_s30 = smov [#allocation3]  }
  0x99   : > { %p6499_p9 = pnand %p4813_p3, %p443_p4  ;;  %s455_s23 = sshll.u32 %s6216_s30, 4  ;;  %s456_s23 = int_to_ptr.vmem [resolvable:$true] %s455_s23 }
  0x9a   : > { %s7900_s14 = scalar_select %p6494_p6, 1, 0 }
  0x9b   : > { %s7902_s17 = scalar_select %p6499_p9, 1, 0 }
  0x9c   : > { %7901 = sst [smem:[#allocation33_spill]] %s7900_s14  ;;  %p5252_p10 = pneg %p6499_p9 }
  0x9d   : > { %s5222_s18 = smul.u32 6, %s6347_s27  ;;  %s5969_s16 = scalar_lea.vmem %s456_s23, 1024 }
  0x9e   : > { %p6508_p11 = pnand %p5252_p10, %p7874_p2  ;;  %s5223_s1 = smul.u32 96, %s6206_s21 }
  0x9f   : > { %p5970_p13 = scmp.ne.s32.totalorder %s456_s23, %s5969_s16  ;;  %p5977_p3 = scmp.lt.s32.totalorder %s456_s23, %s456_s23 }
  0xa0   : > { %s6516_s20 = scalar_lea.hbm %s7849_s4, %s5223_s1  ;;  %p5960_p12 = pneg %p6508_p11 }
  0xa1   : > { %p5978_p4 = scmp.lt.s32.totalorder %s5969_s16, %s5969_s16 }
  0xa2   : > { %p5972_p0 = pnand %p5970_p13, %p5960_p12 }
  0xa3   : > { %p5979_p8 = por %p5978_p4, %p5977_p3 }
  0xa4   : > { %p5973_p1 = pneg %p5972_p0 }
  0xa6   : > { %p5980_p10 = pnand %p5979_p8, %p5973_p1 }
  0xa8   : > { %5983 = shalt.err (!%p5980_p10)
}
  0xa9   : > { %s6217_s2 = smov 256   ;;  %s6218_s30 = smov 16  }
  0xaa   : > { %5255 = dma.hbm_to_vmem [thread:$0]  (!%p6508_p11), %s7845_s0, 1024, %s456_s23, [#allocation4], %s6217_s2, %s6217_s2, %s6218_s30  }
  0xab   : > { %s514_s28 = scalar_lea.vmem [#allocation8], %s5222_s18  ;;  %s6532_s8 = scalar_lea.hbm %s7851_s6, %s6430_s25 }
  0xac   : > { %s522_s16 = sshll.u32 %s514_s28, 4  ;;  %s554_s10 = scalar_lea.vmem [#allocation11], %s6401_s7  ;;  %s523_s16 = int_to_ptr.vmem [resolvable:$true] %s522_s16 }
  0xad   : > { %s562_s14 = sshll.u32 %s554_s10, 4  ;;  %s5984_s19 = scalar_lea.hbm %s6516_s20, 96  ;;  %s563_s14 = int_to_ptr.vmem [resolvable:$true] %s562_s14 }
  0xae   : > { %p5985_p8 = scmp.ne.s32.totalorder %s6516_s20, %s5984_s19  ;;  %s5989_s1 = scalar_lea.hbm %s7849_s4, 192 }
  0xaf   : > { %p5990_p11 = scmp.lt.s32.totalorder %s6516_s20, %s7849_s4  ;;  %p5991_p0 = scmp.lt.s32.totalorder %s5989_s1, %s5984_s19 }
  0xb0   : > { %p5987_p12 = pnand %p5985_p8, %p6367_p7 }
  0xb1   : > { %p5992_p1 = por %p5991_p0, %p5990_p11 }
  0xb2   : > { %p5988_p13 = pneg %p5987_p12 }
  0xb4   : > { %p5993_p3 = pnand %p5992_p1, %p5988_p13 }
  0xb6   : > { %5996 = shalt.err (!%p5993_p3)
}
  0xb7   : > { %s5997_s5 = scalar_lea.vmem %s523_s16, 96  ;;  %s6219_s10 = smov [#allocation8]  }
  0xb8   : > { %p5998_p4 = scmp.ne.s32.totalorder %s523_s16, %s5997_s5  ;;  %s6002_s24 = sshll.u32 %s6219_s10, 4  ;;  %s6003_s24 = int_to_ptr.vmem [resolvable:$false] %s6002_s24 }
  0xb9   : > { %s6004_s13 = scalar_lea.vmem %s6003_s24, 192  ;;  %p6005_p8 = scmp.lt.s32.totalorder %s523_s16, %s6003_s24 }
  0xba   : > { %p6000_p10 = pnand %p5998_p4, %p6367_p7  ;;  %p6006_p12 = scmp.lt.s32.totalorder %s6004_s13, %s5997_s5 }
  0xbc   : > { %p6001_p2 = pneg %p6000_p10  ;;  %p6007_p6 = por %p6006_p12, %p6005_p8 }
  0xbe   : > { %p6008_p9 = pnand %p6007_p6, %p6001_p2 }
  0xc0   : > { %6011 = shalt.err (!%p6008_p9)
}
  0xc1   : > { %s7904_s19 = scalar_lea.sflag [#allocation7], %s6344_s26  ;;  %s4827_s22 = sshll.u32 %s6347_s27, 9 }
  0xc2   : > { %5262 = dma.hbm_to_vmem [thread:$0]  (!%p6350_p5), %s6516_s20, 96, %s523_s16, %s7904_s19  }
  0xc3   : > { %s6012_s28 = scalar_lea.hbm %s6532_s8, 32  ;;  %s6017_s23 = scalar_lea.hbm %s7851_s6, 64 }
  0xc4   : > { %p6013_p13 = scmp.ne.s32.totalorder %s6532_s8, %s6012_s28  ;;  %p6018_p2 = scmp.lt.s32.totalorder %s6532_s8, %s7851_s6 }
  0xc5   : > { %p6019_p6 = scmp.lt.s32.totalorder %s6017_s23, %s6012_s28 }
  0xc6   : > { %p6015_p11 = pnand %p6013_p13, %p6367_p7 }
  0xc7   : > { %p6020_p9 = por %p6019_p6, %p6018_p2 }
  0xc8   : > { %p6016_p0 = pneg %p6015_p11 }
  0xca   : > { %p6021_p1 = pnand %p6020_p9, %p6016_p0 }
  0xcc   : > { %6024 = shalt.err (!%p6021_p1)
}
  0xcd   : > { %s6025_s20 = scalar_lea.vmem %s563_s14, 32  ;;  %s6220_s16 = smov [#allocation11]  }
  0xce   : > { %p6026_p3 = scmp.ne.s32.totalorder %s563_s14, %s6025_s20  ;;  %s6030_s10 = sshll.u32 %s6220_s16, 4  ;;  %s6031_s10 = int_to_ptr.vmem [resolvable:$false] %s6030_s10 }
  0xcf   : > { %s6032_s24 = scalar_lea.vmem %s6031_s10, 64  ;;  %p6033_p8 = scmp.lt.s32.totalorder %s563_s14, %s6031_s10 }
  0xd0   : > { %p6028_p4 = pnand %p6026_p3, %p6367_p7  ;;  %p6034_p12 = scmp.lt.s32.totalorder %s6032_s24, %s6025_s20 }
  0xd2   : > { %p6029_p10 = pneg %p6028_p4  ;;  %p6035_p13 = por %p6034_p12, %p6033_p8 }
  0xd4   : > { %p6036_p11 = pnand %p6035_p13, %p6029_p10 }
  0xd6   : > { %6039 = shalt.err (!%p6036_p11)
}
  0xd7   : > { %s7905_s13 = scalar_lea.sflag [#allocation10], %s6344_s26  ;;  %s5152_s19 = sshll.u32 %s6206_s21, 13 }
  0xd8   : > { %5268 = dma.hbm_to_vmem [thread:$0]  (!%p6350_p5), %s6532_s8, 32, %s563_s14, %s7905_s13  }
  0xd9   : > { %s6578_s1 = scalar_lea.hbm %s7854_s9, %s5152_s19  ;;  %s599_s23 = scalar_lea.vmem [#allocation14], %s4827_s22 }
  0xda   : > { %s606_s18 = sshll.u32 %s599_s23, 4  ;;  %s6040_s5 = scalar_lea.hbm %s6578_s1, 8192  ;;  %s607_s18 = int_to_ptr.vmem [resolvable:$true] %s606_s18 }
  0xdb   : > { %p6041_p0 = scmp.ne.s32.totalorder %s6578_s1, %s6040_s5  ;;  %s6045_s20 = scalar_lea.hbm %s7854_s9, 16384 }
  0xdc   : > { %p6046_p9 = scmp.lt.s32.totalorder %s6578_s1, %s7854_s9  ;;  %p6047_p1 = scmp.lt.s32.totalorder %s6045_s20, %s6040_s5 }
  0xdd   : > { %p6043_p2 = pnand %p6041_p0, %p6367_p7 }
  0xde   : > { %p6048_p3 = por %p6047_p1, %p6046_p9 }
  0xdf   : > { %p6044_p6 = pneg %p6043_p2 }
  0xe1   : > { %p6049_p4 = pnand %p6048_p3, %p6044_p6 }
  0xe3   : > { %6052 = shalt.err (!%p6049_p4)
}
  0xe4   : > { %s6053_s24 = scalar_lea.vmem %s607_s18, 8192  ;;  %s6221_s13 = smov [#allocation14]  }
  0xe5   : > { %p6054_p10 = scmp.ne.s32.totalorder %s607_s18, %s6053_s24  ;;  %s6058_s28 = sshll.u32 %s6221_s13, 4  ;;  %s6059_s28 = int_to_ptr.vmem [resolvable:$false] %s6058_s28 }
  0xe6   : > { %s6060_s3 = scalar_lea.vmem %s6059_s28, 16384  ;;  %p6061_p13 = scmp.lt.s32.totalorder %s607_s18, %s6059_s28 }
  0xe7   : > { %p6056_p8 = pnand %p6054_p10, %p6367_p7  ;;  %p6062_p11 = scmp.lt.s32.totalorder %s6060_s3, %s6053_s24 }
  0xe9   : > { %p6057_p12 = pneg %p6056_p8  ;;  %p6063_p0 = por %p6062_p11, %p6061_p13 }
  0xeb   : > { %p6064_p2 = pnand %p6063_p0, %p6057_p12 }
  0xed   : > { %6067 = shalt.err (!%p6064_p2)
}
  0xee   : > { %s7906_s23 = scalar_lea.sflag [#allocation13], %s6344_s26  ;;  %s6608_s14 = scalar_lea.hbm %s7856_s11, %s5152_s19 }
  0xef   : > { %5274 = dma.hbm_to_vmem [thread:$0]  (!%p6350_p5), %s6578_s1, 8192, %s607_s18, %s7906_s23, %s6217_s2, %s6217_s2, %s6218_s30  }
  0xf0   : > { %s639_s20 = scalar_lea.vmem [#allocation17], %s4827_s22  ;;  %s6068_s10 = scalar_lea.hbm %s6608_s14, 8192 }
  0xf1   : > { %s646_s16 = sshll.u32 %s639_s20, 4  ;;  %p6069_p6 = scmp.ne.s32.totalorder %s6608_s14, %s6068_s10  ;;  %s647_s16 = int_to_ptr.vmem [resolvable:$true] %s646_s16 }
  0xf2   : > { %s6073_s21 = scalar_lea.hbm %s7856_s11, 16384  ;;  %p6074_p3 = scmp.lt.s32.totalorder %s6608_s14, %s7856_s11 }
  0xf3   : > { %p6071_p9 = pnand %p6069_p6, %p6367_p7  ;;  %p6075_p4 = scmp.lt.s32.totalorder %s6073_s21, %s6068_s10 }
  0xf5   : > { %p6072_p1 = pneg %p6071_p9  ;;  %p6076_p10 = por %p6075_p4, %p6074_p3 }
  0xf7   : > { %p6077_p8 = pnand %p6076_p10, %p6072_p1 }
  0xf9   : > { %6080 = shalt.err (!%p6077_p8)
}
  0xfa   : > { %s6081_s22 = scalar_lea.vmem %s647_s16, 8192  ;;  %s6222_s19 = smov [#allocation17]  }
  0xfb   : > { %p6082_p12 = scmp.ne.s32.totalorder %s647_s16, %s6081_s22  ;;  %s6086_s18 = sshll.u32 %s6222_s19, 4  ;;  %s6087_s18 = int_to_ptr.vmem [resolvable:$false] %s6086_s18 }
  0xfc   : > { %s6088_s13 = scalar_lea.vmem %s6087_s18, 16384  ;;  %p6089_p0 = scmp.lt.s32.totalorder %s647_s16, %s6087_s18 }
  0xfd   : > { %p6084_p13 = pnand %p6082_p12, %p6367_p7  ;;  %p6090_p2 = scmp.lt.s32.totalorder %s6088_s13, %s6081_s22 }
  0xff   : > { %p6085_p11 = pneg %p6084_p13  ;;  %p6091_p6 = por %p6090_p2, %p6089_p0 }
 0x101   : > { %p6092_p9 = pnand %p6091_p6, %p6085_p11 }
 0x103   : > { %6095 = shalt.err (!%p6092_p9)
}
 0x104   : > { %s7907_s28 = smov 8   ;;  %s7908_s3 = smov 128  }
 0x105   : > { %s7909_s23 = scalar_lea.sflag [#allocation16], %s6344_s26  ;;  %s6637_s20 = scalar_lea.hbm %s7857_s12, %s6430_s25 }
 0x106   : > { %5280 = dma.hbm_to_vmem [thread:$0]  (!%p6350_p5), %s6608_s14, 8192, %s647_s16, %s7909_s23, %s7908_s3, %s7908_s3, %s7907_s28  }
 0x107   : > { %s660_s10 = scalar_lea.vmem [#allocation18], %s6401_s7  ;;  %s657_s2 = scalar_lea.sflag [#allocation19], %s6347_s27 }
 0x108   : > { %s668_s24 = sshll.u32 %s660_s10, 4  ;;  %s6096_s21 = scalar_lea.hbm %s6637_s20, 32  ;;  %s669_s24 = int_to_ptr.vmem [resolvable:$true] %s668_s24 }
 0x109   : > { %p6097_p1 = scmp.ne.s32.totalorder %s6637_s20, %s6096_s21  ;;  %s6101_s14 = scalar_lea.hbm %s7857_s12, 64 }
 0x10a   : > { %p6102_p10 = scmp.lt.s32.totalorder %s6637_s20, %s7857_s12  ;;  %p6103_p8 = scmp.lt.s32.totalorder %s6101_s14, %s6096_s21 }
 0x10b   : > { %p6099_p3 = pnand %p6097_p1, %p6367_p7 }
 0x10c   : > { %p6104_p12 = por %p6103_p8, %p6102_p10 }
 0x10d   : > { %p6100_p4 = pneg %p6099_p3 }
 0x10f   : > { %p6105_p13 = pnand %p6104_p12, %p6100_p4 }
 0x111   : > { %6108 = shalt.err (!%p6105_p13)
}
 0x112   : > { %s6109_s7 = scalar_lea.vmem %s669_s24, 32  ;;  %s6223_s27 = smov [#allocation18]  }
 0x113   : > { %p6110_p11 = scmp.ne.s32.totalorder %s669_s24, %s6109_s7  ;;  %s6114_s25 = sshll.u32 %s6223_s27, 4  ;;  %s6115_s25 = int_to_ptr.vmem [resolvable:$false] %s6114_s25 }
 0x114   : > { %s6116_s22 = scalar_lea.vmem %s6115_s25, 64  ;;  %p6117_p6 = scmp.lt.s32.totalorder %s669_s24, %s6115_s25 }
 0x115   : > { %p6112_p0 = pnand %p6110_p11, %p6367_p7  ;;  %p6118_p9 = scmp.lt.s32.totalorder %s6116_s22, %s6109_s7 }
 0x117   : > { %p6113_p2 = pneg %p6112_p0  ;;  %p6119_p1 = por %p6118_p9, %p6117_p6 }
 0x119   : > { %p6120_p3 = pnand %p6119_p1, %p6113_p2 }
 0x11b   : > { %6123 = shalt.err (!%p6120_p3)
}
 0x11c   : > { %5283 = dma.hbm_to_vmem [thread:$0]  (!%p6350_p5), %s6637_s20, 32, %s669_s24, %s657_s2  }
 0x11d   : > { %p7910_p4 = scmp.ne.s32.totalorder %s7902_s17, 0 }
 0x11e   : > { %s7911_s19 = sld [smem:[#allocation32_spill]] (!%p7910_p4) }
 0x11f   : > { %677 = sbr.rel (%p7910_p4) target bundleno = 4664 (0x1238), region = 80 }
 0x124   : > { %p7912_p10 = scmp.eq.s32.totalorder %s7911_s19, 0 }
 0x126   : > { %6165 = dma.done.wait (%p7912_p10), [#allocation4], 1024   ;;  %p7913_p7 = pmov %p7912_p10 }
 0x127   : > { %s7914_s15 = sld [smem:[#allocation28_spill]]  ;;  %s683_s13 = sand.u32 1, %s7911_s19  }
 0x128   : > { %6167 = vsyncadd (%p7913_p7), [#allocation4], 4294966272  ;;  %s7915_s18 = sld [smem:[#allocation33_spill]]  ;;  %s684_s29 = scalar_lea.sflag [#allocation7], %s683_s13 }
 0x12d   : > { %s6665_s28 = sand.u32 1, %s7914_s15  }
 0x12e   : > { %s5224_s3 = smul.u32 768, %s6665_s28  ;;  %p7916_p5 = scmp.ne.s32.totalorder %s7915_s18, 0 }
 0x130   : > { %s6668_s23 = scalar_lea.vmem [#allocation6], %s5224_s3 }
 0x131   : > { %6169 = dma.done.wait (%p7916_p5), %s684_s29, 12384  }
 0x132   : > { %6171 = vsyncadd (%p7916_p5), %s684_s29, 4294954912  ;;  %s5225_s17 = smul.u32 6, %s6665_s28  ;;  %s4841_s5 = sshll.u32 %s6665_s28, 8 }
 0x133   : > { %s702_s20 = scalar_lea.sflag [#allocation10], %s683_s13  ;;  %s6678_s10 = scalar_lea.vmem [#allocation9], %s4841_s5 }
 0x134   : > { %s6676_s8 = scalar_lea.vmem [#allocation8], %s5225_s17 }
 0x135   : > { %6173 = dma.done.wait (%p7916_p5), %s702_s20, 4128  }
 0x136   : > { %6175 = vsyncadd (%p7916_p5), %s702_s20, 4294963168  ;;  %s6685_s24 = sshll.u32 %s6665_s28, 1  ;;  %s720_s21 = scalar_lea.sflag [#allocation13], %s683_s13 }
 0x137   : > { %s714_s2 = scalar_lea.vmem [#allocation11], %s6685_s24  ;;  %s723_s26 = scalar_lea.vmem [#allocation12], %s6685_s24 }
 0x138   : > { %6177 = dma.done.wait (%p7916_p5), %s720_s21, 8224  }
 0x139   : > { %6179 = vsyncadd (%p7916_p5), %s720_s21, 4294959072  ;;  %s4844_s30 = sshll.u32 %s6665_s28, 9  ;;  %s4845_s14 = sshll.u32 %s6665_s28, 2 }
 0x13a   : > { %s6695_s16 = scalar_lea.vmem [#allocation14], %s4844_s30  ;;  %s738_s1 = scalar_lea.sflag [#allocation16], %s683_s13 }
 0x13b   : > { %s6697_s7 = scalar_lea.vmem [#allocation15], %s4845_s14 }
 0x13c   : > { %6181 = dma.done.wait (%p7916_p5), %s738_s1, 8256  }
 0x13d   : > { %6183 = vsyncadd (%p7916_p5), %s738_s1, 4294959040  ;;  %s6703_s27 = scalar_lea.vmem [#allocation17], %s4844_s30  ;;  %s756_s25 = scalar_lea.sflag [#allocation19], %s6665_s28 }
 0x13e   : > { %s759_s22 = scalar_lea.vmem [#allocation18], %s6685_s24 }
 0x13f   : > { %6185 = dma.done.wait (%p7916_p5), %s756_s25, 32  }
 0x140   : > { %6187 = vsyncadd (%p7916_p5), %s756_s25, 4294967264  ;;  %p853_p8 = scmp.lt.s32.totalorder %s7911_s19, 1  ;;  %s7917_s17 = sld [smem:[#allocation34_spill]] }
 0x141   : > { %s7918_s21 = sld [smem:[#allocation35_spill]]  ;;  %p7920_p12 = scmp.ne.s32.totalorder %s7911_s19, 0 }
 0x142   : > { %s854_s15 = scalar_select %p853_p8, %s7911_s19, 1 }
 0x143   : > { %s7919_s1 = sld [smem:[#allocation38_spill]] }
 0x144   : > { %s6713_s13 = sshll.u32 %s854_s15, 1 }
 0x145   : > { %869 = sbr.rel (%p7920_p12) target bundleno = 335 (0x14f), region = 124 }
 0x146   : > { %s856_s5 = scalar_lea.vmem %s7917_s17, %s6713_s13 }
 0x147   : > { %s860_s30 = scalar_lea.vmem %s7918_s21, %s6713_s13 }
 0x149   : > { %s864_s25 = scalar_lea.vmem %s7919_s1, %s6713_s13 }
 0x14a   : > { %v870_v0 = vld [vmem:[#allocation3] sm:$0xff]  ;;  %v871_v1 = vld [vmem:[#allocation3 + $0x8] sm:$0xff]  ;;  %v872_v2 = vld [vmem:[#allocation3 + $0x10] sm:$0xff] }
 0x14b   : > { %878 = vst [vmem:[#allocation2 + $0x30] sm:$0xff] %v870_v0  ;;  %879 = vst [vmem:[#allocation2] sm:$0xff] %v871_v1  ;;  %v873_v3 = vld [vmem:[#allocation3 + $0x18] sm:$0xff]  ;;  %v874_v4 = vld [vmem:[#allocation3 + $0x20] sm:$0xff] }
 0x14c   : > { %880 = vst [vmem:[#allocation2 + $0x18] sm:$0xff] %v872_v2  ;;  %v875_v5 = vld [vmem:[#allocation3 + $0x28] sm:$0xff]  ;;  %881 = vst [vmem:[#allocation2 + $0x10] sm:$0xff] %v873_v3  ;;  %v876_v6 = vld [vmem:[#allocation3 + $0x30] sm:$0xff] }
 0x14d   : > { %882 = vst [vmem:[#allocation2 + $0x8] sm:$0xff] %v874_v4  ;;  %883 = vst [vmem:[#allocation2 + $0x20] sm:$0xff] %v875_v5  ;;  %v877_v7 = vld [vmem:[#allocation3 + $0x38] sm:$0xff] }
 0x14e   : > { %884 = vst [vmem:[#allocation2 + $0x28] sm:$0xff] %v876_v6  ;;  %885 = vst [vmem:[#allocation2 + $0x38] sm:$0xff] %v877_v7 }
 0x14f PF: > { %v5334_v17 = vld [vmem:[%s6668_s23 + $0x154] ss:$24 sps:$4 sm:$0xff]   ;;  %v5338_v19 = vld [vmem:[%s6668_s23 + $0x150] ss:$24 sps:$4 sm:$0xff]   ;;  %v5340_v21 = vld [vmem:[%s6668_s23 + $0x124] ss:$24 sps:$4 sm:$0xff]  }
 0x150   : > { %v5336_v18 = vld [vmem:[%s6668_s23 + $0x15c] ss:$24 sps:$4 sm:$0xff]   ;;  %v5339_v20 = vld [vmem:[%s6668_s23 + $0x158] ss:$24 sps:$4 sm:$0xff]   ;;  %v5342_v22 = vld [vmem:[%s6668_s23 + $0x12c] ss:$24 sps:$4 sm:$0xff]   ;;  %1611 = vmatprep.subr.bf16.mxu0 %v5334_v17 }
 0x151   : > { %1664 = vmatprep.subr.bf16.mxu1 %v5336_v18  ;;  %1612 = vmatpush1.bf16.msra.mxu0 %v5338_v19  ;;  %v5344_v23 = vld [vmem:[%s6668_s23 + $0x120] ss:$24 sps:$4 sm:$0xff]   ;;  %v5346_v25 = vld [vmem:[%s6668_s23 + $0xf4] ss:$24 sps:$4 sm:$0xff]   ;;  %v5350_v27 = vld [vmem:[%s6668_s23 + $0xf0] ss:$24 sps:$4 sm:$0xff]  }
 0x152   : > { %v6729_v8 = vld [vmem:[#allocation2 + $0x30] sm:$0xff]  ;;  %v6731_v9 = vld [vmem:[#allocation2] sm:$0xff]  ;;  %1665 = vmatpush1.bf16.msra.mxu1 %v5339_v20  ;;  %1613 = vmatprep.subr.bf16.mxu0 %v5340_v21  ;;  %vm6225_vm0 = vmmov 0   ;;  %vm1816_vm1 = vcmask 130048   ;;  %s7924_s24 = sld [smem:[#allocation32_spill]] }
 0x153   : > { %v6733_v10 = vld [vmem:[#allocation2 + $0x18] sm:$0xff]  ;;  %v896_v11 = vadd.f32 %v6731_v9, %v6729_v8  ;;  %v6737_v12 = vld [vmem:[#allocation2 + $0x10] sm:$0xff]  ;;  %v5345_v24 = vld [vmem:[%s6668_s23 + $0x128] ss:$24 sps:$4 sm:$0xff]   ;;  %1666 = vmatprep.subr.bf16.mxu1 %v5342_v22 }
 0x154   : > { %v6739_v13 = vld [vmem:[#allocation2 + $0x8] sm:$0xff]  ;;  %v6741_v14 = vld [vmem:[#allocation2 + $0x20] sm:$0xff]  ;;  %v899_v15 = vadd.f32 %v6737_v12, %v6733_v10  ;;  %v5348_v26 = vld [vmem:[%s6668_s23 + $0xfc] ss:$24 sps:$4 sm:$0xff]  }
 0x155   : > { %897 = vadd.xlane.f32.xlu0 %v896_v11  ;;  %v902_v16 = vadd.f32 %v6741_v14, %v6739_v13  ;;  %1614 = vmatpush1.bf16.msra.mxu0 %v5344_v23  ;;  %v5351_v28 = vld [vmem:[%s6668_s23 + $0xf8] ss:$24 sps:$4 sm:$0xff]   ;;  %v5352_v29 = vld [vmem:[%s6668_s23 + $0xc4] ss:$24 sps:$4 sm:$0xff]   ;;  %v5357_v32 = vld [vmem:[%s6668_s23 + $0xc8] ss:$24 sps:$4 sm:$0xff]  }
 0x156   : > { %1667 = vmatpush1.bf16.msra.mxu1 %v5345_v24  ;;  %1615 = vmatprep.subr.bf16.mxu0 %v5346_v25  ;;  %v5354_v30 = vld [vmem:[%s6668_s23 + $0xcc] ss:$24 sps:$4 sm:$0xff]   ;;  %v5356_v31 = vld [vmem:[%s6668_s23 + $0xc0] ss:$24 sps:$4 sm:$0xff]   ;;  %v5360_v34 = vld [vmem:[%s6668_s23 + $0x9c] ss:$24 sps:$4 sm:$0xff]  }
 0x157   : > { %1668 = vmatprep.subr.bf16.mxu1 %v5348_v26  ;;  %v5358_v33 = vld [vmem:[%s6668_s23 + $0x94] ss:$24 sps:$4 sm:$0xff]   ;;  %v5362_v35 = vld [vmem:[%s6668_s23 + $0x90] ss:$24 sps:$4 sm:$0xff]   ;;  %v5364_v37 = vld [vmem:[%s6668_s23 + $0x64] ss:$24 sps:$4 sm:$0xff]  }
 0x158   : > { %v5363_v36 = vld [vmem:[%s6668_s23 + $0x98] ss:$24 sps:$4 sm:$0xff]   ;;  %v5366_v38 = vld [vmem:[%s6668_s23 + $0x6c] ss:$24 sps:$4 sm:$0xff]   ;;  %v5369_v40 = vld [vmem:[%s6668_s23 + $0x68] ss:$24 sps:$4 sm:$0xff]  }
 0x159   : > { %900 = vadd.xlane.f32.xlu0 %v899_v15  ;;  %1616 = vmatpush1.bf16.msra.mxu0 %v5350_v27  ;;  %v5368_v39 = vld [vmem:[%s6668_s23 + $0x60] ss:$24 sps:$4 sm:$0xff]   ;;  %v5370_v41 = vld [vmem:[%s6668_s23 + $0x34] ss:$24 sps:$4 sm:$0xff]   ;;  %v5374_v43 = vld [vmem:[%s6668_s23 + $0x30] ss:$24 sps:$4 sm:$0xff]  }
 0x15a   : > { %1669 = vmatpush1.bf16.msra.mxu1 %v5351_v28  ;;  %1617 = vmatprep.subr.bf16.mxu0 %v5352_v29  ;;  %v5372_v42 = vld [vmem:[%s6668_s23 + $0x3c] ss:$24 sps:$4 sm:$0xff]   ;;  %v5375_v44 = vld [vmem:[%s6668_s23 + $0x38] ss:$24 sps:$4 sm:$0xff]   ;;  %v5378_v46 = vld [vmem:[%s6668_s23 + $0xc] ss:$24 sps:$4 sm:$0xff]  }
 0x15b   : > { %1670 = vmatprep.subr.bf16.mxu1 %v5354_v30  ;;  %v5376_v45 = vld [vmem:[%s6668_s23 + $0x4] ss:$24 sps:$4 sm:$0xff]   ;;  %v5380_v47 = vld [vmem:[%s6668_s23] ss:$24 sps:$4 sm:$0xff]   ;;  %v5382_v49 = vld [vmem:[%s6668_s23 + $0x2d4] ss:$24 sps:$4 sm:$0xff]  }
 0x15c   : > { %v5381_v48 = vld [vmem:[%s6668_s23 + $0x8] ss:$24 sps:$4 sm:$0xff]   ;;  %v5384_v50 = vld [vmem:[%s6668_s23 + $0x2dc] ss:$24 sps:$4 sm:$0xff]   ;;  %v5399_v20 = vld [vmem:[%s6668_s23 + $0x278] ss:$24 sps:$4 sm:$0xff]  }
 0x15d   : > { %903 = vadd.xlane.f32.xlu0 %v902_v16  ;;  %1618 = vmatpush1.bf16.msra.mxu0 %v5356_v31  ;;  %v6801_v2 = vld [vmem:[#allocation2 + $0x28] sm:$0xff]  ;;  %v6803_v3 = vld [vmem:[#allocation2 + $0x38] sm:$0xff]  ;;  %p5144_p13 = scmp.ne.s32.totalorder %s7924_s24, 1 }
 0x15e   : > { %1671 = vmatpush1.bf16.msra.mxu1 %v5357_v32  ;;  %1619 = vmatprep.subr.bf16.mxu0 %v5358_v33  ;;  %v905_v7 = vadd.f32 %v6803_v3, %v6801_v2  ;;  %v5386_v11 = vld [vmem:[%s6668_s23 + $0x2d0] ss:$24 sps:$4 sm:$0xff]   ;;  %v5392_v15 = vld [vmem:[%s6668_s23 + $0x2a0] ss:$24 sps:$4 sm:$0xff]   ;;  %v5394_v17 = vld [vmem:[%s6668_s23 + $0x274] ss:$24 sps:$4 sm:$0xff]  }
 0x15f   : > { %1672 = vmatprep.subr.bf16.mxu1 %v5360_v34  ;;  %v5393_v16 = vld [vmem:[%s6668_s23 + $0x2a8] ss:$24 sps:$4 sm:$0xff]   ;;  %v5396_v18 = vld [vmem:[%s6668_s23 + $0x27c] ss:$24 sps:$4 sm:$0xff]   ;;  %v5402_v22 = vld [vmem:[%s6668_s23 + $0x24c] ss:$24 sps:$4 sm:$0xff]  }
 0x160   : > { %v5398_v19 = vld [vmem:[%s6668_s23 + $0x270] ss:$24 sps:$4 sm:$0xff]   ;;  %v5400_v21 = vld [vmem:[%s6668_s23 + $0x244] ss:$24 sps:$4 sm:$0xff]   ;;  %v5404_v23 = vld [vmem:[%s6668_s23 + $0x240] ss:$24 sps:$4 sm:$0xff]  }
 0x161   : > { %1620 = vmatpush1.bf16.msra.mxu0 %v5362_v35  ;;  %v5405_v24 = vld [vmem:[%s6668_s23 + $0x248] ss:$24 sps:$4 sm:$0xff]   ;;  %v5406_v25 = vld [vmem:[%s6668_s23 + $0x214] ss:$24 sps:$4 sm:$0xff]   ;;  %v5411_v28 = vld [vmem:[%s6668_s23 + $0x218] ss:$24 sps:$4 sm:$0xff]  }
 0x162   : > { %1673 = vmatpush1.bf16.msra.mxu1 %v5363_v36  ;;  %1621 = vmatprep.subr.bf16.mxu0 %v5364_v37  ;;  %v5408_v26 = vld [vmem:[%s6668_s23 + $0x21c] ss:$24 sps:$4 sm:$0xff]   ;;  %v5410_v27 = vld [vmem:[%s6668_s23 + $0x210] ss:$24 sps:$4 sm:$0xff]   ;;  %v5414_v30 = vld [vmem:[%s6668_s23 + $0x1ec] ss:$24 sps:$4 sm:$0xff]  }
 0x163   : > { %1674 = vmatprep.subr.bf16.mxu1 %v5366_v38  ;;  %v5412_v29 = vld [vmem:[%s6668_s23 + $0x1e4] ss:$24 sps:$4 sm:$0xff]   ;;  %v5416_v31 = vld [vmem:[%s6668_s23 + $0x1e0] ss:$24 sps:$4 sm:$0xff]   ;;  %v5418_v33 = vld [vmem:[%s6668_s23 + $0x1b4] ss:$24 sps:$4 sm:$0xff]  }
 0x164   : > { %v5417_v32 = vld [vmem:[%s6668_s23 + $0x1e8] ss:$24 sps:$4 sm:$0xff]   ;;  %v5420_v34 = vld [vmem:[%s6668_s23 + $0x1bc] ss:$24 sps:$4 sm:$0xff]   ;;  %v5423_v36 = vld [vmem:[%s6668_s23 + $0x1b8] ss:$24 sps:$4 sm:$0xff]  }
 0x165   : > { %1622 = vmatpush1.bf16.msra.mxu0 %v5368_v39  ;;  %v5422_v35 = vld [vmem:[%s6668_s23 + $0x1b0] ss:$24 sps:$4 sm:$0xff]   ;;  %v5424_v37 = vld [vmem:[%s6668_s23 + $0x184] ss:$24 sps:$4 sm:$0xff]   ;;  %v5428_v39 = vld [vmem:[%s6668_s23 + $0x180] ss:$24 sps:$4 sm:$0xff]  }
 0x166   : > { %1675 = vmatpush1.bf16.msra.mxu1 %v5369_v40  ;;  %1623 = vmatprep.subr.bf16.mxu0 %v5370_v41  ;;  %v5426_v38 = vld [vmem:[%s6668_s23 + $0x18c] ss:$24 sps:$4 sm:$0xff]   ;;  %v5429_v40 = vld [vmem:[%s6668_s23 + $0x188] ss:$24 sps:$4 sm:$0xff]  }
 0x167   : > { %1676 = vmatprep.subr.bf16.mxu1 %v5372_v42  ;;  %v5432_v41 = vld [vmem:[%s6668_s23 + $0x164] ss:$24 sps:$4 sm:$0xff]  }
 0x169   : > { %1624 = vmatpush1.bf16.msra.mxu0 %v5374_v43 }
 0x16a   : > { %1677 = vmatpush1.bf16.msra.mxu1 %v5375_v44  ;;  %1625 = vmatprep.subr.bf16.mxu0 %v5376_v45 }
 0x16b   : > { %1678 = vmatprep.subr.bf16.mxu1 %v5378_v46 }
 0x16d   : > { %1626 = vmatpush1.bf16.msra.mxu0 %v5380_v47 }
 0x16e   : > { %1679 = vmatpush1.bf16.msra.mxu1 %v5381_v48  ;;  %1627 = vmatprep.subr.bf16.mxu0 %v5382_v49  ;;  %v962_v48 = vlaneseq }
 0x16f   : > { %1680 = vmatprep.subr.bf16.mxu1 %v5384_v50 }
 0x171   : > { %1628 = vmatpush2.bf16.msra.mxu0 %v5386_v11 }
 0x1de   : > { %v898_v51 = vpop.xlane.xlu0 %897 }
 0x1df   : > { %v909_v52 = vmul.f32 0.00390625, %v898_v51 }
 0x1e1   : > { %v6782_v53 = vsub.f32 %v6729_v8, %v909_v52  ;;  %v6785_v54 = vsub.f32 %v6731_v9, %v909_v52 }
 0x1e2   : > { %v901_v55 = vpop.xlane.xlu0 %900 }
 0x1e3   : > { %v910_v56 = vmul.f32 0.00390625, %v901_v55  ;;  %v921_v57 = vmul.f32 %v6782_v53, %v6782_v53  ;;  %v922_v58 = vmul.f32 %v6785_v54, %v6785_v54  ;;  %v6854_v55 = vshrl.u32 %v962_v48, 7  ;;  %v5477_v48 = vld [vmem:[%s6668_s23 + $0x194] ss:$24 sps:$4 sm:$0xff]  }
 0x1e5   : > { %v6792_v59 = vsub.f32 %v6733_v10, %v910_v56  ;;  %v6795_v60 = vsub.f32 %v6737_v12, %v910_v56  ;;  %v929_v61 = vadd.f32 %v922_v58, %v921_v57  ;;  %v5387_v12 = vld [vmem:[%s6668_s23 + $0x2d8] ss:$24 sps:$4 sm:$0xff]  }
 0x1e6   : > { %v904_v62 = vpop.xlane.xlu0 %903  ;;  %1681 = vmatpush2.bf16.msra.mxu1 %v5387_v12 }
 0x1e7   : > { %930 = vadd.xlane.f32.xlu1 %v929_v61  ;;  %v923_v63 = vmul.f32 %v6792_v59, %v6792_v59  ;;  %v924_v0 = vmul.f32 %v6795_v60, %v6795_v60  ;;  %v911_v1 = vmul.f32 0.00390625, %v904_v62  ;;  %v6861_v61 = vsub.s32 1, %v6854_v55 }
 0x1e8   : > { %v6864_v62 = vsub.s32 0, %v6854_v55 }
 0x1e9   : > { %v932_v4 = vadd.f32 %v924_v0, %v923_v63  ;;  %v6806_v5 = vsub.f32 %v6739_v13, %v911_v1  ;;  %v6809_v6 = vsub.f32 %v6741_v14, %v911_v1  ;;  %v5388_v13 = vld [vmem:[%s6668_s23 + $0x2a4] ss:$24 sps:$4 sm:$0xff]   ;;  %v894_v63 = vld [vmem:[%s856_s5] sm:$0x3] }
 0x1ea   : > { %v5390_v14 = vld [vmem:[%s6668_s23 + $0x2ac] ss:$24 sps:$4 sm:$0xff]   ;;  %1629 = vmatprep.subr.bf16.mxu0 %v5388_v13  ;;  %v895_v1 = vld [vmem:[%s860_s30] sm:$0x3] }
 0x1eb   : > { %933 = vadd.xlane.f32.xlu1 %v932_v4  ;;  %v925_v8 = vmul.f32 %v6806_v5, %v6806_v5  ;;  %v926_v9 = vmul.f32 %v6809_v6, %v6809_v6  ;;  %1682 = vmatprep.subr.bf16.mxu1 %v5390_v14 }
 0x1ec   : > { %1630 = vmatpush2.bf16.msra.mxu0 %v5392_v15  ;;  %1683 = vmatpush2.bf16.msra.mxu1 %v5393_v16 }
 0x1ed   : > { %v935_v10 = vadd.f32 %v926_v9, %v925_v8  ;;  %1631 = vmatprep.subr.bf16.mxu0 %v5394_v17  ;;  %1684 = vmatprep.subr.bf16.mxu1 %v5396_v18  ;;  %v6885_v9 = vrot.slane %v895_v1, %v6861_v61 }
 0x1ef   : > { %906 = vadd.xlane.f32.xlu1 %v905_v7  ;;  %936 = vadd.xlane.f32.xlu0 %v935_v10  ;;  %v6882_v7 = vrot.slane %v894_v63, %v6864_v62  ;;  %v6888_v10 = vrot.slane %v895_v1, %v6864_v62 }
 0x1f0   : > { %1632 = vmatpush2.bf16.msra.mxu0 %v5398_v19  ;;  %1685 = vmatpush2.bf16.msra.mxu1 %v5399_v20  ;;  %v5430_v19 = vld [vmem:[%s6668_s23 + $0x160] ss:$24 sps:$4 sm:$0xff]   ;;  %v5435_v20 = vld [vmem:[%s6668_s23 + $0x134] ss:$24 sps:$4 sm:$0xff]  }
 0x1f1   : > { %1633 = vmatprep.subr.bf16.mxu0 %v5400_v21  ;;  %1686 = vmatprep.subr.bf16.mxu1 %v5402_v22  ;;  %v5433_v21 = vld [vmem:[%s6668_s23 + $0x130] ss:$24 sps:$4 sm:$0xff]   ;;  %v5438_v22 = vld [vmem:[%s6668_s23 + $0x104] ss:$24 sps:$4 sm:$0xff]  }
 0x1f4   : > { %1634 = vmatpush2.bf16.msra.mxu0 %v5404_v23  ;;  %1687 = vmatpush2.bf16.msra.mxu1 %v5405_v24  ;;  %v5436_v23 = vld [vmem:[%s6668_s23 + $0x100] ss:$24 sps:$4 sm:$0xff]   ;;  %v5441_v24 = vld [vmem:[%s6668_s23 + $0xd4] ss:$24 sps:$4 sm:$0xff]  }
 0x1f5   : > { %1635 = vmatprep.subr.bf16.mxu0 %v5406_v25  ;;  %1688 = vmatprep.subr.bf16.mxu1 %v5408_v26  ;;  %v5439_v25 = vld [vmem:[%s6668_s23 + $0xd0] ss:$24 sps:$4 sm:$0xff]   ;;  %v5444_v26 = vld [vmem:[%s6668_s23 + $0xa4] ss:$24 sps:$4 sm:$0xff]  }
 0x1f8   : > { %1636 = vmatpush2.bf16.msra.mxu0 %v5410_v27  ;;  %1689 = vmatpush2.bf16.msra.mxu1 %v5411_v28  ;;  %v5442_v27 = vld [vmem:[%s6668_s23 + $0xa0] ss:$24 sps:$4 sm:$0xff]   ;;  %v5447_v28 = vld [vmem:[%s6668_s23 + $0x74] ss:$24 sps:$4 sm:$0xff]  }
 0x1f9   : > { %1637 = vmatprep.subr.bf16.mxu0 %v5412_v29  ;;  %1690 = vmatprep.subr.bf16.mxu1 %v5414_v30  ;;  %v5445_v29 = vld [vmem:[%s6668_s23 + $0x70] ss:$24 sps:$4 sm:$0xff]   ;;  %v5450_v30 = vld [vmem:[%s6668_s23 + $0x44] ss:$24 sps:$4 sm:$0xff]  }
 0x1fc   : > { %1638 = vmatpush2.bf16.msra.mxu0 %v5416_v31  ;;  %1691 = vmatpush2.bf16.msra.mxu1 %v5417_v32  ;;  %v5448_v31 = vld [vmem:[%s6668_s23 + $0x40] ss:$24 sps:$4 sm:$0xff]   ;;  %v5453_v32 = vld [vmem:[%s6668_s23 + $0x14] ss:$24 sps:$4 sm:$0xff]  }
 0x1fd   : > { %1639 = vmatprep.subr.bf16.mxu0 %v5418_v33  ;;  %1692 = vmatprep.subr.bf16.mxu1 %v5420_v34  ;;  %v5451_v33 = vld [vmem:[%s6668_s23 + $0x10] ss:$24 sps:$4 sm:$0xff]   ;;  %v5456_v34 = vld [vmem:[%s6668_s23 + $0x2e4] ss:$24 sps:$4 sm:$0xff]  }
 0x200   : > { %1640 = vmatpush2.bf16.msra.mxu0 %v5422_v35  ;;  %1693 = vmatpush2.bf16.msra.mxu1 %v5423_v36  ;;  %v5454_v35 = vld [vmem:[%s6668_s23 + $0x2e0] ss:$24 sps:$4 sm:$0xff]   ;;  %v5459_v36 = vld [vmem:[%s6668_s23 + $0x2b4] ss:$24 sps:$4 sm:$0xff]  }
 0x201   : > { %1641 = vmatprep.subr.bf16.mxu0 %v5424_v37  ;;  %1694 = vmatprep.subr.bf16.mxu1 %v5426_v38  ;;  %v5457_v37 = vld [vmem:[%s6668_s23 + $0x2b0] ss:$24 sps:$4 sm:$0xff]   ;;  %v5462_v38 = vld [vmem:[%s6668_s23 + $0x284] ss:$24 sps:$4 sm:$0xff]  }
 0x204   : > { %1642 = vmatpush2.bf16.msra.mxu0 %v5428_v39  ;;  %1695 = vmatpush2.bf16.msra.mxu1 %v5429_v40  ;;  %v5460_v39 = vld [vmem:[%s6668_s23 + $0x280] ss:$24 sps:$4 sm:$0xff]   ;;  %v5465_v40 = vld [vmem:[%s6668_s23 + $0x254] ss:$24 sps:$4 sm:$0xff]  }
 0x205   : > { %1717 = vmatprep.subr.bf16.mxu0 %v5432_v41  ;;  %v5463_v41 = vld [vmem:[%s6668_s23 + $0x250] ss:$24 sps:$4 sm:$0xff]  }
 0x270   : > { %v931_v42 = vpop.xlane.xlu1 %930 }
 0x271   : > { %v941_v43 = vmul.f32 0.00390625, %v931_v42  ;;  %v5468_v42 = vld [vmem:[%s6668_s23 + $0x224] ss:$24 sps:$4 sm:$0xff]  }
 0x273   : > { %v945_v44 = vadd.f32 1e-06, %v941_v43  ;;  %v5466_v43 = vld [vmem:[%s6668_s23 + $0x220] ss:$24 sps:$4 sm:$0xff]  }
 0x274   : > { %v934_v45 = vpop.xlane.xlu1 %933 }
 0x275   : > { %5718 = vrsqrt.f32 %v945_v44  ;;  %v942_v46 = vmul.f32 0.00390625, %v934_v45  ;;  %v5471_v44 = vld [vmem:[%s6668_s23 + $0x1f4] ss:$24 sps:$4 sm:$0xff]   ;;  %v5469_v45 = vld [vmem:[%s6668_s23 + $0x1f0] ss:$24 sps:$4 sm:$0xff]  }
 0x277   : > { %v946_v47 = vadd.f32 1e-06, %v942_v46  ;;  %v5474_v46 = vld [vmem:[%s6668_s23 + $0x1c4] ss:$24 sps:$4 sm:$0xff]  }
 0x278   : > { %v907_v49 = vpop.xlane.xlu1 %906 }
 0x279   : > { %5720 = vrsqrt.f32 %v946_v47  ;;  %v912_v50 = vmul.f32 0.00390625, %v907_v49  ;;  %v5472_v47 = vld [vmem:[%s6668_s23 + $0x1c0] ss:$24 sps:$4 sm:$0xff]   ;;  %v5475_v49 = vld [vmem:[%s6668_s23 + $0x190] ss:$24 sps:$4 sm:$0xff]  }
 0x27b   : > { %v6849_v51 = vsub.f32 %v6801_v2, %v912_v50  ;;  %v6852_v52 = vsub.f32 %v6803_v3, %v912_v50  ;;  %v6878_v3 = vrot.slane %v894_v63, %v6861_v61  ;;  %v6224_v50 = vmov 0.0  }
 0x27c   : > { %5172 = vmatprep.subr.bf16.mxu1 %v6224_v50 }
 0x27d   : > { %v927_v56 = vmul.f32 %v6849_v51, %v6849_v51  ;;  %v928_v57 = vmul.f32 %v6852_v52, %v6852_v52 }
 0x27f   : > { %v938_v58 = vadd.f32 %v928_v57, %v927_v56  ;;  %v937_v56 = vpop.xlane.xlu0 %936 }
 0x280   : > { %v943_v57 = vmul.f32 0.00390625, %v937_v56 }
 0x281   : > { %939 = vadd.xlane.f32.xlu1 %v938_v58 }
 0x282   : > { %v5719_v0 = vpop.eup %5718  ;;  %v947_v58 = vadd.f32 1e-06, %v943_v57 }
 0x283   : > { %v954_v2 = vmul.f32 %v5719_v0, %v6785_v54  ;;  %v953_v4 = vmul.f32 %v5719_v0, %v6782_v53 }
 0x284   : > { %5722 = vrsqrt.f32 %v947_v58 }
 0x285   : > { %v973_v54 = vmul.f32 %v6878_v3, %v954_v2  ;;  %v972_v53 = vmul.f32 %v6882_v7, %v953_v4 }
 0x286   : > { %v5721_v8 = vpop.eup %5720 }
 0x287   : > { %v956_v11 = vmul.f32 %v5721_v8, %v6795_v60  ;;  %v955_v12 = vmul.f32 %v5721_v8, %v6792_v59  ;;  %v992_v15 = vadd.f32 %v6885_v9, %v973_v54  ;;  %v991_v17 = vadd.f32 %v6888_v10, %v972_v53 }
 0x289   : > { %v975_v13 = vmul.f32 %v6878_v3, %v956_v11  ;;  %v974_v14 = vmul.f32 %v6882_v7, %v955_v12 }
 0x28b   : > { %v994_v16 = vadd.f32 %v6885_v9, %v975_v13  ;;  %v993_v60 = vadd.f32 %v6888_v10, %v974_v14 }
 0x28d   : > { %v6900_v18 = vpack.c.bf16 %v994_v16, %v992_v15  ;;  %v6902_v59 = vpack.c.bf16 %v993_v60, %v991_v17 }
 0x28f   : > { %1643 = vmatprep.mubr.bf16.mxu0 %v6900_v18  ;;  %1696 = vmatprep.mubr.bf16.mxu1 %v6900_v18 }
 0x290   : > { %1644 = vmatmul.mubr.bf16.vlgmr.msra.gmra.mxu0 %v6902_v59  ;;  %1697 = vmatmul.mubr.bf16.vlgmr.msra.gmra.mxu1 %v6902_v59 }
 0x291   : > { %1718 = vmatpush1.bf16.msra.mxu0 %v5430_v19  ;;  %v5723_v2 = vpop.eup %5722 }
 0x292   : > { %1719 = vmatprep.subr.bf16.mxu0 %v5435_v20  ;;  %v958_v4 = vmul.f32 %v5723_v2, %v6809_v6  ;;  %v957_v8 = vmul.f32 %v5723_v2, %v6806_v5 }
 0x294   : > { %v977_v12 = vmul.f32 %v6878_v3, %v958_v4  ;;  %v976_v13 = vmul.f32 %v6882_v7, %v957_v8 }
 0x295   : > { %1720 = vmatpush1.bf16.msra.mxu0 %v5433_v21 }
 0x296   : > { %1721 = vmatprep.subr.bf16.mxu0 %v5438_v22  ;;  %v996_v16 = vadd.f32 %v6885_v9, %v977_v12  ;;  %v995_v5 = vadd.f32 %v6888_v10, %v976_v13 }
 0x299   : > { %1722 = vmatpush1.bf16.msra.mxu0 %v5436_v23 }
 0x29a   : > { %1723 = vmatprep.subr.bf16.mxu0 %v5441_v24 }
 0x29d   : > { %1724 = vmatpush1.bf16.msra.mxu0 %v5439_v25 }
 0x29e   : > { %1725 = vmatprep.subr.bf16.mxu0 %v5444_v26 }
 0x2a1   : > { %1726 = vmatpush1.bf16.msra.mxu0 %v5442_v27 }
 0x2a2   : > { %1727 = vmatprep.subr.bf16.mxu0 %v5447_v28 }
 0x2a5   : > { %1728 = vmatpush1.bf16.msra.mxu0 %v5445_v29 }
 0x2a6   : > { %1729 = vmatprep.subr.bf16.mxu0 %v5450_v30  ;;  %v1115_v30 = vsub.s32 3, %v6854_v55 }
 0x2a9   : > { %1730 = vmatpush1.bf16.msra.mxu0 %v5448_v31 }
 0x2aa   : > { %1731 = vmatprep.subr.bf16.mxu0 %v5453_v32 }
 0x2ad   : > { %1732 = vmatpush1.bf16.msra.mxu0 %v5451_v33 }
 0x2ae   : > { %1733 = vmatprep.subr.bf16.mxu0 %v5456_v34 }
 0x2b1   : > { %1734 = vmatpush2.bf16.msra.mxu0 %v5454_v35 }
 0x2b2   : > { %1735 = vmatprep.subr.bf16.mxu0 %v5459_v36 }
 0x2b5   : > { %1736 = vmatpush2.bf16.msra.mxu0 %v5457_v37 }
 0x2b6   : > { %1737 = vmatprep.subr.bf16.mxu0 %v5462_v38 }
 0x2b9   : > { %1738 = vmatpush2.bf16.msra.mxu0 %v5460_v39  ;;  %v1119_v39 = vsub.s32 4, %v6854_v55 }
 0x2ba   : > { %1739 = vmatprep.subr.bf16.mxu0 %v5465_v40 }
 0x2bd   : > { %1740 = vmatpush2.bf16.msra.mxu0 %v5463_v41 }
 0x2be   : > { %1741 = vmatprep.subr.bf16.mxu0 %v5468_v42 }
 0x2c1   : > { %1742 = vmatpush2.bf16.msra.mxu0 %v5466_v43 }
 0x2c2   : > { %1743 = vmatprep.subr.bf16.mxu0 %v5471_v44 }
 0x2c5   : > { %1744 = vmatpush2.bf16.msra.mxu0 %v5469_v45 }
 0x2c6   : > { %1745 = vmatprep.subr.bf16.mxu0 %v5474_v46 }
 0x2c9   : > { %1746 = vmatpush2.bf16.msra.mxu0 %v5472_v47 }
 0x2ca   : > { %1747 = vmatprep.subr.bf16.mxu0 %v5477_v48 }
 0x2cd   : > { %1748 = vmatpush2.bf16.msra.mxu0 %v5475_v49 }
 0x30a   : > { %v940_v63 = vpop.xlane.xlu1 %939 }
 0x30b   : > { %v944_v0 = vmul.f32 0.00390625, %v940_v63 }
 0x30d   : > { %v948_v1 = vadd.f32 1e-06, %v944_v0 }
 0x30f   : > { %5724 = vrsqrt.f32 %v948_v1 }
 0x31c   : > { %v5725_v11 = vpop.eup %5724 }
 0x31d   : > { %v960_v54 = vmul.f32 %v5725_v11, %v6852_v52  ;;  %v959_v53 = vmul.f32 %v5725_v11, %v6849_v51  ;;  %v1111_v51 = vsub.s32 2, %v6854_v55 }
 0x31f   : > { %v979_v14 = vmul.f32 %v6878_v3, %v960_v54  ;;  %v978_v15 = vmul.f32 %v6882_v7, %v959_v53  ;;  %v6958_v3 = vld [vmem:[%s6676_s8] sm:$0x3f] }
 0x320   : > { %v1104_v24 = vrot.slane %v6958_v3, %v6864_v62  ;;  %v6979_v35 = vrot.slane %v6958_v3, %v6861_v61  ;;  %v6984_v36 = vrot.slane %v6958_v3, %v1115_v30  ;;  %v1120_v1 = vrot.slane %v6958_v3, %v1119_v39  ;;  %v7049_v39 = vld [vmem:[%s6678_s10 + $0x54] ss:$8 sps:$4 sm:$0xff]  }
 0x321   : > { %v998_v17 = vadd.f32 %v6885_v9, %v979_v14  ;;  %v997_v6 = vadd.f32 %v6888_v10, %v978_v15  ;;  %v1112_v10 = vrot.slane %v6958_v3, %v1111_v51 }
 0x323   : > { %v1002_v52 = vpack.c.bf16 %v998_v17, %v996_v16  ;;  %v1001_v60 = vpack.c.bf16 %v997_v6, %v995_v5 }
 0x325   : > { %1653 = vmatprep.mubr.bf16.mxu0 %v1002_v52  ;;  %1706 = vmatprep.mubr.bf16.mxu1 %v1002_v52 }
 0x326   : > { %1654 = vmatmul.mubr.bf16.gmra.mxu0 %v1001_v60  ;;  %1707 = vmatmul.mubr.bf16.gmra.mxu1 %v1001_v60 }
 0x327   : > { %1749 = vmatprep.mubr.bf16.mxu0 %v6900_v18  ;;  %5174 = vmatprep.mubr.msk.bf16.mxu1 %vm6225_vm0, %v6224_v50 }
 0x32e   : > { %1750 = vmatmul.mubr.bf16.vlgmr.msra.gmra.mxu0 %v6902_v59 }
 0x32f   : > { %1759 = vmatprep.mubr.bf16.mxu0 %v1002_v52 }
 0x336   : > { %1760 = vmatmul.mubr.bf16.gmra.mxu0 %v1001_v60 }
 0x350   : > { %v1645_v7 = vpop.f32.mrf.mxu0  ;;  %v1698_v9 = vpop.f32.mrf.mxu1 }
 0x351   : > { %v1699_v21 = vadd.f32 %v1698_v9, %v1112_v10  ;;  %v1646_v26 = vadd.f32 %v1645_v7, %v1104_v24 }
 0x352   : > { %v6963_v19 = vpop.f32.mrf.mxu1  ;;  %v6965_v18 = vpop.f32.mrf.mxu0 }
 0x354   : > { %v1702_v20 = vpop.f32.mrf.mxu1  ;;  %v1649_v59 = vpop.f32.mrf.mxu0 }
 0x355   : > { %v1703_v22 = vadd.f32 %v1702_v20, %v1112_v10  ;;  %v1650_v25 = vadd.f32 %v1649_v59, %v1104_v24 }
 0x356   : > { %v6972_v28 = vpop.f32.mrf.mxu0  ;;  %v6974_v29 = vpop.f32.mrf.mxu1 }
 0x357   : > { %v1771_v23 = vpack.c.bf16 %v1703_v22, %v1699_v21  ;;  %v1770_v27 = vpack.c.bf16 %v1650_v25, %v1646_v26 }
 0x359   : > { %5173 = vmatpush3.bf16.xpose.msra.mxu1 %v1771_v23 }
 0x35a   : > { %5178 = vmatprep.subr.bf16.mxu1 %v6224_v50 }
 0x360   : > { %5175 = vmatmul.mubr.bf16.vlgmr.msra.gmra.mxu1 %v1770_v27 }
 0x361   : > { %5180 = vmatprep.mubr.msk.bf16.mxu1 %vm6225_vm0, %v6224_v50 }
 0x3e6   : > { %v1655_v31 = vpop.f32.mrf.mxu0  ;;  %v1708_v32 = vpop.f32.mrf.mxu1 }
 0x3e7   : > { %v6987_v40 = vadd.f32 %v1655_v31, %v1104_v24  ;;  %v6989_v41 = vadd.f32 %v1708_v32, %v1112_v10 }
 0x3e8   : > { %v1657_v33 = vpop.f32.mrf.mxu0  ;;  %v1710_v34 = vpop.f32.mrf.mxu1 }
 0x3e9   : > { %v6996_v44 = vadd.f32 %v1657_v33, %v6979_v35  ;;  %v6999_v45 = vadd.f32 %v1710_v34, %v6984_v36  ;;  %v7034_v33 = vld [vmem:[%s6678_s10 + $0x70] ss:$8 sps:$4 sm:$0xff]   ;;  %v7037_v34 = vld [vmem:[%s6678_s10 + $0x74] ss:$8 sps:$4 sm:$0xff]  }
 0x3ea   : > { %v1659_v37 = vpop.f32.mrf.mxu0  ;;  %v1712_v38 = vpop.f32.mrf.mxu1  ;;  %2234 = vmatprep.subr.bf16.mxu0 %v7037_v34 }
 0x3eb   : > { %v6991_v42 = vadd.f32 %v1659_v37, %v1104_v24  ;;  %v6993_v43 = vadd.f32 %v1712_v38, %v1112_v10  ;;  %v7040_v37 = vld [vmem:[%s6678_s10 + $0x64] ss:$8 sps:$4 sm:$0xff]   ;;  %2235 = vmatpush1.bf16.msra.mxu0 %v7034_v33  ;;  %v7045_v38 = vld [vmem:[%s6678_s10 + $0x60] ss:$8 sps:$4 sm:$0xff]  }
 0x3ec   : > { %v1661_v46 = vpop.f32.mrf.mxu0  ;;  %v1714_v47 = vpop.f32.mrf.mxu1  ;;  %2236 = vmatprep.subr.bf16.mxu0 %v7040_v37 }
 0x3ed   : > { %v2301_v48 = vpack.c.bf16 %v6991_v42, %v6987_v40  ;;  %v2302_v49 = vpack.c.bf16 %v6993_v43, %v6989_v41  ;;  %v7006_v56 = vadd.f32 %v1661_v46, %v6979_v35  ;;  %v7009_v57 = vadd.f32 %v1714_v47, %v6984_v36  ;;  %v7053_v46 = vld [vmem:[%s6678_s10 + $0x50] ss:$8 sps:$4 sm:$0xff]   ;;  %v7057_v47 = vld [vmem:[%s6678_s10 + $0x44] ss:$8 sps:$4 sm:$0xff]  }
 0x3ee   : > { %v1751_v58 = vpop.f32.mrf.mxu0 }
 0x3ef   : > { %v2431_v63 = vpack.c.bf16 %v7006_v56, %v6996_v44  ;;  %v2432_v0 = vpack.c.bf16 %v7009_v57, %v6999_v45  ;;  %v1752_v8 = vadd.f32 %v1751_v58, %v1120_v1  ;;  %2237 = vmatpush1.bf16.msra.mxu0 %v7045_v38  ;;  %v7061_v58 = vld [vmem:[%s6678_s10 + $0x40] ss:$8 sps:$4 sm:$0xff]  }
 0x3f0   : > { %v7016_v2 = vpop.f32.mrf.mxu0  ;;  %2238 = vmatprep.subr.bf16.mxu0 %v7049_v39 }
 0x3f2   : > { %v1755_v4 = vpop.f32.mrf.mxu0 }
 0x3f3   : > { %v1756_v11 = vadd.f32 %v1755_v4, %v1120_v1  ;;  %2239 = vmatpush1.bf16.msra.mxu0 %v7053_v46  ;;  %v7069_v4 = vld [vmem:[%s6678_s10 + $0x30] ss:$8 sps:$4 sm:$0xff]  }
 0x3f4   : > { %v7018_v54 = vpop.f32.mrf.mxu0  ;;  %2240 = vmatprep.subr.bf16.mxu0 %v7057_v47 }
 0x3f5   : > { %v1772_v12 = vpack.c.bf16 %v1756_v11, %v1752_v8  ;;  %v7073_v8 = vld [vmem:[%s6678_s10 + $0x24] ss:$8 sps:$4 sm:$0xff]   ;;  %v7077_v11 = vld [vmem:[%s6678_s10 + $0x20] ss:$8 sps:$4 sm:$0xff]  }
 0x3f6   : > { %v1761_v53 = vpop.f32.mrf.mxu0 }
 0x3f7   : > { %v7020_v13 = vadd.f32 %v1761_v53, %v1120_v1  ;;  %5179 = vmatpush3.bf16.msra.mxu1 %v1772_v12  ;;  %2241 = vmatpush1.bf16.msra.mxu0 %v7061_v58  ;;  %v7081_v12 = vld [vmem:[%s6678_s10 + $0x14] ss:$8 sps:$4 sm:$0xff]   ;;  %v7085_v53 = vld [vmem:[%s6678_s10 + $0x10] ss:$8 sps:$4 sm:$0xff]  }
 0x3f8   : > { %v7022_v14 = vpop.f32.mrf.mxu0  ;;  %5184 = vmatprep.subr.bf16.mxu1 %v6224_v50 }
 0x3fa   : > { %v1765_v15 = vpop.f32.mrf.mxu0 }
 0x3fb   : > { %v7025_v16 = vadd.f32 %v1765_v15, %v1120_v1  ;;  %v7065_v1 = vld [vmem:[%s6678_s10 + $0x34] ss:$8 sps:$4 sm:$0xff]  }
 0x3fc   : > { %2242 = vmatprep.subr.bf16.mxu0 %v7065_v1 }
 0x3fd   : > { %v2303_v17 = vpack.c.bf16 %v7025_v16, %v7020_v13  ;;  %2243 = vmatpush1.bf16.msra.mxu0 %v7069_v4 }
 0x3fe   : > { %2244 = vmatprep.subr.bf16.mxu0 %v7073_v8 }
 0x401   : > { %2245 = vmatpush1.bf16.msra.mxu0 %v7077_v11 }
 0x402   : > { %2246 = vmatprep.subr.bf16.mxu0 %v7081_v12 }
 0x405   : > { %2247 = vmatpush1.bf16.msra.mxu0 %v7085_v53 }
 0x420   : > { %v1807_v5 = vpop.f32.mrf.mxu1 }
 0x421   : > { %v1814_v6 = vmul.f32 0.088388346, %v1807_v5 }
 0x422   : > { %v5176_v52 = vpop.f32.mrf.mxu1 }
 0x423   : > { %v1817_v60 = vsel %vm1816_vm1, %v1814_v6, -inf }
 0x424   : > { %1818 = vmax.xlane.f32.xlu0 %v1817_v60  ;;  %v1810_v7 = vpop.f32.mrf.mxu1  ;;  %v1705_v60 = vadd.f32 %v6974_v29, %v6984_v36  ;;  %v1652_v29 = vadd.f32 %v6972_v28, %v6979_v35  ;;  %v1767_v28 = vpop.f32.mrf.mxu0 }
 0x425   : > { %v1815_v9 = vmul.f32 0.088388346, %v1810_v7 }
 0x426   : > { %v5177_v10 = vpop.f32.mrf.mxu1 }
 0x427   : > { %v1820_v20 = vsel %vm1816_vm1, %v1815_v9, -inf  ;;  %v1701_v10 = vadd.f32 %v6963_v19, %v6984_v36  ;;  %v1648_v36 = vadd.f32 %v6965_v18, %v6979_v35  ;;  %v6226_v18 = vmov 0  }
 0x428   : > { %1821 = vmax.xlane.f32.xlu1 %v1820_v20  ;;  %v1123_v20 = vsub.s32 5, %v6854_v55  ;;  %2266 = vmatprep.mubr.bf16.mxu0 %v6226_v18 }
 0x4ad   : > { %v1819_v21 = vpop.xlane.xlu0 %1818 }
 0x4ae   : > { %v1823_v22 = vsub.f32 %v1814_v6, %v1819_v21 }
 0x4b0   : > { %v1825_v59 = vmul.f32 1.442695, %v1823_v22  ;;  %v1902_v22 = vpack.c.bf16 %v1705_v60, %v1701_v10 }
 0x4b1   : > { %v1822_v23 = vpop.xlane.xlu1 %1821 }
 0x4b2   : > { %5726 = vpow2.f32 %v1825_v59  ;;  %v1824_v24 = vsub.f32 %v1815_v9, %v1822_v23  ;;  %v1124_v59 = vrot.slane %v6958_v3, %v1123_v20  ;;  %v7108_v3 = vld [vmem:[%s6678_s10 + $0x4] ss:$8 sps:$4 sm:$0xff]  }
 0x4b3   : > { %2248 = vmatprep.subr.bf16.mxu0 %v7108_v3 }
 0x4b4   : > { %v1827_v25 = vmul.f32 1.442695, %v1824_v24  ;;  %v1758_v19 = vadd.f32 %v7018_v54, %v1124_v59  ;;  %v1754_v23 = vadd.f32 %v7016_v2, %v1124_v59  ;;  %v1901_v24 = vpack.c.bf16 %v1652_v29, %v1648_v36 }
 0x4b5   : > { %v1768_v2 = vadd.f32 %v1767_v28, %v1124_v59  ;;  %v7126_v28 = vld [vmem:[%s6678_s10 + $0xf4] ss:$8 sps:$4 sm:$0xff]  }
 0x4b6   : > { %5728 = vpow2.f32 %v1827_v25  ;;  %v1903_v25 = vpack.c.bf16 %v1758_v19, %v1754_v23 }
 0x4bf   : > { %v5727_v26 = vpop.eup %5726 }
 0x4c0   : > { %v1829_v27 = vsel %vm1816_vm1, %v5727_v26, 0.0 }
 0x4c1   : > { %1830 = vadd.xlane.f32.xlu0 %v1829_v27  ;;  %v1764_v27 = vadd.f32 %v7022_v14, %v1124_v59 }
 0x4c3   : > { %v5729_v31 = vpop.eup %5728 }
 0x4c4   : > { %v1832_v32 = vsel %vm1816_vm1, %v5729_v31, 0.0 }
 0x4c5   : > { %1833 = vadd.xlane.f32.xlu1 %v1832_v32 }
 0x54a   : > { %v1831_v15 = vpop.xlane.xlu0 %1830 }
 0x54b   : > { %5730 = vrcp.f32 %v1831_v15  ;;  %v2433_v15 = vpack.c.bf16 %v1768_v2, %v1764_v27 }
 0x54e   : > { %v1834_v5 = vpop.xlane.xlu1 %1833 }
 0x54f   : > { %5732 = vrcp.f32 %v1834_v5 }
 0x558   : > { %v5731_v6 = vpop.eup %5730 }
 0x559   : > { %v1837_v7 = vmul.f32 %v5731_v6, %v5727_v26  ;;  %v7111_v26 = vld [vmem:[%s6678_s10] ss:$8 sps:$4 sm:$0xff]  }
 0x55a   : > { %2249 = vmatpush1.bf16.msra.mxu0 %v7111_v26 }
 0x55b   : > { %5214 = vmatprep.subr.bf16.mxu0 %v6224_v50 }
 0x55c   : > { %v5733_v52 = vpop.eup %5732 }
 0x55d   : > { %v1838_v9 = vmul.f32 %v5733_v52, %v5729_v31 }
 0x55f   : > { %v1839_v21 = vpack.c.bf16 %v1838_v9, %v1837_v7 }
 0x561   : > { %5181 = vmatmul.mubr.msk.bf16.vlgmr.msra.gmra.mxu1 %vm1816_vm1, %v1839_v21 }
 0x562   : > { %5185 = vmatpush3.bf16.xpose.msra.mxu1 %v1902_v22  ;;  %5186 = vmatprep.mubr.msk.bf16.mxu1 %vm6225_vm0, %v6224_v50 }
 0x563   : > { %5190 = vmatprep.subr.bf16.mxu1 %v6224_v50 }
 0x569   : > { %5187 = vmatmul.mubr.bf16.vlgmr.msra.gmra.mxu1 %v1901_v24 }
 0x56a   : > { %5191 = vmatpush3.bf16.msra.mxu1 %v1903_v25  ;;  %5192 = vmatprep.mubr.msk.bf16.mxu1 %vm6225_vm0, %v6224_v50 }
 0x56b   : > { %2111 = vmatprep.subr.bf16.mxu1 %v7126_v28 }
 0x621   : > { %v1877_v35 = vpop.f32.mrf.mxu1 }
 0x623   : > { %v5182_v54 = vpop.f32.mrf.mxu1 }
 0x625   : > { %v1880_v31 = vpop.f32.mrf.mxu1 }
 0x626   : > { %v1884_v32 = vpack.c.bf16 %v1880_v31, %v1877_v35 }
 0x627   : > { %v5183_v5 = vpop.f32.mrf.mxu1 }
 0x628   : > { %2267 = vmatmul.mubr.bf16.vlgmr.msra.gmra.mxu0 %v1884_v32 }
 0x629   : > { %5215 = vmatpush3.bf16.msra.mxu0 %v2433_v15  ;;  %v1938_v6 = vpop.f32.mrf.mxu1  ;;  %5216 = vmatprep.mubr.msk.bf16.mxu0 %vm6225_vm0, %v6224_v50  ;;  %v7130_v15 = vld [vmem:[%s6678_s10 + $0xf0] ss:$8 sps:$4 sm:$0xff]  }
 0x62a   : > { %v1945_v52 = vmul.f32 0.088388346, %v1938_v6  ;;  %2764 = vmatprep.subr.bf16.mxu0 %v7037_v34  ;;  %v7133_v6 = vld [vmem:[%s6678_s10 + $0xe4] ss:$8 sps:$4 sm:$0xff]  }
 0x62b   : > { %v5188_v60 = vpop.f32.mrf.mxu1 }
 0x62c   : > { %v1947_v7 = vsel %vm1816_vm1, %v1945_v52, -inf  ;;  %v7143_v60 = vld [vmem:[%s6678_s10 + $0xd4] ss:$8 sps:$4 sm:$0xff]  }
 0x62d   : > { %1948 = vmax.xlane.f32.xlu0 %v1947_v7  ;;  %v1941_v9 = vpop.f32.mrf.mxu1  ;;  %v7147_v7 = vld [vmem:[%s6678_s10 + $0xd0] ss:$8 sps:$4 sm:$0xff]  }
 0x62e   : > { %v1946_v10 = vmul.f32 0.088388346, %v1941_v9  ;;  %v7151_v9 = vld [vmem:[%s6678_s10 + $0xc4] ss:$8 sps:$4 sm:$0xff]  }
 0x62f   : > { %v5189_v14 = vpop.f32.mrf.mxu1 }
 0x630   : > { %v1950_v20 = vsel %vm1816_vm1, %v1946_v10, -inf  ;;  %v7159_v14 = vld [vmem:[%s6678_s10 + $0xb4] ss:$8 sps:$4 sm:$0xff]  }
 0x631   : > { %1951 = vmax.xlane.f32.xlu1 %v1950_v20  ;;  %v7163_v20 = vld [vmem:[%s6678_s10 + $0xb0] ss:$8 sps:$4 sm:$0xff]  }
 0x6b6   : > { %v1949_v21 = vpop.xlane.xlu0 %1948 }
 0x6b7   : > { %v1953_v22 = vsub.f32 %v1945_v52, %v1949_v21  ;;  %v7138_v52 = vld [vmem:[%s6678_s10 + $0xe0] ss:$8 sps:$4 sm:$0xff]   ;;  %v7167_v21 = vld [vmem:[%s6678_s10 + $0xa4] ss:$8 sps:$4 sm:$0xff]  }
 0x6b9   : > { %v1955_v59 = vmul.f32 1.442695, %v1953_v22  ;;  %v7171_v22 = vld [vmem:[%s6678_s10 + $0xa0] ss:$8 sps:$4 sm:$0xff]  }
 0x6ba   : > { %v1952_v29 = vpop.xlane.xlu1 %1951 }
 0x6bb   : > { %5734 = vpow2.f32 %v1955_v59  ;;  %v1954_v19 = vsub.f32 %v1946_v10, %v1952_v29  ;;  %v7155_v10 = vld [vmem:[%s6678_s10 + $0xc0] ss:$8 sps:$4 sm:$0xff]   ;;  %v7175_v59 = vld [vmem:[%s6678_s10 + $0x94] ss:$8 sps:$4 sm:$0xff]   ;;  %v7179_v29 = vld [vmem:[%s6678_s10 + $0x90] ss:$8 sps:$4 sm:$0xff]  }
 0x6bd   : > { %v1957_v36 = vmul.f32 1.442695, %v1954_v19  ;;  %v7184_v19 = vld [vmem:[%s6678_s10 + $0x84] ss:$8 sps:$4 sm:$0xff]  }
 0x6bf   : > { %5736 = vpow2.f32 %v1957_v36  ;;  %v7187_v36 = vld [vmem:[%s6678_s10 + $0x80] ss:$8 sps:$4 sm:$0xff]  }
 0x6c8   : > { %v5735_v34 = vpop.eup %5734 }
 0x6c9   : > { %v1959_v23 = vsel %vm1816_vm1, %v5735_v34, 0.0 }
 0x6ca   : > { %1960 = vadd.xlane.f32.xlu0 %v1959_v23 }
 0x6cc   : > { %v5737_v24 = vpop.eup %5736 }
 0x6cd   : > { %v1962_v25 = vsel %vm1816_vm1, %v5737_v24, 0.0 }
 0x6ce   : > { %1963 = vadd.xlane.f32.xlu1 %v1962_v25 }
 0x753   : > { %v1961_v35 = vpop.xlane.xlu0 %1960 }
 0x754   : > { %5738 = vrcp.f32 %v1961_v35 }
 0x757   : > { %v1964_v2 = vpop.xlane.xlu1 %1963 }
 0x758   : > { %5740 = vrcp.f32 %v1964_v2 }
 0x761   : > { %v5739_v54 = vpop.eup %5738 }
 0x762   : > { %v1967_v31 = vmul.f32 %v5739_v54, %v5735_v34 }
 0x765   : > { %v5741_v27 = vpop.eup %5740 }
 0x766   : > { %v1968_v32 = vmul.f32 %v5741_v27, %v5737_v24 }
 0x768   : > { %v1969_v5 = vpack.c.bf16 %v1968_v32, %v1967_v31 }
 0x76a   : > { %5193 = vmatmul.mubr.msk.bf16.vlgmr.msra.gmra.mxu1 %vm1816_vm1, %v1969_v5 }
 0x76b   : > { %2112 = vmatpush1.bf16.msra.mxu1 %v7130_v15  ;;  %2143 = vmatprep.mubr.bf16.mxu1 %v6226_v18 }
 0x76c   : > { %2113 = vmatprep.subr.bf16.mxu1 %v7133_v6 }
 0x76f   : > { %2114 = vmatpush1.bf16.msra.mxu1 %v7138_v52 }
 0x770   : > { %2115 = vmatprep.subr.bf16.mxu1 %v7143_v60 }
 0x773   : > { %2116 = vmatpush1.bf16.msra.mxu1 %v7147_v7 }
 0x774   : > { %2117 = vmatprep.subr.bf16.mxu1 %v7151_v9 }
 0x777   : > { %2118 = vmatpush1.bf16.msra.mxu1 %v7155_v10 }
 0x778   : > { %2119 = vmatprep.subr.bf16.mxu1 %v7159_v14 }
 0x77b   : > { %2120 = vmatpush1.bf16.msra.mxu1 %v7163_v20 }
 0x77c   : > { %2121 = vmatprep.subr.bf16.mxu1 %v7167_v21 }
 0x77f   : > { %2122 = vmatpush1.bf16.msra.mxu1 %v7171_v22 }
 0x780   : > { %2123 = vmatprep.subr.bf16.mxu1 %v7175_v59 }
 0x783   : > { %2124 = vmatpush1.bf16.msra.mxu1 %v7179_v29 }
 0x784   : > { %2125 = vmatprep.subr.bf16.mxu1 %v7184_v19 }
 0x787   : > { %2126 = vmatpush1.bf16.msra.mxu1 %v7187_v36 }
 0x788   : > { %5196 = vmatprep.subr.bf16.mxu1 %v6224_v50 }
 0x82a   : > { %v2007_v34 = vpop.f32.mrf.mxu1 }
 0x82c   : > { %v5194_v23 = vpop.f32.mrf.mxu1 }
 0x82e   : > { %v2010_v24 = vpop.f32.mrf.mxu1 }
 0x82f   : > { %v2014_v25 = vpack.c.bf16 %v2010_v24, %v2007_v34 }
 0x830   : > { %v5195_v35 = vpop.f32.mrf.mxu1 }
 0x831   : > { %2144 = vmatmul.mubr.bf16.vlgmr.msra.gmra.mxu1 %v2014_v25 }
 0x832   : > { %5197 = vmatpush3.bf16.xpose.msra.mxu1 %v2302_v49  ;;  %5198 = vmatprep.mubr.msk.bf16.mxu1 %vm6225_vm0, %v6224_v50 }
 0x833   : > { %5202 = vmatprep.subr.bf16.mxu1 %v6224_v50 }
 0x839   : > { %5199 = vmatmul.mubr.bf16.vlgmr.msra.gmra.mxu1 %v2301_v48 }
 0x83a   : > { %5203 = vmatpush3.bf16.msra.mxu1 %v2303_v17  ;;  %5204 = vmatprep.mubr.msk.bf16.mxu1 %vm6225_vm0, %v6224_v50 }
 0x83b   : > { %5208 = vmatprep.subr.bf16.mxu1 %v6224_v50 }
 0x8f1   : > { %v7207_v41 = vpop.f32.mrf.mxu1 }
 0x8f3   : > { %v7209_v43 = vpop.f32.mrf.mxu1 }
 0x8f5   : > { %v7211_v49 = vpop.f32.mrf.mxu1 }
 0x8f7   : > { %v7213_v2 = vpop.f32.mrf.mxu1 }
 0x8f9   : > { %v2338_v54 = vpop.f32.mrf.mxu1 }
 0x8fa   : > { %v2345_v40 = vmul.f32 0.088388346, %v2338_v54 }
 0x8fb   : > { %v5200_v42 = vpop.f32.mrf.mxu1 }
 0x8fc   : > { %v2347_v48 = vsel %vm1816_vm1, %v2345_v40, -inf }
 0x8fd   : > { %2348 = vmax.xlane.f32.xlu0 %v2347_v48  ;;  %v2341_v13 = vpop.f32.mrf.mxu1 }
 0x8fe   : > { %v2346_v16 = vmul.f32 0.088388346, %v2341_v13 }
 0x8ff   : > { %v5201_v17 = vpop.f32.mrf.mxu1 }
 0x900   : > { %v2350_v27 = vsel %vm1816_vm1, %v2346_v16, -inf }
 0x901   : > { %2351 = vmax.xlane.f32.xlu1 %v2350_v27 }
 0x986   : > { %v2349_v31 = vpop.xlane.xlu0 %2348 }
 0x987   : > { %v2353_v32 = vsub.f32 %v2345_v40, %v2349_v31 }
 0x989   : > { %v2355_v5 = vmul.f32 1.442695, %v2353_v32 }
 0x98a   : > { %v2352_v34 = vpop.xlane.xlu1 %2351 }
 0x98b   : > { %5742 = vpow2.f32 %v2355_v5  ;;  %v2354_v23 = vsub.f32 %v2346_v16, %v2352_v34  ;;  %v2281_v34 = vld [vmem:[%s714_s2] sm:$0x3] }
 0x98d   : > { %v2357_v24 = vmul.f32 1.442695, %v2354_v23  ;;  %v5830_v23 = vld [vmem:[#allocation2] sm:$0xff] }
 0x98f   : > { %5744 = vpow2.f32 %v2357_v24 }
 0x998   : > { %v5743_v25 = vpop.eup %5742 }
 0x999   : > { %v2359_v35 = vsel %vm1816_vm1, %v5743_v25, 0.0 }
 0x99a   : > { %2360 = vadd.xlane.f32.xlu0 %v2359_v35 }
 0x99c   : > { %v5745_v54 = vpop.eup %5744 }
 0x99d   : > { %v2362_v42 = vsel %vm1816_vm1, %v5745_v54, 0.0 }
 0x99e   : > { %2363 = vadd.xlane.f32.xlu1 %v2362_v42 }
 0xa23   : > { %v2361_v48 = vpop.xlane.xlu0 %2360 }
 0xa24   : > { %5746 = vrcp.f32 %v2361_v48  ;;  %v2286_v48 = vrot.slane %v2281_v34, %v6864_v62 }
 0xa27   : > { %v2364_v13 = vpop.xlane.xlu1 %2363 }
 0xa28   : > { %5748 = vrcp.f32 %v2364_v13 }
 0xa31   : > { %v5747_v17 = vpop.eup %5746 }
 0xa32   : > { %v2367_v27 = vmul.f32 %v5747_v17, %v5743_v25  ;;  %v2290_v25 = vrot.slane %v2281_v34, %v6861_v61  ;;  %v5564_v34 = vld [vmem:[%s6695_s16 + $0x24] ss:$16 sps:$4 sm:$0xff]  }
 0xa35   : > { %v5749_v40 = vpop.eup %5748 }
 0xa36   : > { %v2368_v31 = vmul.f32 %v5749_v40, %v5745_v54  ;;  %v5831_v54 = vld [vmem:[#allocation2 + $0x30] sm:$0xff] }
 0xa38   : > { %v2369_v32 = vpack.c.bf16 %v2368_v31, %v2367_v27 }
 0xa3a   : > { %5205 = vmatmul.mubr.msk.bf16.vlgmr.msra.gmra.mxu1 %vm1816_vm1, %v2369_v32  ;;  %v5833_v32 = vld [vmem:[#allocation2 + $0x18] sm:$0xff] }
 0xa3b   : > { %5209 = vmatpush3.bf16.xpose.msra.mxu1 %v2432_v0  ;;  %5210 = vmatprep.mubr.msk.bf16.mxu1 %vm6225_vm0, %v6224_v50 }
 0xa3c   : > { %2641 = vmatprep.subr.bf16.mxu1 %v7126_v28 }
 0xa42   : > { %5211 = vmatmul.mubr.bf16.vlgmr.msra.gmra.mxu1 %v2431_v63 }
 0xa43   : > { %2642 = vmatpush1.bf16.msra.mxu1 %v7130_v15  ;;  %2673 = vmatprep.mubr.bf16.mxu1 %v6226_v18 }
 0xa44   : > { %2643 = vmatprep.subr.bf16.mxu1 %v7133_v6 }
 0xa47   : > { %2644 = vmatpush1.bf16.msra.mxu1 %v7138_v52 }
 0xa48   : > { %2645 = vmatprep.subr.bf16.mxu1 %v7143_v60 }
 0xa4b   : > { %2646 = vmatpush1.bf16.msra.mxu1 %v7147_v7 }
 0xa4c   : > { %2647 = vmatprep.subr.bf16.mxu1 %v7151_v9 }
 0xa4f   : > { %2648 = vmatpush1.bf16.msra.mxu1 %v7155_v10  ;;  %v2268_v10 = vpop.f32.mrf.mxu0 }
 0xa50   : > { %2649 = vmatprep.subr.bf16.mxu1 %v7159_v14  ;;  %v2269_v16 = vadd.f32 %v2268_v10, %v7207_v41 }
 0xa52   : > { %v2277_v42 = vadd.f32 %v5831_v54, %v2269_v16  ;;  %v5556_v16 = vld [vmem:[%s6695_s16 + $0x40] ss:$16 sps:$4 sm:$0xff]   ;;  %v5573_v54 = vld [vmem:[%s6695_s16 + $0xc] ss:$16 sps:$4 sm:$0xff]  }
 0xa53   : > { %2650 = vmatpush1.bf16.msra.mxu1 %v7163_v20 }
 0xa54   : > { %2651 = vmatprep.subr.bf16.mxu1 %v7167_v21  ;;  %v7264_v31 = vadd.f32 %v2286_v48, %v2277_v42  ;;  %v5568_v42 = vld [vmem:[%s6695_s16] ss:$16 sps:$4 sm:$0xff]  }
 0xa57   : > { %2652 = vmatpush1.bf16.msra.mxu1 %v7171_v22  ;;  %v2270_v22 = vpop.f32.mrf.mxu0 }
 0xa58   : > { %2653 = vmatprep.subr.bf16.mxu1 %v7175_v59 }
 0xa5b   : > { %2654 = vmatpush1.bf16.msra.mxu1 %v7179_v29 }
 0xa5c   : > { %2655 = vmatprep.subr.bf16.mxu1 %v7184_v19  ;;  %v2272_v19 = vpop.f32.mrf.mxu0 }
 0xa5d   : > { %v2273_v13 = vadd.f32 %v2272_v19, %v7211_v49  ;;  %v5558_v19 = vld [vmem:[%s6695_s16 + $0x44] ss:$16 sps:$4 sm:$0xff]  }
 0xa5e   : > { %v2274_v5 = vpop.f32.mrf.mxu0 }
 0xa5f   : > { %2656 = vmatpush1.bf16.msra.mxu1 %v7187_v36  ;;  %v2271_v36 = vadd.f32 %v2270_v22, %v7209_v43  ;;  %v2275_v35 = vadd.f32 %v2274_v5, %v7213_v2  ;;  %v5832_v43 = vld [vmem:[#allocation2 + $0x10] sm:$0xff]  ;;  %v5559_v5 = vld [vmem:[%s6695_s16 + $0x48] ss:$16 sps:$4 sm:$0xff]  }
 0xa60   : > { %v5555_v22 = vld [vmem:[%s6695_s16 + $0x6c] ss:$16 sps:$4 sm:$0xff]  }
 0xa61   : > { %v2278_v24 = vadd.f32 %v5830_v23, %v2271_v36  ;;  %v2280_v41 = vadd.f32 %v5832_v43, %v2275_v35  ;;  %v5561_v36 = vld [vmem:[%s6695_s16 + $0x4c] ss:$16 sps:$4 sm:$0xff]   ;;  %v5570_v35 = vld [vmem:[%s6695_s16 + $0x4] ss:$16 sps:$4 sm:$0xff]  }
 0xa62   : > { %v5567_v23 = vld [vmem:[%s6695_s16 + $0x2c] ss:$16 sps:$4 sm:$0xff]  }
 0xa63   : > { %v7261_v40 = vadd.f32 %v2290_v25, %v2278_v24  ;;  %v7266_v2 = vadd.f32 %v2290_v25, %v2280_v41  ;;  %v5562_v24 = vld [vmem:[%s6695_s16 + $0x20] ss:$16 sps:$4 sm:$0xff]   ;;  %v5565_v25 = vld [vmem:[%s6695_s16 + $0x28] ss:$16 sps:$4 sm:$0xff]  }
 0xafa   : > { %v7245_v50 = vpop.f32.mrf.mxu1 }
 0xafc   : > { %v5206_v44 = vpop.f32.mrf.mxu1 }
 0xafd   : > { %v2279_v44 = vadd.f32 %v5833_v32, %v2273_v13  ;;  %v2811_v32 = vld [vmem:[%s714_s2] sm:$0x3] }
 0xafe   : > { %v7247_v45 = vpop.f32.mrf.mxu1 }
 0xaff   : > { %v2414_v56 = vpack.c.bf16 %v7247_v45, %v7245_v50  ;;  %v5541_v50 = vld [vmem:[%s6695_s16 + $0xa8] ss:$16 sps:$4 sm:$0xff]   ;;  %v5546_v45 = vld [vmem:[%s6695_s16 + $0x84] ss:$16 sps:$4 sm:$0xff]  }
 0xb00   : > { %v5207_v57 = vpop.f32.mrf.mxu1 }
 0xb02   : > { %v2468_v63 = vpop.f32.mrf.mxu1 }
 0xb03   : > { %v2475_v0 = vmul.f32 0.088388346, %v2468_v63  ;;  %v2841_v63 = vadd.f32 %v7261_v40, %v7264_v31 }
 0xb04   : > { %v5212_v28 = vpop.f32.mrf.mxu1 }
 0xb05   : > { %v2477_v15 = vsel %vm1816_vm1, %v2475_v0, -inf }
 0xb06   : > { %2478 = vmax.xlane.f32.xlu0 %v2477_v15  ;;  %v2471_v6 = vpop.f32.mrf.mxu1 }
 0xb07   : > { %v2476_v52 = vmul.f32 0.088388346, %v2471_v6 }
 0xb08   : > { %v5213_v60 = vpop.f32.mrf.mxu1 }
 0xb09   : > { %v2480_v7 = vsel %vm1816_vm1, %v2476_v52, -inf }
 0xb0a   : > { %2481 = vmax.xlane.f32.xlu1 %v2480_v7 }
 0xb8f   : > { %v2479_v9 = vpop.xlane.xlu0 %2478 }
 0xb90   : > { %v2483_v14 = vsub.f32 %v2475_v0, %v2479_v9  ;;  %v7271_v0 = vadd.f32 %v2286_v48, %v2279_v44  ;;  %v5571_v48 = vld [vmem:[%s6695_s16 + $0x8] ss:$16 sps:$4 sm:$0xff]  }
 0xb92   : > { %v2485_v20 = vmul.f32 1.442695, %v2483_v14  ;;  %v2844_v28 = vadd.f32 %v7266_v2, %v7271_v0  ;;  %v5544_v14 = vld [vmem:[%s6695_s16 + $0x80] ss:$16 sps:$4 sm:$0xff]  }
 0xb93   : > { %v2482_v21 = vpop.xlane.xlu1 %2481 }
 0xb94   : > { %5750 = vpow2.f32 %v2485_v20  ;;  %v2484_v59 = vsub.f32 %v2476_v52, %v2482_v21  ;;  %v5547_v20 = vld [vmem:[%s6695_s16 + $0x88] ss:$16 sps:$4 sm:$0xff]   ;;  %v5552_v21 = vld [vmem:[%s6695_s16 + $0x64] ss:$16 sps:$4 sm:$0xff]  }
 0xb96   : > { %v2487_v29 = vmul.f32 1.442695, %v2484_v59  ;;  %v5550_v59 = vld [vmem:[%s6695_s16 + $0x60] ss:$16 sps:$4 sm:$0xff]  }
 0xb98   : > { %5752 = vpow2.f32 %v2487_v29  ;;  %v5553_v29 = vld [vmem:[%s6695_s16 + $0x68] ss:$16 sps:$4 sm:$0xff]  }
 0xba1   : > { %v5751_v17 = vpop.eup %5750 }
 0xba2   : > { %v2489_v27 = vsel %vm1816_vm1, %v5751_v17, 0.0 }
 0xba3   : > { %2490 = vadd.xlane.f32.xlu0 %v2489_v27 }
 0xba5   : > { %v5753_v57 = vpop.eup %5752 }
 0xba6   : > { %v2492_v49 = vsel %vm1816_vm1, %v5753_v57, 0.0 }
 0xba7   : > { %2842 = vadd.xlane.f32.xlu0 %v2841_v63  ;;  %2493 = vadd.xlane.f32.xlu1 %v2492_v49 }
 0xbab   : > { %2845 = vadd.xlane.f32.xlu1 %v2844_v28  ;;  %v5834_v28 = vld [vmem:[#allocation2 + $0x8] sm:$0xff] }
 0xc2c   : > { %v2491_v15 = vpop.xlane.xlu0 %2490 }
 0xc2d   : > { %5754 = vrcp.f32 %v2491_v15 }
 0xc30   : > { %v2494_v6 = vpop.xlane.xlu1 %2493 }
 0xc31   : > { %5756 = vrcp.f32 %v2494_v6  ;;  %v2816_v6 = vrot.slane %v2811_v32, %v6864_v62 }
 0xc34   : > { %v2846_v44 = vpop.xlane.xlu1 %2845 }
 0xc3a   : > { %v5755_v52 = vpop.eup %5754 }
 0xc3b   : > { %v2497_v7 = vmul.f32 %v5755_v52, %v5751_v17  ;;  %v2843_v17 = vpop.xlane.xlu0 %2842 }
 0xc3c   : > { %v2853_v41 = vmul.f32 0.00390625, %v2843_v17  ;;  %v5592_v17 = vld [vmem:[%s6695_s16 + $0x180] ss:$16 sps:$4 sm:$0xff]  }
 0xc3e   : > { %v5757_v60 = vpop.eup %5756 }
 0xc3f   : > { %v2498_v9 = vmul.f32 %v5757_v60, %v5753_v57  ;;  %v2820_v60 = vrot.slane %v2811_v32, %v6861_v61  ;;  %v5603_v32 = vld [vmem:[%s6695_s16 + $0x16c] ss:$16 sps:$4 sm:$0xff]  }
 0xc41   : > { %v2499_v10 = vpack.c.bf16 %v2498_v9, %v2497_v7  ;;  %v7332_v7 = vsub.f32 %v7264_v31, %v2853_v41  ;;  %v7335_v9 = vsub.f32 %v7261_v40, %v2853_v41  ;;  %v5595_v41 = vld [vmem:[%s6695_s16 + $0x188] ss:$16 sps:$4 sm:$0xff]  }
 0xc43   : > { %5217 = vmatmul.mubr.msk.bf16.vlgmr.msra.gmra.mxu0 %vm1816_vm1, %v2499_v10 }
 0xc44   : > { %2765 = vmatpush1.bf16.msra.mxu0 %v7034_v33  ;;  %2796 = vmatprep.mubr.bf16.mxu0 %v6226_v18  ;;  %v5538_v18 = vld [vmem:[%s6695_s16 + $0xa0] ss:$16 sps:$4 sm:$0xff]  }
 0xc45   : > { %2766 = vmatprep.subr.bf16.mxu0 %v7040_v37 }
 0xc48   : > { %2767 = vmatpush1.bf16.msra.mxu0 %v7045_v38 }
 0xc49   : > { %2768 = vmatprep.subr.bf16.mxu0 %v7049_v39 }
 0xc4c   : > { %2769 = vmatpush1.bf16.msra.mxu0 %v7053_v46 }
 0xc4d   : > { %2770 = vmatprep.subr.bf16.mxu0 %v7057_v47  ;;  %v5526_v47 = vld [vmem:[%s6695_s16 + $0xe0] ss:$16 sps:$4 sm:$0xff]  }
 0xc50   : > { %2771 = vmatpush1.bf16.msra.mxu0 %v7061_v58  ;;  %v5528_v58 = vld [vmem:[%s6695_s16 + $0xe4] ss:$16 sps:$4 sm:$0xff]  }
 0xc51   : > { %2772 = vmatprep.subr.bf16.mxu0 %v7065_v1  ;;  %v5529_v1 = vld [vmem:[%s6695_s16 + $0xe8] ss:$16 sps:$4 sm:$0xff]   ;;  %3353 = vmatprep.subr.bf16.mxu1 %v5528_v58 }
 0xc54   : > { %2773 = vmatpush1.bf16.msra.mxu0 %v7069_v4  ;;  %v5531_v4 = vld [vmem:[%s6695_s16 + $0xec] ss:$16 sps:$4 sm:$0xff]  }
 0xc55   : > { %2774 = vmatprep.subr.bf16.mxu0 %v7073_v8  ;;  %v5534_v8 = vld [vmem:[%s6695_s16 + $0xc4] ss:$16 sps:$4 sm:$0xff]  }
 0xc58   : > { %2775 = vmatpush1.bf16.msra.mxu0 %v7077_v11  ;;  %v5537_v11 = vld [vmem:[%s6695_s16 + $0xcc] ss:$16 sps:$4 sm:$0xff]  }
 0xc59   : > { %2776 = vmatprep.subr.bf16.mxu0 %v7081_v12  ;;  %v5532_v12 = vld [vmem:[%s6695_s16 + $0xc0] ss:$16 sps:$4 sm:$0xff]  }
 0xc5c   : > { %2777 = vmatpush1.bf16.msra.mxu0 %v7085_v53  ;;  %v5535_v53 = vld [vmem:[%s6695_s16 + $0xc8] ss:$16 sps:$4 sm:$0xff]  }
 0xc5d   : > { %2778 = vmatprep.subr.bf16.mxu0 %v7108_v3  ;;  %v5540_v3 = vld [vmem:[%s6695_s16 + $0xa4] ss:$16 sps:$4 sm:$0xff]  }
 0xc60   : > { %2779 = vmatpush1.bf16.msra.mxu0 %v7111_v26  ;;  %v5543_v26 = vld [vmem:[%s6695_s16 + $0xac] ss:$16 sps:$4 sm:$0xff]  }
 0xc61   : > { %3406 = vmatprep.subr.bf16.mxu0 %v5531_v4  ;;  %v5836_v4 = vld [vmem:[#allocation2 + $0x28] sm:$0xff] }
 0xc63   : > { %2797 = vmatmul.mubr.bf16.vlgmr.msra.gmra.mxu0 %v2414_v56  ;;  %v5549_v56 = vld [vmem:[%s6695_s16 + $0x8c] ss:$16 sps:$4 sm:$0xff]  }
 0xc64   : > { %3407 = vmatpush1.bf16.msra.mxu0 %v5529_v1 }
 0xc65   : > { %3408 = vmatprep.subr.bf16.mxu0 %v5537_v11 }
 0xc68   : > { %3409 = vmatpush1.bf16.msra.mxu0 %v5535_v53  ;;  %v2866_v53 = vmul.f32 %v7335_v9, %v7335_v9 }
 0xc69   : > { %3410 = vmatprep.subr.bf16.mxu0 %v5543_v26 }
 0xc6c   : > { %3411 = vmatpush1.bf16.msra.mxu0 %v5541_v50 }
 0xc6d   : > { %3412 = vmatprep.subr.bf16.mxu0 %v5549_v56 }
 0xc70   : > { %3413 = vmatpush1.bf16.msra.mxu0 %v5547_v20 }
 0xc71   : > { %3414 = vmatprep.subr.bf16.mxu0 %v5555_v22 }
 0xc74   : > { %3415 = vmatpush1.bf16.msra.mxu0 %v5553_v29 }
 0xc75   : > { %3416 = vmatprep.subr.bf16.mxu0 %v5561_v36  ;;  %v5576_v36 = vld [vmem:[%s6695_s16 + $0x1e4] ss:$16 sps:$4 sm:$0xff]  }
 0xc78   : > { %3417 = vmatpush1.bf16.msra.mxu0 %v5559_v5  ;;  %v5579_v5 = vld [vmem:[%s6695_s16 + $0x1ec] ss:$16 sps:$4 sm:$0xff]  }
 0xc79   : > { %3418 = vmatprep.subr.bf16.mxu0 %v5567_v23  ;;  %v5585_v23 = vld [vmem:[%s6695_s16 + $0x1cc] ss:$16 sps:$4 sm:$0xff]  }
 0xc7c   : > { %3419 = vmatpush1.bf16.msra.mxu0 %v5565_v25  ;;  %v5583_v25 = vld [vmem:[%s6695_s16 + $0x1c8] ss:$16 sps:$4 sm:$0xff]  }
 0xc7d   : > { %3420 = vmatprep.subr.bf16.mxu0 %v5573_v54  ;;  %v5591_v54 = vld [vmem:[%s6695_s16 + $0x1ac] ss:$16 sps:$4 sm:$0xff]  }
 0xc80   : > { %3421 = vmatpush1.bf16.msra.mxu0 %v5571_v48  ;;  %v5589_v48 = vld [vmem:[%s6695_s16 + $0x1a8] ss:$16 sps:$4 sm:$0xff]  }
 0xc81   : > { %3422 = vmatprep.subr.bf16.mxu0 %v5579_v5 }
 0xd03   : > { %v2537_v33 = vpop.f32.mrf.mxu0 }
 0xd05   : > { %v5218_v37 = vpop.f32.mrf.mxu0 }
 0xd06   : > { %v5835_v37 = vld [vmem:[#allocation2 + $0x20] sm:$0xff] }
 0xd07   : > { %v2540_v38 = vpop.f32.mrf.mxu0 }
 0xd08   : > { %v2544_v39 = vpack.c.bf16 %v2540_v38, %v2537_v33  ;;  %v2854_v33 = vmul.f32 0.00390625, %v2846_v44  ;;  %v5598_v44 = vld [vmem:[%s6695_s16 + $0x160] ss:$16 sps:$4 sm:$0xff]  }
 0xd09   : > { %v5219_v46 = vpop.f32.mrf.mxu0 }
 0xd0a   : > { %2674 = vmatmul.mubr.bf16.vlgmr.msra.gmra.mxu1 %v2544_v39  ;;  %v7349_v26 = vsub.f32 %v7266_v2, %v2854_v33 }
 0xd0b   : > { %3354 = vmatpush1.bf16.msra.mxu1 %v5526_v47 }
 0xd0c   : > { %3355 = vmatprep.subr.bf16.mxu1 %v5534_v8 }
 0xd0f   : > { %3356 = vmatpush1.bf16.msra.mxu1 %v5532_v12  ;;  %v2865_v12 = vmul.f32 %v7332_v7, %v7332_v7 }
 0xd10   : > { %3357 = vmatprep.subr.bf16.mxu1 %v5540_v3  ;;  %v7346_v3 = vsub.f32 %v7271_v0, %v2854_v33  ;;  %v5618_v33 = vld [vmem:[%s6695_s16 + $0x104] ss:$16 sps:$4 sm:$0xff]  }
 0xd11   : > { %v2873_v20 = vadd.f32 %v2866_v53, %v2865_v12 }
 0xd12   : > { %v2867_v22 = vmul.f32 %v7346_v3, %v7346_v3 }
 0xd13   : > { %3358 = vmatpush1.bf16.msra.mxu1 %v5538_v18  ;;  %v5837_v18 = vld [vmem:[#allocation2 + $0x38] sm:$0xff] }
 0xd14   : > { %3359 = vmatprep.subr.bf16.mxu1 %v5546_v45 }
 0xd17   : > { %3360 = vmatpush1.bf16.msra.mxu1 %v5544_v14 }
 0xd18   : > { %3361 = vmatprep.subr.bf16.mxu1 %v5552_v21 }
 0xd1b   : > { %3362 = vmatpush1.bf16.msra.mxu1 %v5550_v59  ;;  %v2868_v59 = vmul.f32 %v7349_v26, %v7349_v26 }
 0xd1c   : > { %3363 = vmatprep.subr.bf16.mxu1 %v5558_v19  ;;  %v5574_v19 = vld [vmem:[%s6695_s16 + $0x1e0] ss:$16 sps:$4 sm:$0xff]  }
 0xd1d   : > { %v2876_v29 = vadd.f32 %v2868_v59, %v2867_v22 }
 0xd1f   : > { %3364 = vmatpush1.bf16.msra.mxu1 %v5556_v16  ;;  %v5577_v16 = vld [vmem:[%s6695_s16 + $0x1e8] ss:$16 sps:$4 sm:$0xff]  }
 0xd20   : > { %3365 = vmatprep.subr.bf16.mxu1 %v5564_v34  ;;  %3423 = vmatpush2.bf16.msra.mxu0 %v5577_v16  ;;  %v5582_v34 = vld [vmem:[%s6695_s16 + $0x1c4] ss:$16 sps:$4 sm:$0xff]  }
 0xd21   : > { %3424 = vmatprep.subr.bf16.mxu0 %v5585_v23  ;;  %v2839_v23 = vld [vmem:[%s864_s25] sm:$0x3] }
 0xd23   : > { %3366 = vmatpush1.bf16.msra.mxu1 %v5562_v24  ;;  %v2798_v13 = vpop.f32.mrf.mxu0  ;;  %v5580_v24 = vld [vmem:[%s6695_s16 + $0x1c0] ss:$16 sps:$4 sm:$0xff]  }
 0xd24   : > { %3367 = vmatprep.subr.bf16.mxu1 %v5570_v35  ;;  %3425 = vmatpush2.bf16.msra.mxu0 %v5583_v25  ;;  %v5588_v35 = vld [vmem:[%s6695_s16 + $0x1a4] ss:$16 sps:$4 sm:$0xff]   ;;  %v2840_v25 = vld [vmem:[%s723_s26] sm:$0x3] }
 0xd25   : > { %v2800_v43 = vpop.f32.mrf.mxu0  ;;  %3426 = vmatprep.subr.bf16.mxu0 %v5591_v54  ;;  %v7424_v54 = vrot.slane %v2839_v23, %v6864_v62 }
 0xd27   : > { %3368 = vmatpush1.bf16.msra.mxu1 %v5568_v42  ;;  %v2802_v63 = vpop.f32.mrf.mxu0  ;;  %v5586_v42 = vld [vmem:[%s6695_s16 + $0x1a0] ss:$16 sps:$4 sm:$0xff]  }
 0xd28   : > { %3369 = vmatprep.subr.bf16.mxu1 %v5576_v36  ;;  %3427 = vmatpush2.bf16.msra.mxu0 %v5589_v48 }
 0xd29   : > { %v2804_v46 = vpop.f32.mrf.mxu0 }
 0xd2b   : > { %3370 = vmatpush2.bf16.msra.mxu1 %v5574_v19 }
 0xd2c   : > { %3371 = vmatprep.subr.bf16.mxu1 %v5582_v34 }
 0xd2f   : > { %3372 = vmatpush2.bf16.msra.mxu1 %v5580_v24 }
 0xd30   : > { %3373 = vmatprep.subr.bf16.mxu1 %v5588_v35 }
 0xd33   : > { %3374 = vmatpush2.bf16.msra.mxu1 %v5586_v42  ;;  %v7427_v42 = vrot.slane %v2839_v23, %v6861_v61  ;;  %v5663_v23 = vld [vmem:[%s6703_s27 + $0x114] ss:$8 sps:$4 sm:$0xff]  }
 0xdca   : > { %v2675_v27 = vpop.f32.mrf.mxu1 }
 0xdcb   : > { %v2799_v57 = vadd.f32 %v2798_v13, %v2675_v27  ;;  %v5594_v13 = vld [vmem:[%s6695_s16 + $0x184] ss:$16 sps:$4 sm:$0xff]  }
 0xdcc   : > { %v2677_v49 = vpop.f32.mrf.mxu1  ;;  %3375 = vmatprep.subr.bf16.mxu1 %v5594_v13  ;;  %v5600_v27 = vld [vmem:[%s6695_s16 + $0x164] ss:$16 sps:$4 sm:$0xff]  }
 0xdcd   : > { %v2807_v15 = vadd.f32 %v5834_v28, %v2799_v57  ;;  %v2801_v52 = vadd.f32 %v2800_v43, %v2677_v49  ;;  %v5597_v43 = vld [vmem:[%s6695_s16 + $0x18c] ss:$16 sps:$4 sm:$0xff]   ;;  %3376 = vmatpush2.bf16.msra.mxu1 %v5592_v17  ;;  %v5601_v57 = vld [vmem:[%s6695_s16 + $0x168] ss:$16 sps:$4 sm:$0xff]   ;;  %v5604_v28 = vld [vmem:[%s6695_s16 + $0x140] ss:$16 sps:$4 sm:$0xff]   ;;  %v7431_v17 = vrot.slane %v2840_v25, %v6864_v62 }
 0xdce   : > { %v2679_v10 = vpop.f32.mrf.mxu1  ;;  %3428 = vmatprep.subr.bf16.mxu0 %v5597_v43  ;;  %3377 = vmatprep.subr.bf16.mxu1 %v5600_v27  ;;  %v5609_v49 = vld [vmem:[%s6695_s16 + $0x14c] ss:$16 sps:$4 sm:$0xff]   ;;  %v7434_v43 = vrot.slane %v2840_v25, %v6861_v61  ;;  %v5661_v25 = vld [vmem:[%s6703_s27 + $0x110] ss:$8 sps:$4 sm:$0xff]  }
 0xdcf   : > { %v2808_v38 = vadd.f32 %v5835_v37, %v2801_v52  ;;  %v2803_v39 = vadd.f32 %v2802_v63, %v2679_v10  ;;  %v7337_v58 = vadd.f32 %v2816_v6, %v2807_v15  ;;  %3429 = vmatpush2.bf16.msra.mxu0 %v5595_v41  ;;  %v5606_v63 = vld [vmem:[%s6695_s16 + $0x144] ss:$16 sps:$4 sm:$0xff]   ;;  %v5607_v15 = vld [vmem:[%s6695_s16 + $0x148] ss:$16 sps:$4 sm:$0xff]   ;;  %v5615_v52 = vld [vmem:[%s6695_s16 + $0x12c] ss:$16 sps:$4 sm:$0xff]  }
 0xdd0   : > { %v2681_v47 = vpop.f32.mrf.mxu1  ;;  %3430 = vmatprep.subr.bf16.mxu0 %v5603_v32  ;;  %v5613_v10 = vld [vmem:[%s6695_s16 + $0x128] ss:$16 sps:$4 sm:$0xff]   ;;  %v5621_v37 = vld [vmem:[%s6695_s16 + $0x10c] ss:$16 sps:$4 sm:$0xff]  }
 0xdd1   : > { %v7339_v1 = vadd.f32 %v2820_v60, %v2808_v38  ;;  %v2809_v8 = vadd.f32 %v5836_v4, %v2803_v39  ;;  %v2805_v11 = vadd.f32 %v2804_v46, %v2681_v47  ;;  %3378 = vmatpush2.bf16.msra.mxu1 %v5598_v44  ;;  %v5616_v38 = vld [vmem:[%s6695_s16 + $0x100] ss:$16 sps:$4 sm:$0xff]   ;;  %v5619_v39 = vld [vmem:[%s6695_s16 + $0x108] ss:$16 sps:$4 sm:$0xff]  }
 0xdd2   : > { %3379 = vmatprep.subr.bf16.mxu1 %v5606_v63 }
 0xdd3   : > { %v2810_v50 = vadd.f32 %v5837_v18, %v2805_v11  ;;  %v2847_v45 = vadd.f32 %v7339_v1, %v7337_v58  ;;  %v7353_v56 = vadd.f32 %v2816_v6, %v2809_v8  ;;  %3431 = vmatpush2.bf16.msra.mxu0 %v5601_v57  ;;  %v5612_v6 = vld [vmem:[%s6695_s16 + $0x124] ss:$16 sps:$4 sm:$0xff]  }
 0xdd4   : > { %3432 = vmatprep.subr.bf16.mxu0 %v5609_v49 }
 0xdd5   : > { %v7355_v14 = vadd.f32 %v2820_v60, %v2810_v50  ;;  %2848 = vadd.xlane.f32.xlu0 %v2847_v45  ;;  %3380 = vmatpush2.bf16.msra.mxu1 %v5604_v28  ;;  %v5610_v60 = vld [vmem:[%s6695_s16 + $0x120] ss:$16 sps:$4 sm:$0xff]   ;;  %s7925_s16 = sld [smem:[#allocation41_spill]] (!%p5144_p13) }
 0xdd6   : > { %3381 = vmatprep.subr.bf16.mxu1 %v5612_v6  ;;  %v5624_v6 = vld [vmem:[%s6703_s27 + $0x74] ss:$8 sps:$4 sm:$0xff]  }
 0xdd7   : > { %v2850_v21 = vadd.f32 %v7355_v14, %v7353_v56  ;;  %3433 = vmatpush2.bf16.msra.mxu0 %v5607_v15  ;;  %v5622_v15 = vld [vmem:[%s6703_s27 + $0x70] ss:$8 sps:$4 sm:$0xff]  }
 0xdd8   : > { %3434 = vmatprep.subr.bf16.mxu0 %v5615_v52  ;;  %v5625_v52 = vld [vmem:[%s6703_s27 + $0x170] ss:$8 sps:$4 sm:$0xff]  }
 0xdd9   : > { %2874 = vadd.xlane.f32.xlu0 %v2873_v20  ;;  %2851 = vadd.xlane.f32.xlu1 %v2850_v21 }
 0xdda   : > { %3382 = vmatpush2.bf16.msra.mxu1 %v5610_v60  ;;  %v5627_v60 = vld [vmem:[%s6703_s27 + $0x174] ss:$8 sps:$4 sm:$0xff]  }
 0xddb   : > { %3435 = vmatpush2.bf16.msra.mxu0 %v5613_v10  ;;  %3383 = vmatprep.subr.bf16.mxu1 %v5618_v33  ;;  %v5630_v10 = vld [vmem:[%s6703_s27 + $0x64] ss:$8 sps:$4 sm:$0xff]  }
 0xddc   : > { %3436 = vmatprep.subr.bf16.mxu0 %v5621_v37  ;;  %v5633_v33 = vld [vmem:[%s6703_s27 + $0x164] ss:$8 sps:$4 sm:$0xff]   ;;  %v5628_v37 = vld [vmem:[%s6703_s27 + $0x60] ss:$8 sps:$4 sm:$0xff]  }
 0xddd   : > { %2877 = vadd.xlane.f32.xlu1 %v2876_v29 }
 0xdde   : > { %3384 = vmatpush2.bf16.msra.mxu1 %v5616_v38  ;;  %v5631_v38 = vld [vmem:[%s6703_s27 + $0x160] ss:$8 sps:$4 sm:$0xff]  }
 0xddf   : > { %3437 = vmatpush2.bf16.msra.mxu0 %v5619_v39  ;;  %4295 = vmatprep.subr.bf16.mxu1 %v5624_v6  ;;  %v5636_v39 = vld [vmem:[%s6703_s27 + $0x54] ss:$8 sps:$4 sm:$0xff]  }
 0xde0   : > { %4348 = vmatprep.subr.bf16.mxu0 %v5627_v60  ;;  %v5687_v60 = vld [vmem:[%s6703_s27 + $0x1d4] ss:$8 sps:$4 sm:$0xff]  }
 0xe5e   : > { %v2849_v46 = vpop.xlane.xlu0 %2848 }
 0xe5f   : > { %v2855_v47 = vmul.f32 0.00390625, %v2849_v46  ;;  %v5639_v46 = vld [vmem:[%s6703_s27 + $0x154] ss:$8 sps:$4 sm:$0xff]  }
 0xe61   : > { %v7396_v4 = vsub.f32 %v7337_v58, %v2855_v47  ;;  %v7399_v8 = vsub.f32 %v7339_v1, %v2855_v47  ;;  %v5634_v47 = vld [vmem:[%s6703_s27 + $0x50] ss:$8 sps:$4 sm:$0xff]  }
 0xe62   : > { %v2875_v11 = vpop.xlane.xlu0 %2874  ;;  %v2852_v12 = vpop.xlane.xlu1 %2851 }
 0xe63   : > { %v2885_v53 = vmul.f32 0.00390625, %v2875_v11  ;;  %v2856_v18 = vmul.f32 0.00390625, %v2852_v12  ;;  %v2869_v50 = vmul.f32 %v7396_v4, %v7396_v4  ;;  %v2870_v45 = vmul.f32 %v7399_v8, %v7399_v8  ;;  %v5637_v11 = vld [vmem:[%s6703_s27 + $0x150] ss:$8 sps:$4 sm:$0xff]   ;;  %v5642_v12 = vld [vmem:[%s6703_s27 + $0x44] ss:$8 sps:$4 sm:$0xff]  }
 0xe65   : > { %v2889_v20 = vadd.f32 1e-06, %v2885_v53  ;;  %v7406_v21 = vsub.f32 %v7353_v56, %v2856_v18  ;;  %v7409_v22 = vsub.f32 %v7355_v14, %v2856_v18  ;;  %v2879_v59 = vadd.f32 %v2870_v45, %v2869_v50  ;;  %v5645_v53 = vld [vmem:[%s6703_s27 + $0x144] ss:$8 sps:$4 sm:$0xff]   ;;  %v5640_v18 = vld [vmem:[%s6703_s27 + $0x40] ss:$8 sps:$4 sm:$0xff]  }
 0xe66   : > { %v2878_v29 = vpop.xlane.xlu1 %2877  ;;  %v5643_v50 = vld [vmem:[%s6703_s27 + $0x140] ss:$8 sps:$4 sm:$0xff]   ;;  %v5648_v45 = vld [vmem:[%s6703_s27 + $0x34] ss:$8 sps:$4 sm:$0xff]  }
 0xe67   : > { %5758 = vrsqrt.f32 %v2889_v20  ;;  %v2886_v19 = vmul.f32 0.00390625, %v2878_v29  ;;  %2880 = vadd.xlane.f32.xlu0 %v2879_v59  ;;  %v2871_v36 = vmul.f32 %v7406_v21, %v7406_v21  ;;  %v2872_v16 = vmul.f32 %v7409_v22, %v7409_v22  ;;  %v5651_v20 = vld [vmem:[%s6703_s27 + $0x134] ss:$8 sps:$4 sm:$0xff]   ;;  %v5646_v59 = vld [vmem:[%s6703_s27 + $0x30] ss:$8 sps:$4 sm:$0xff]  }
 0xe68   : > { %v5649_v29 = vld [vmem:[%s6703_s27 + $0x130] ss:$8 sps:$4 sm:$0xff]  }
 0xe69   : > { %v2890_v5 = vadd.f32 1e-06, %v2886_v19  ;;  %v2882_v34 = vadd.f32 %v2872_v16, %v2871_v36  ;;  %v5654_v19 = vld [vmem:[%s6703_s27 + $0x24] ss:$8 sps:$4 sm:$0xff]   ;;  %v5652_v16 = vld [vmem:[%s6703_s27 + $0x20] ss:$8 sps:$4 sm:$0xff]  }
 0xe6a   : > { %v5657_v36 = vld [vmem:[%s6703_s27 + $0x124] ss:$8 sps:$4 sm:$0xff]  }
 0xe6b   : > { %5760 = vrsqrt.f32 %v2890_v5  ;;  %2883 = vadd.xlane.f32.xlu1 %v2882_v34  ;;  %v5655_v5 = vld [vmem:[%s6703_s27 + $0x120] ss:$8 sps:$4 sm:$0xff]   ;;  %v5660_v34 = vld [vmem:[%s6703_s27 + $0x14] ss:$8 sps:$4 sm:$0xff]  }
 0xe74   : > { %v5759_v24 = vpop.eup %5758 }
 0xe75   : > { %v2898_v35 = vmul.f32 %v5759_v24, %v7335_v9  ;;  %v2897_v48 = vmul.f32 %v5759_v24, %v7332_v7  ;;  %v5658_v24 = vld [vmem:[%s6703_s27 + $0x10] ss:$8 sps:$4 sm:$0xff]  }
 0xe77   : > { %v2917_v9 = vmul.f32 %v7427_v42, %v2898_v35  ;;  %v2916_v32 = vmul.f32 %v7424_v54, %v2897_v48  ;;  %v5666_v35 = vld [vmem:[%s6703_s27 + $0x4] ss:$8 sps:$4 sm:$0xff]  }
 0xe78   : > { %v5761_v13 = vpop.eup %5760  ;;  %v5669_v48 = vld [vmem:[%s6703_s27 + $0x104] ss:$8 sps:$4 sm:$0xff]  }
 0xe79   : > { %v2900_v41 = vmul.f32 %v5761_v13, %v7349_v26  ;;  %v2899_v27 = vmul.f32 %v5761_v13, %v7346_v3  ;;  %v2936_v57 = vadd.f32 %v7434_v43, %v2917_v9  ;;  %v2935_v26 = vadd.f32 %v7431_v17, %v2916_v32  ;;  %v5664_v13 = vld [vmem:[%s6703_s27] ss:$8 sps:$4 sm:$0xff]   ;;  %v5672_v9 = vld [vmem:[%s6703_s27 + $0xf4] ss:$8 sps:$4 sm:$0xff]   ;;  %v5670_v32 = vld [vmem:[%s6703_s27 + $0xf0] ss:$8 sps:$4 sm:$0xff]  }
 0xe7b   : > { %v2919_v7 = vmul.f32 %v7427_v42, %v2900_v41  ;;  %v2918_v44 = vmul.f32 %v7424_v54, %v2899_v27  ;;  %v5667_v41 = vld [vmem:[%s6703_s27 + $0x100] ss:$8 sps:$4 sm:$0xff]   ;;  %v5675_v27 = vld [vmem:[%s6703_s27 + $0x1f4] ss:$8 sps:$4 sm:$0xff]  }
 0xe7d   : > { %v2938_v63 = vadd.f32 %v7434_v43, %v2919_v7  ;;  %v2937_v49 = vadd.f32 %v7431_v17, %v2918_v44  ;;  %v5673_v7 = vld [vmem:[%s6703_s27 + $0x1f0] ss:$8 sps:$4 sm:$0xff]  }
 0xe7f   : > { %v2944_v28 = vpack.c.bf16 %v2938_v63, %v2936_v57  ;;  %v2943_v3 = vpack.c.bf16 %v2937_v49, %v2935_v26  ;;  %v5678_v63 = vld [vmem:[%s6703_s27 + $0xe4] ss:$8 sps:$4 sm:$0xff]   ;;  %v5676_v49 = vld [vmem:[%s6703_s27 + $0xe0] ss:$8 sps:$4 sm:$0xff]  }
 0xe80   : > { %v5681_v26 = vld [vmem:[%s6703_s27 + $0x1e4] ss:$8 sps:$4 sm:$0xff]  }
 0xe81   : > { %3385 = vmatprep.mubr.bf16.mxu1 %v2944_v28  ;;  %3438 = vmatprep.mubr.bf16.mxu0 %v2944_v28  ;;  %v5679_v28 = vld [vmem:[%s6703_s27 + $0x1e0] ss:$8 sps:$4 sm:$0xff]  }
 0xe82   : > { %3386 = vmatmul.mubr.bf16.vlgmr.msra.gmra.mxu1 %v2943_v3  ;;  %3439 = vmatmul.mubr.bf16.vlgmr.msra.gmra.mxu0 %v2943_v3 }
 0xe83   : > { %4296 = vmatpush1.bf16.msra.mxu1 %v5622_v15  ;;  %4349 = vmatpush1.bf16.msra.mxu0 %v5625_v52  ;;  %v5684_v52 = vld [vmem:[%s6703_s27 + $0xd4] ss:$8 sps:$4 sm:$0xff]  }
 0xe84   : > { %4297 = vmatprep.subr.bf16.mxu1 %v5630_v10  ;;  %4350 = vmatprep.subr.bf16.mxu0 %v5633_v33  ;;  %v5682_v10 = vld [vmem:[%s6703_s27 + $0xd0] ss:$8 sps:$4 sm:$0xff]  }
 0xe85   : > { %v5685_v33 = vld [vmem:[%s6703_s27 + $0x1d0] ss:$8 sps:$4 sm:$0xff]  }
 0xe87   : > { %4298 = vmatpush1.bf16.msra.mxu1 %v5628_v37  ;;  %4351 = vmatpush1.bf16.msra.mxu0 %v5631_v38  ;;  %v5690_v38 = vld [vmem:[%s6703_s27 + $0xc4] ss:$8 sps:$4 sm:$0xff]  }
 0xe88   : > { %4299 = vmatprep.subr.bf16.mxu1 %v5636_v39  ;;  %4352 = vmatprep.subr.bf16.mxu0 %v5639_v46  ;;  %v5693_v39 = vld [vmem:[%s6703_s27 + $0x1c4] ss:$8 sps:$4 sm:$0xff]   ;;  %v5688_v46 = vld [vmem:[%s6703_s27 + $0xc0] ss:$8 sps:$4 sm:$0xff]  }
 0xe8b   : > { %4300 = vmatpush1.bf16.msra.mxu1 %v5634_v47  ;;  %4353 = vmatpush1.bf16.msra.mxu0 %v5637_v11  ;;  %v5691_v47 = vld [vmem:[%s6703_s27 + $0x1c0] ss:$8 sps:$4 sm:$0xff]   ;;  %v5696_v11 = vld [vmem:[%s6703_s27 + $0xb4] ss:$8 sps:$4 sm:$0xff]  }
 0xe8c   : > { %4301 = vmatprep.subr.bf16.mxu1 %v5642_v12  ;;  %4354 = vmatprep.subr.bf16.mxu0 %v5645_v53  ;;  %v5699_v12 = vld [vmem:[%s6703_s27 + $0x1b4] ss:$8 sps:$4 sm:$0xff]   ;;  %v5694_v53 = vld [vmem:[%s6703_s27 + $0xb0] ss:$8 sps:$4 sm:$0xff]  }
 0xe8f   : > { %4302 = vmatpush1.bf16.msra.mxu1 %v5640_v18  ;;  %4355 = vmatpush1.bf16.msra.mxu0 %v5643_v50  ;;  %v5697_v18 = vld [vmem:[%s6703_s27 + $0x1b0] ss:$8 sps:$4 sm:$0xff]   ;;  %v5702_v50 = vld [vmem:[%s6703_s27 + $0xa4] ss:$8 sps:$4 sm:$0xff]  }
 0xe90   : > { %4303 = vmatprep.subr.bf16.mxu1 %v5648_v45  ;;  %4356 = vmatprep.subr.bf16.mxu0 %v5651_v20  ;;  %v5705_v45 = vld [vmem:[%s6703_s27 + $0x1a4] ss:$8 sps:$4 sm:$0xff]  }
 0xe93   : > { %4304 = vmatpush1.bf16.msra.mxu1 %v5646_v59  ;;  %4357 = vmatpush1.bf16.msra.mxu0 %v5649_v29  ;;  %v5700_v59 = vld [vmem:[%s6703_s27 + $0xa0] ss:$8 sps:$4 sm:$0xff]  }
 0xe94   : > { %4305 = vmatprep.subr.bf16.mxu1 %v5654_v19  ;;  %4358 = vmatprep.subr.bf16.mxu0 %v5657_v36  ;;  %v5703_v29 = vld [vmem:[%s6703_s27 + $0x1a0] ss:$8 sps:$4 sm:$0xff]  }
 0xe97   : > { %4306 = vmatpush1.bf16.msra.mxu1 %v5652_v16  ;;  %4359 = vmatpush1.bf16.msra.mxu0 %v5655_v5  ;;  %v5708_v16 = vld [vmem:[%s6703_s27 + $0x94] ss:$8 sps:$4 sm:$0xff]  }
 0xe98   : > { %4307 = vmatprep.subr.bf16.mxu1 %v5660_v34  ;;  %4360 = vmatprep.subr.bf16.mxu0 %v5663_v23  ;;  %v5711_v5 = vld [vmem:[%s6703_s27 + $0x194] ss:$8 sps:$4 sm:$0xff]  }
 0xe9b   : > { %4308 = vmatpush1.bf16.msra.mxu1 %v5658_v24  ;;  %4361 = vmatpush1.bf16.msra.mxu0 %v5661_v25  ;;  %v5706_v24 = vld [vmem:[%s6703_s27 + $0x90] ss:$8 sps:$4 sm:$0xff]  }
 0xe9c   : > { %4309 = vmatprep.subr.bf16.mxu1 %v5666_v35  ;;  %4362 = vmatprep.subr.bf16.mxu0 %v5669_v48  ;;  %v5709_v25 = vld [vmem:[%s6703_s27 + $0x190] ss:$8 sps:$4 sm:$0xff]  }
 0xe9f   : > { %4310 = vmatpush1.bf16.msra.mxu1 %v5664_v13  ;;  %4363 = vmatpush1.bf16.msra.mxu0 %v5667_v41  ;;  %v5714_v41 = vld [vmem:[%s6703_s27 + $0x84] ss:$8 sps:$4 sm:$0xff]  }
 0xea0   : > { %4311 = vmatprep.subr.bf16.mxu1 %v5672_v9  ;;  %4364 = vmatprep.subr.bf16.mxu0 %v5675_v27  ;;  %v5717_v9 = vld [vmem:[%s6703_s27 + $0x184] ss:$8 sps:$4 sm:$0xff]  }
 0xea3   : > { %4312 = vmatpush2.bf16.msra.mxu1 %v5670_v32  ;;  %4365 = vmatpush2.bf16.msra.mxu0 %v5673_v7  ;;  %v5712_v32 = vld [vmem:[%s6703_s27 + $0x80] ss:$8 sps:$4 sm:$0xff]  }
 0xea4   : > { %4313 = vmatprep.subr.bf16.mxu1 %v5678_v63  ;;  %4366 = vmatprep.subr.bf16.mxu0 %v5681_v26  ;;  %v5715_v7 = vld [vmem:[%s6703_s27 + $0x180] ss:$8 sps:$4 sm:$0xff]  }
 0xea7   : > { %4314 = vmatpush2.bf16.msra.mxu1 %v5676_v49  ;;  %4367 = vmatpush2.bf16.msra.mxu0 %v5679_v28 }
 0xea8   : > { %4315 = vmatprep.subr.bf16.mxu1 %v5684_v52  ;;  %4368 = vmatprep.subr.bf16.mxu0 %v5687_v60 }
 0xeab   : > { %4316 = vmatpush2.bf16.msra.mxu1 %v5682_v10  ;;  %4369 = vmatpush2.bf16.msra.mxu0 %v5685_v33 }
 0xeac   : > { %4317 = vmatprep.subr.bf16.mxu1 %v5690_v38  ;;  %4370 = vmatprep.subr.bf16.mxu0 %v5693_v39 }
 0xeaf   : > { %4318 = vmatpush2.bf16.msra.mxu1 %v5688_v46  ;;  %4371 = vmatpush2.bf16.msra.mxu0 %v5691_v47 }
 0xeb0   : > { %4319 = vmatprep.subr.bf16.mxu1 %v5696_v11  ;;  %4372 = vmatprep.subr.bf16.mxu0 %v5699_v12 }
 0xeb3   : > { %4320 = vmatpush2.bf16.msra.mxu1 %v5694_v53  ;;  %4373 = vmatpush2.bf16.msra.mxu0 %v5697_v18 }
 0xeb4   : > { %4321 = vmatprep.subr.bf16.mxu1 %v5702_v50  ;;  %4374 = vmatprep.subr.bf16.mxu0 %v5705_v45 }
 0xeb7   : > { %4322 = vmatpush2.bf16.msra.mxu1 %v5700_v59  ;;  %4375 = vmatpush2.bf16.msra.mxu0 %v5703_v29 }
 0xeb8   : > { %4323 = vmatprep.subr.bf16.mxu1 %v5708_v16  ;;  %4376 = vmatprep.subr.bf16.mxu0 %v5711_v5 }
 0xebb   : > { %4324 = vmatpush2.bf16.msra.mxu1 %v5706_v24  ;;  %4377 = vmatpush2.bf16.msra.mxu0 %v5709_v25 }
 0xebc   : > { %4325 = vmatprep.subr.bf16.mxu1 %v5714_v41  ;;  %4378 = vmatprep.subr.bf16.mxu0 %v5717_v9 }
 0xebf   : > { %4326 = vmatpush2.bf16.msra.mxu1 %v5712_v32  ;;  %4379 = vmatpush2.bf16.msra.mxu0 %v5715_v7 }
 0xef0   : > { %v2881_v44 = vpop.xlane.xlu0 %2880 }
 0xef1   : > { %v2887_v57 = vmul.f32 0.00390625, %v2881_v44 }
 0xef3   : > { %v2891_v3 = vadd.f32 1e-06, %v2887_v57 }
 0xef4   : > { %v2884_v15 = vpop.xlane.xlu1 %2883 }
 0xef5   : > { %5762 = vrsqrt.f32 %v2891_v3  ;;  %v2888_v6 = vmul.f32 0.00390625, %v2884_v15 }
 0xef7   : > { %v2892_v37 = vadd.f32 1e-06, %v2888_v6 }
 0xef9   : > { %5764 = vrsqrt.f32 %v2892_v37 }
 0xf02   : > { %v5763_v20 = vpop.eup %5762 }
 0xf03   : > { %v2902_v19 = vmul.f32 %v5763_v20, %v7399_v8  ;;  %v2901_v36 = vmul.f32 %v5763_v20, %v7396_v4 }
 0xf05   : > { %v2921_v23 = vmul.f32 %v7427_v42, %v2902_v19  ;;  %v2920_v4 = vmul.f32 %v7424_v54, %v2901_v36 }
 0xf06   : > { %v5765_v34 = vpop.eup %5764 }
 0xf07   : > { %v2904_v35 = vmul.f32 %v5765_v34, %v7409_v22  ;;  %v2903_v8 = vmul.f32 %v5765_v34, %v7406_v21  ;;  %v2940_v27 = vadd.f32 %v7434_v43, %v2921_v23  ;;  %v2939_v21 = vadd.f32 %v7431_v17, %v2920_v4 }
 0xf09   : > { %v2923_v48 = vmul.f32 %v7427_v42, %v2904_v35  ;;  %v2922_v13 = vmul.f32 %v7424_v54, %v2903_v8  ;;  %v3011_v54 = vld [vmem:[%s6697_s7] sm:$0xf] }
 0xf0a   : > { %v7524_v63 = vrot.slane %v3011_v54, %v6864_v62  ;;  %v7531_v49 = vrot.slane %v3011_v54, %v6861_v61  ;;  %v7535_v28 = vrot.slane %v3011_v54, %v1115_v30 }
 0xf0b   : > { %v2942_v22 = vadd.f32 %v7434_v43, %v2923_v48  ;;  %v2941_v44 = vadd.f32 %v7431_v17, %v2922_v13  ;;  %v7528_v43 = vrot.slane %v3011_v54, %v1111_v51 }
 0xf0d   : > { %v2946_v42 = vpack.c.bf16 %v2942_v22, %v2940_v27  ;;  %v2945_v57 = vpack.c.bf16 %v2941_v44, %v2939_v21 }
 0xf0f   : > { %3395 = vmatprep.mubr.bf16.mxu1 %v2946_v42  ;;  %3448 = vmatprep.mubr.bf16.mxu0 %v2946_v42 }
 0xf10   : > { %3396 = vmatmul.mubr.bf16.gmra.mxu1 %v2945_v57  ;;  %3449 = vmatmul.mubr.bf16.gmra.mxu0 %v2945_v57 }
 0xf42   : > { %v3387_v26 = vpop.f32.mrf.mxu1  ;;  %v3440_v17 = vpop.f32.mrf.mxu0 }
 0xf43   : > { %v7538_v3 = vadd.f32 %v3387_v26, %v7524_v63  ;;  %v7541_v15 = vadd.f32 %v3440_v17, %v7528_v43 }
 0xf44   : > { %v3389_v6 = vpop.f32.mrf.mxu1  ;;  %v3442_v52 = vpop.f32.mrf.mxu0 }
 0xf45   : > { %v7544_v51 = vmul.f32 0.70710677, %v7538_v3  ;;  %v7547_v60 = vmul.f32 0.70710677, %v7541_v15  ;;  %v7550_v10 = vadd.f32 %v3389_v6, %v7531_v49  ;;  %v7553_v55 = vadd.f32 %v3442_v52, %v7535_v28 }
 0xf46   : > { %v3391_v47 = vpop.f32.mrf.mxu1  ;;  %v3444_v59 = vpop.f32.mrf.mxu0 }
 0xf47   : > { %v3491_v30 = vand.u32 2147483647, %v7544_v51  ;;  %v3493_v33 = vand.u32 2147483647, %v7547_v60  ;;  %v7558_v37 = vmul.f32 0.70710677, %v7550_v10  ;;  %v7566_v20 = vadd.f32 %v3391_v47, %v7524_v63 }
 0xf48   : > { %v7561_v38 = vmul.f32 0.70710677, %v7553_v55  ;;  %v3393_v29 = vpop.f32.mrf.mxu1  ;;  %v7572_v5 = vadd.f32 %v3444_v59, %v7528_v43  ;;  %v3446_v24 = vpop.f32.mrf.mxu0  ;;  %vm3811_vm3 = vcmp.lt.f32.partialorder %v7544_v51, 0.0  ;;  %vm3813_vm5 = vcmp.lt.f32.partialorder %v7547_v60, 0.0 }
 0xf49   : > { %v3507_v39 = vmul.f32 0.3275911, %v3491_v30  ;;  %v3509_v46 = vmul.f32 0.3275911, %v3493_v33  ;;  %v3492_v11 = vand.u32 2147483647, %v7558_v37  ;;  %v7575_v34 = vadd.f32 %v3393_v29, %v7531_v49 }
 0xf4a   : > { %v3494_v12 = vand.u32 2147483647, %v7561_v38  ;;  %v7569_v16 = vmul.f32 0.70710677, %v7566_v20  ;;  %v7579_v25 = vmul.f32 0.70710677, %v7572_v5  ;;  %v7586_v48 = vadd.f32 %v3446_v24, %v7535_v28 }
 0xf4b   : > { %v3523_v53 = vadd.f32 1.0, %v3507_v39  ;;  %v3525_v18 = vadd.f32 1.0, %v3509_v46  ;;  %v3508_v50 = vmul.f32 0.3275911, %v3492_v11  ;;  %v7582_v8 = vmul.f32 0.70710677, %v7575_v34 }
 0xf4c   : > { %v3510_v45 = vmul.f32 0.3275911, %v3494_v12  ;;  %v3495_v23 = vand.u32 2147483647, %v7569_v16  ;;  %v3497_v4 = vand.u32 2147483647, %v7579_v25  ;;  %v3715_v13 = vmul.f32 %v3491_v30, %v3491_v30 }
 0xf4d   : > { %5766 = vrcp.f32 %v3523_v53  ;;  %v3524_v19 = vadd.f32 1.0, %v3508_v50  ;;  %v3496_v9 = vand.u32 2147483647, %v7582_v8  ;;  %v7590_v32 = vmul.f32 0.70710677, %v7586_v48 }
 0xf4e   : > { %5768 = vrcp.f32 %v3525_v18  ;;  %v3526_v36 = vadd.f32 1.0, %v3510_v45  ;;  %v3511_v35 = vmul.f32 0.3275911, %v3495_v23  ;;  %v3513_v27 = vmul.f32 0.3275911, %v3497_v4 }
 0xf4f   : > { %5770 = vrcp.f32 %v3524_v19  ;;  %v3717_v7 = vmul.f32 %v3493_v33, %v3493_v33  ;;  %v3512_v22 = vmul.f32 0.3275911, %v3496_v9  ;;  %v3716_v21 = vmul.f32 %v3492_v11, %v3492_v11 }
 0xf50   : > { %5772 = vrcp.f32 %v3526_v36  ;;  %v3527_v41 = vadd.f32 1.0, %v3511_v35  ;;  %v3529_v44 = vadd.f32 1.0, %v3513_v27  ;;  %v3498_v42 = vand.u32 2147483647, %v7590_v32 }
 0xf51   : > { %v3731_v57 = vsub.f32 0.0, %v3715_v13  ;;  %v3528_v54 = vadd.f32 1.0, %v3512_v22  ;;  %v3718_v17 = vmul.f32 %v3494_v12, %v3494_v12  ;;  %v3733_v39 = vsub.f32 0.0, %v3717_v7 }
 0xf52   : > { %5774 = vrcp.f32 %v3527_v41  ;;  %v3514_v6 = vmul.f32 0.3275911, %v3498_v42  ;;  %v3732_v46 = vsub.f32 0.0, %v3716_v21  ;;  %v3719_v47 = vmul.f32 %v3495_v23, %v3495_v23 }
 0xf53   : > { %5776 = vrcp.f32 %v3529_v44  ;;  %v3747_v18 = vmul.f32 1.442695, %v3731_v57  ;;  %v3734_v59 = vsub.f32 0.0, %v3718_v17  ;;  %v3721_v12 = vmul.f32 %v3497_v4, %v3497_v4 }
 0xf54   : > { %5778 = vrcp.f32 %v3528_v54  ;;  %v3530_v11 = vadd.f32 1.0, %v3514_v6  ;;  %v3751_v19 = vmul.f32 1.442695, %v3733_v39  ;;  %v3749_v13 = vmul.f32 1.442695, %v3732_v46 }
 0xf55   : > { %v3735_v23 = vsub.f32 0.0, %v3719_v47  ;;  %v3720_v41 = vmul.f32 %v3496_v9, %v3496_v9  ;;  %v3753_v4 = vmul.f32 1.442695, %v3734_v59  ;;  %v3737_v44 = vsub.f32 0.0, %v3721_v12 }
 0xf56   : > { %5780 = vrcp.f32 %v3530_v11  ;;  %vm3815_vm2 = vcmp.lt.f32.partialorder %v7569_v16, 0.0  ;;  %vm3812_vm4 = vcmp.lt.f32.partialorder %v7558_v37, 0.0  ;;  %vm3814_vm6 = vcmp.lt.f32.partialorder %v7561_v38, 0.0 }
 0xf57   : > { %5782 = vpow2.f32 %v3747_v18  ;;  %v3755_v9 = vmul.f32 1.442695, %v3735_v23  ;;  %v3736_v39 = vsub.f32 0.0, %v3720_v41  ;;  %v3722_v18 = vmul.f32 %v3498_v42, %v3498_v42 }
 0xf58   : > { %5784 = vpow2.f32 %v3751_v19  ;;  %vm3817_vm7 = vcmp.lt.f32.partialorder %v7579_v25, 0.0  ;;  %vm3816_vm8 = vcmp.lt.f32.partialorder %v7582_v8, 0.0  ;;  %v3459_v38 = vmul.f32 0.5, %v7538_v3 }
 0xf59   : > { %5786 = vpow2.f32 %v3749_v13  ;;  %v3757_v42 = vmul.f32 1.442695, %v3736_v39  ;;  %vm3818_vm9 = vcmp.lt.f32.partialorder %v7590_v32, 0.0  ;;  %v3466_v60 = vmul.f32 0.5, %v7586_v48 }
 0xf5a   : > { %v7593_v26 = vpop.eup %5766  ;;  %5788 = vpow2.f32 %v3753_v4 }
 0xf5b   : > { %v7595_v52 = vpop.eup %5768  ;;  %v3571_v30 = vmul.f32 1.0614054, %v7593_v26  ;;  %5790 = vpow2.f32 %v3755_v9 }
 0xf5c   : > { %v3573_v33 = vmul.f32 1.0614054, %v7595_v52  ;;  %v7599_v50 = vpop.eup %5770 }
 0xf5d   : > { %v3587_v53 = vadd.f32 -1.4531521, %v3571_v30  ;;  %v3572_v36 = vmul.f32 1.0614054, %v7599_v50  ;;  %v7603_v24 = vpop.eup %5772 }
 0xf5e   : > { %v3589_v45 = vadd.f32 -1.4531521, %v3573_v33  ;;  %v3574_v22 = vmul.f32 1.0614054, %v7603_v24 }
 0xf5f   : > { %v3603_v29 = vmul.f32 %v7593_v26, %v3587_v53  ;;  %v3588_v7 = vadd.f32 -1.4531521, %v3572_v36  ;;  %v7609_v6 = vpop.eup %5774  ;;  %v3759_v53 = vmul.f32 1.442695, %v3737_v44 }
 0xf60   : > { %v3605_v35 = vmul.f32 %v7595_v52, %v3589_v45  ;;  %v3590_v17 = vadd.f32 -1.4531521, %v3574_v22  ;;  %v3575_v11 = vmul.f32 1.0614054, %v7609_v6  ;;  %v7614_v45 = vpop.eup %5776 }
 0xf61   : > { %v3619_v27 = vadd.f32 1.4214138, %v3603_v29  ;;  %v3604_v54 = vmul.f32 %v7599_v50, %v3588_v7  ;;  %v7618_v36 = vpop.eup %5778  ;;  %v3577_v13 = vmul.f32 1.0614054, %v7614_v45  ;;  %5792 = vpow2.f32 %v3759_v53 }
 0xf62   : > { %v3621_v21 = vadd.f32 1.4214138, %v3605_v35  ;;  %v3606_v47 = vmul.f32 %v7603_v24, %v3590_v17  ;;  %v3591_v19 = vadd.f32 -1.4531521, %v3575_v11  ;;  %v3576_v22 = vmul.f32 1.0614054, %v7618_v36 }
 0xf63   : > { %v3635_v57 = vmul.f32 %v7593_v26, %v3619_v27  ;;  %v3620_v46 = vadd.f32 1.4214138, %v3604_v54  ;;  %v3593_v7 = vadd.f32 -1.4531521, %v3577_v13  ;;  %v7624_v4 = vpop.eup %5780  ;;  %5794 = vpow2.f32 %v3757_v42 }
 0xf64   : > { %v3637_v30 = vmul.f32 %v7595_v52, %v3621_v21  ;;  %v3622_v29 = vadd.f32 1.4214138, %v3606_v47  ;;  %v3607_v27 = vmul.f32 %v7609_v6, %v3591_v19  ;;  %v3738_v21 = vsub.f32 0.0, %v3722_v18 }
 0xf65   : > { %v3651_v33 = vadd.f32 -0.28449672, %v3635_v57  ;;  %v3636_v12 = vmul.f32 %v7599_v50, %v3620_v46  ;;  %v3609_v9 = vmul.f32 %v7614_v45, %v3593_v7  ;;  %v3578_v46 = vmul.f32 1.0614054, %v7624_v4 }
 0xf66   : > { %v3653_v35 = vadd.f32 -0.28449672, %v3637_v30  ;;  %v3638_v41 = vmul.f32 %v7603_v24, %v3622_v29  ;;  %v3623_v17 = vadd.f32 1.4214138, %v3607_v27  ;;  %v5783_v29 = vpop.eup %5782 }
 0xf67   : > { %v3667_v59 = vmul.f32 %v7593_v26, %v3651_v33  ;;  %v3652_v23 = vadd.f32 -0.28449672, %v3636_v12  ;;  %v3592_v33 = vadd.f32 -1.4531521, %v3576_v22  ;;  %v3625_v53 = vadd.f32 1.4214138, %v3609_v9 }
 0xf68   : > { %v3654_v54 = vadd.f32 -0.28449672, %v3638_v41  ;;  %v3669_v30 = vmul.f32 %v7595_v52, %v3653_v35  ;;  %v3639_v11 = vmul.f32 %v7609_v6, %v3623_v17  ;;  %v3761_v12 = vmul.f32 1.442695, %v3738_v21  ;;  %v5785_v41 = vpop.eup %5784 }
 0xf69   : > { %v3683_v44 = vadd.f32 0.2548296, %v3667_v59  ;;  %v3668_v57 = vmul.f32 %v7599_v50, %v3652_v23  ;;  %v3608_v18 = vmul.f32 %v7618_v36, %v3592_v33  ;;  %v3594_v59 = vadd.f32 -1.4531521, %v3578_v46  ;;  %v5787_v42 = vpop.eup %5786 }
 0xf6a   : > { %v3670_v47 = vmul.f32 %v7603_v24, %v3654_v54  ;;  %v3655_v23 = vadd.f32 -0.28449672, %v3639_v11  ;;  %v3685_v27 = vadd.f32 0.2548296, %v3669_v30  ;;  %v3641_v7 = vmul.f32 %v7614_v45, %v3625_v53 }
 0xf6b   : > { %v3684_v39 = vadd.f32 0.2548296, %v3668_v57  ;;  %v3699_v19 = vmul.f32 %v7593_v26, %v3683_v44  ;;  %v3624_v22 = vadd.f32 1.4214138, %v3608_v18  ;;  %v3610_v57 = vmul.f32 %v7624_v4, %v3594_v59  ;;  %v5789_v26 = vpop.eup %5788 }
 0xf6c   : > { %v3686_v13 = vadd.f32 0.2548296, %v3670_v47  ;;  %v3671_v54 = vmul.f32 %v7609_v6, %v3655_v23  ;;  %v3657_v9 = vadd.f32 -0.28449672, %v3641_v7  ;;  %5796 = vpow2.f32 %v3761_v12  ;;  %v5791_v11 = vpop.eup %5790 }
 0xf6d   : > { %v3700_v35 = vmul.f32 %v7599_v50, %v3684_v39  ;;  %v3640_v21 = vmul.f32 %v7618_v36, %v3624_v22  ;;  %v3626_v33 = vadd.f32 1.4214138, %v3610_v57  ;;  %v3779_v44 = vmul.f32 %v5783_v29, %v3699_v19 }
 0xf6e   : > { %v3702_v50 = vmul.f32 %v7603_v24, %v3686_v13  ;;  %v3687_v46 = vadd.f32 0.2548296, %v3671_v54  ;;  %v3701_v30 = vmul.f32 %v7595_v52, %v3685_v27  ;;  %v3673_v39 = vmul.f32 %v7614_v45, %v3657_v9  ;;  %v5793_v7 = vpop.eup %5792 }
 0xf6f   : > { %v3780_v17 = vmul.f32 %v5787_v42, %v3700_v35  ;;  %v3656_v47 = vadd.f32 -0.28449672, %v3640_v21  ;;  %v3642_v23 = vmul.f32 %v7624_v4, %v3626_v33  ;;  %v3795_v29 = vsub.f32 1.0, %v3779_v44 }
 0xf70   : > { %v3703_v53 = vmul.f32 %v7609_v6, %v3687_v46  ;;  %v3689_v59 = vadd.f32 0.2548296, %v3673_v39  ;;  %v3782_v19 = vmul.f32 %v5789_v26, %v3702_v50  ;;  %v3781_v13 = vmul.f32 %v5785_v41, %v3701_v30  ;;  %v5795_v57 = vpop.eup %5794 }
 0xf71   : > { %v3796_v18 = vsub.f32 1.0, %v3780_v17  ;;  %v3672_v35 = vmul.f32 %v7618_v36, %v3656_v47  ;;  %v3658_v27 = vadd.f32 -0.28449672, %v3642_v23  ;;  %v3827_v17 = vsub.f32 0.0, %v3795_v29 }
 0xf72   : > { %v3783_v24 = vmul.f32 %v5791_v11, %v3703_v53  ;;  %v3705_v12 = vmul.f32 %v7614_v45, %v3689_v59  ;;  %v3798_v9 = vsub.f32 1.0, %v3782_v19  ;;  %v3797_v46 = vsub.f32 1.0, %v3781_v13 }
 0xf73   : > { %v3688_v52 = vadd.f32 0.2548296, %v3672_v35  ;;  %v3828_v42 = vsub.f32 0.0, %v3796_v18  ;;  %v3674_v33 = vmul.f32 %v7624_v4, %v3658_v27  ;;  %v3843_v39 = vsel %vm3811_vm3, %v3827_v17, %v3795_v29 }
 0xf74   : > { %v3799_v22 = vsub.f32 1.0, %v3783_v24  ;;  %v3785_v54 = vmul.f32 %v5793_v7, %v3705_v12  ;;  %v3460_v47 = vmul.f32 0.5, %v7550_v10  ;;  %v3830_v11 = vsub.f32 0.0, %v3798_v9 }
 0xf75   : > { %v3704_v6 = vmul.f32 %v7618_v36, %v3688_v52  ;;  %v3690_v44 = vadd.f32 0.2548296, %v3674_v33  ;;  %v3844_v50 = vsel %vm3812_vm4, %v3828_v42, %v3796_v18  ;;  %v3829_v59 = vsub.f32 0.0, %v3797_v46 }
 0xf76   : > { %v3831_v21 = vsub.f32 0.0, %v3799_v22  ;;  %v3801_v26 = vsub.f32 1.0, %v3785_v54  ;;  %v3860_v37 = vadd.f32 1.0, %v3844_v50  ;;  %v3859_v23 = vadd.f32 1.0, %v3843_v39 }
 0xf77   : > { %v3784_v41 = vmul.f32 %v5795_v57, %v3704_v6  ;;  %v3706_v53 = vmul.f32 %v7624_v4, %v3690_v44  ;;  %v3463_v7 = vmul.f32 0.5, %v7566_v20  ;;  %v3846_v19 = vsel %vm3814_vm6, %v3830_v11, %v3798_v9 }
 0xf78   : > { %v3847_v45 = vsel %vm3815_vm2, %v3831_v21, %v3799_v22  ;;  %v3833_v36 = vsub.f32 0.0, %v3801_v26  ;;  %v3464_v4 = vmul.f32 0.5, %v7575_v34  ;;  %v3845_v12 = vsel %vm3813_vm5, %v3829_v59, %v3797_v46 }
 0xf79   : > { %v3800_v30 = vsub.f32 1.0, %v3784_v41  ;;  %v5797_v16 = vpop.eup %5796  ;;  %v3863_v51 = vadd.f32 1.0, %v3847_v45  ;;  %v3876_v25 = vmul.f32 %v3860_v37, %v3460_v47  ;;  %v3875_v57 = vmul.f32 %v3859_v23, %v3459_v38 }
 0xf7a   : > { %v3786_v18 = vmul.f32 %v5797_v16, %v3706_v53  ;;  %v3849_v29 = vsel %vm3817_vm7, %v3833_v36, %v3801_v26  ;;  %v3862_v42 = vadd.f32 1.0, %v3846_v19  ;;  %v3861_v20 = vadd.f32 1.0, %v3845_v12 }
 0xf7b   : > { %v3832_v35 = vsub.f32 0.0, %v3800_v30  ;;  %v3879_v52 = vmul.f32 %v3863_v51, %v3463_v7  ;;  %v3865_v27 = vadd.f32 1.0, %v3849_v29  ;;  %v3465_v54 = vmul.f32 0.5, %v7572_v5 }
 0xf7c   : > { %v3802_v13 = vsub.f32 1.0, %v3786_v18  ;;  %v3462_v17 = vmul.f32 0.5, %v7553_v55  ;;  %v3461_v21 = vmul.f32 0.5, %v7541_v15 }
 0xf7d   : > { %v3848_v10 = vsel %vm3816_vm8, %v3832_v35, %v3800_v30  ;;  %v3891_v3 = vpack.c.bf16 %v3879_v52, %v3875_v57  ;;  %v3881_v33 = vmul.f32 %v3865_v27, %v3465_v54 }
 0xf7e   : > { %v3864_v24 = vadd.f32 1.0, %v3848_v10  ;;  %v3834_v22 = vsub.f32 0.0, %v3802_v13  ;;  %v3878_v46 = vmul.f32 %v3862_v42, %v3462_v17  ;;  %v3877_v41 = vmul.f32 %v3861_v20, %v3461_v21 }
 0xf80   : > { %v3880_v8 = vmul.f32 %v3864_v24, %v3464_v4  ;;  %v3850_v34 = vsel %vm3818_vm9, %v3834_v22, %v3802_v13  ;;  %v3893_v45 = vpack.c.bf16 %v3881_v33, %v3877_v41 }
 0xf81   : > { %v3866_v9 = vadd.f32 1.0, %v3850_v34 }
 0xf82   : > { %v3892_v6 = vpack.c.bf16 %v3880_v8, %v3876_v25 }
 0xf83   : > { %v3882_v26 = vmul.f32 %v3866_v9, %v3466_v60 }
 0xf84   : > { %4327 = vmatprep.mubr.bf16.mxu1 %v3892_v6 }
 0xf85   : > { %4328 = vmatmul.mubr.bf16.vlgmr.msra.gmra.mxu1 %v3891_v3  ;;  %v3894_v32 = vpack.c.bf16 %v3882_v26, %v3878_v46 }
 0xf87   : > { %4380 = vmatprep.mubr.bf16.mxu0 %v3894_v32 }
 0xf88   : > { %4381 = vmatmul.mubr.bf16.vlgmr.msra.gmra.mxu0 %v3893_v45 }
 0xfd0   : > { %v3397_v5 = vpop.f32.mrf.mxu1  ;;  %v3450_v44 = vpop.f32.mrf.mxu0 }
 0xfd1   : > { %v7668_v55 = vadd.f32 %v3397_v5, %v7524_v63  ;;  %v7671_v48 = vadd.f32 %v3450_v44, %v7528_v43 }
 0xfd2   : > { %v3399_v50 = vpop.f32.mrf.mxu1  ;;  %v3452_v15 = vpop.f32.mrf.mxu0 }
 0xfd3   : > { %v7674_v36 = vmul.f32 0.70710677, %v7668_v55  ;;  %v7677_v30 = vmul.f32 0.70710677, %v7671_v48  ;;  %v7680_v39 = vadd.f32 %v3399_v50, %v7531_v49  ;;  %v7683_v47 = vadd.f32 %v3452_v15, %v7535_v28 }
 0xfd4   : > { %v3401_v37 = vpop.f32.mrf.mxu1  ;;  %v3454_v24 = vpop.f32.mrf.mxu0 }
 0xfd5   : > { %v3499_v11 = vand.u32 2147483647, %v7674_v36  ;;  %v3501_v53 = vand.u32 2147483647, %v7677_v30  ;;  %v7688_v16 = vmul.f32 0.70710677, %v7680_v39  ;;  %v7696_v4 = vadd.f32 %v3401_v37, %v7524_v63 }
 0xfd6   : > { %v7691_v59 = vmul.f32 0.70710677, %v7683_v47  ;;  %v3403_v13 = vpop.f32.mrf.mxu1  ;;  %v7702_v25 = vadd.f32 %v3454_v24, %v7528_v43  ;;  %v3456_v22 = vpop.f32.mrf.mxu0  ;;  %vm3819_vm11 = vcmp.lt.f32.partialorder %v7674_v36, 0.0  ;;  %vm3821_vm13 = vcmp.lt.f32.partialorder %v7677_v30, 0.0 }
 0xfd7   : > { %v3515_v51 = vmul.f32 0.3275911, %v3499_v11  ;;  %v3517_v35 = vmul.f32 0.3275911, %v3501_v53  ;;  %v3500_v18 = vand.u32 2147483647, %v7688_v16  ;;  %v7705_v27 = vadd.f32 %v3403_v13, %v7531_v49 }
 0xfd8   : > { %v3502_v23 = vand.u32 2147483647, %v7691_v59  ;;  %v7699_v52 = vmul.f32 0.70710677, %v7696_v4  ;;  %v7709_v63 = vmul.f32 0.70710677, %v7702_v25  ;;  %v7716_v43 = vadd.f32 %v3456_v22, %v7535_v28 }
 0xfd9   : > { %v3531_v7 = vadd.f32 1.0, %v3515_v51  ;;  %v3533_v29 = vadd.f32 1.0, %v3517_v35  ;;  %v3516_v10 = vmul.f32 0.3275911, %v3500_v18  ;;  %v7712_v42 = vmul.f32 0.70710677, %v7705_v27 }
 0xfda   : > { %v3518_v19 = vmul.f32 0.3275911, %v3502_v23  ;;  %v3503_v8 = vand.u32 2147483647, %v7699_v52  ;;  %v3505_v20 = vand.u32 2147483647, %v7709_v63  ;;  %v3723_v54 = vmul.f32 %v3499_v11, %v3499_v11 }
 0xfdb   : > { %5798 = vrcp.f32 %v3531_v7  ;;  %v3532_v38 = vadd.f32 1.0, %v3516_v10  ;;  %v3504_v34 = vand.u32 2147483647, %v7712_v42  ;;  %v7720_v17 = vmul.f32 0.70710677, %v7716_v43 }
 0xfdc   : > { %5800 = vrcp.f32 %v3533_v29  ;;  %v3534_v12 = vadd.f32 1.0, %v3518_v19  ;;  %v3519_v57 = vmul.f32 0.3275911, %v3503_v8  ;;  %v3521_v6 = vmul.f32 0.3275911, %v3505_v20 }
 0xfdd   : > { %5802 = vrcp.f32 %v3532_v38  ;;  %v3725_v3 = vmul.f32 %v3501_v53, %v3501_v53  ;;  %v3520_v60 = vmul.f32 0.3275911, %v3504_v34  ;;  %v3724_v9 = vmul.f32 %v3500_v18, %v3500_v18 }
 0xfde   : > { %5804 = vrcp.f32 %v3534_v12  ;;  %v3535_v49 = vadd.f32 1.0, %v3519_v57  ;;  %v3537_v21 = vadd.f32 1.0, %v3521_v6  ;;  %v3506_v33 = vand.u32 2147483647, %v7720_v17 }
 0xfdf   : > { %v3739_v46 = vsub.f32 0.0, %v3723_v54  ;;  %v3536_v26 = vadd.f32 1.0, %v3520_v60  ;;  %v3726_v28 = vmul.f32 %v3502_v23, %v3502_v23  ;;  %v3741_v44 = vsub.f32 0.0, %v3725_v3 }
 0xfe0   : > { %5806 = vrcp.f32 %v3535_v49  ;;  %v3522_v32 = vmul.f32 0.3275911, %v3506_v33  ;;  %v3740_v15 = vsub.f32 0.0, %v3724_v9  ;;  %v3727_v11 = vmul.f32 %v3503_v8, %v3503_v8 }
 0xfe1   : > { %5808 = vrcp.f32 %v3537_v21  ;;  %v3763_v35 = vmul.f32 1.442695, %v3739_v46  ;;  %v3742_v7 = vsub.f32 0.0, %v3726_v28  ;;  %v3729_v23 = vmul.f32 %v3505_v20, %v3505_v20 }
 0xfe2   : > { %5810 = vrcp.f32 %v3536_v26  ;;  %v3538_v53 = vadd.f32 1.0, %v3522_v32  ;;  %v3767_v10 = vmul.f32 1.442695, %v3741_v44  ;;  %v3765_v38 = vmul.f32 1.442695, %v3740_v15 }
 0xfe3   : > { %v3743_v12 = vsub.f32 0.0, %v3727_v11  ;;  %v3728_v8 = vmul.f32 %v3504_v34, %v3504_v34  ;;  %v3769_v20 = vmul.f32 1.442695, %v3742_v7  ;;  %v3745_v6 = vsub.f32 0.0, %v3729_v23 }
 0xfe4   : > { %5812 = vrcp.f32 %v3538_v53  ;;  %v3730_v15 = vmul.f32 %v3506_v33, %v3506_v33  ;;  %vm3823_vm10 = vcmp.lt.f32.partialorder %v7699_v52, 0.0  ;;  %vm3820_vm12 = vcmp.lt.f32.partialorder %v7688_v16, 0.0 }
 0xfe5   : > { %5814 = vpow2.f32 %v3763_v35  ;;  %v3771_v34 = vmul.f32 1.442695, %v3743_v12  ;;  %v3744_v26 = vsub.f32 0.0, %v3728_v8  ;;  %vm3822_vm14 = vcmp.lt.f32.partialorder %v7691_v59, 0.0 }
 0xfe6   : > { %5816 = vpow2.f32 %v3767_v10  ;;  %v3746_v8 = vsub.f32 0.0, %v3730_v15  ;;  %vm3825_vm15 = vcmp.lt.f32.partialorder %v7709_v63, 0.0  ;;  %vm3824_vm0 = vcmp.lt.f32.partialorder %v7712_v42, 0.0 }
 0xfe7   : > { %5818 = vpow2.f32 %v3765_v38  ;;  %v3773_v33 = vmul.f32 1.442695, %v3744_v26  ;;  %v3467_v59 = vmul.f32 0.5, %v7668_v55  ;;  %vm3826_vm1 = vcmp.lt.f32.partialorder %v7720_v17, 0.0 }
 0xfe8   : > { %v7723_v41 = vpop.eup %5798  ;;  %5820 = vpow2.f32 %v3769_v20  ;;  %v3470_v55 = vmul.f32 0.5, %v7683_v47  ;;  %v3474_v30 = vmul.f32 0.5, %v7716_v43 }
 0xfe9   : > { %v7725_v45 = vpop.eup %5800  ;;  %v3579_v5 = vmul.f32 1.0614054, %v7723_v41  ;;  %5822 = vpow2.f32 %v3771_v34 }
 0xfea   : > { %v3581_v50 = vmul.f32 1.0614054, %v7725_v45  ;;  %v7729_v37 = vpop.eup %5802 }
 0xfeb   : > { %v3595_v51 = vadd.f32 -1.4531521, %v3579_v5  ;;  %v3580_v19 = vmul.f32 1.0614054, %v7729_v37  ;;  %v7733_v24 = vpop.eup %5804 }
 0xfec   : > { %v3597_v18 = vadd.f32 -1.4531521, %v3581_v50  ;;  %v3582_v54 = vmul.f32 1.0614054, %v7733_v24  ;;  %v3775_v50 = vmul.f32 1.442695, %v3745_v6 }
 0xfed   : > { %v3611_v29 = vmul.f32 %v7723_v41, %v3595_v51  ;;  %v3596_v57 = vadd.f32 -1.4531521, %v3580_v19  ;;  %v7739_v21 = vpop.eup %5806 }
 0xfee   : > { %v3613_v13 = vmul.f32 %v7725_v45, %v3597_v18  ;;  %v3598_v9 = vadd.f32 -1.4531521, %v3582_v54  ;;  %v3583_v44 = vmul.f32 1.0614054, %v7739_v21  ;;  %v7744_v11 = vpop.eup %5808  ;;  %5824 = vpow2.f32 %v3775_v50 }
 0xfef   : > { %v3627_v22 = vadd.f32 1.4214138, %v3611_v29  ;;  %v3612_v60 = vmul.f32 %v7729_v37, %v3596_v57  ;;  %v7748_v7 = vpop.eup %5810  ;;  %v3585_v29 = vmul.f32 1.0614054, %v7744_v11  ;;  %5826 = vpow2.f32 %v3773_v33 }
 0xff0   : > { %v3629_v49 = vadd.f32 1.4214138, %v3613_v13  ;;  %v3614_v5 = vmul.f32 %v7733_v24, %v3598_v9  ;;  %v3599_v18 = vadd.f32 -1.4531521, %v3583_v44  ;;  %v3584_v12 = vmul.f32 1.0614054, %v7748_v7 }
 0xff1   : > { %v3643_v3 = vmul.f32 %v7723_v41, %v3627_v22  ;;  %v3628_v32 = vadd.f32 1.4214138, %v3612_v60  ;;  %v3601_v38 = vadd.f32 -1.4531521, %v3585_v29  ;;  %v7754_v22 = vpop.eup %5812  ;;  %v3777_v44 = vmul.f32 1.442695, %v3746_v8 }
 0xff2   : > { %v3645_v46 = vmul.f32 %v7725_v45, %v3629_v49  ;;  %v3630_v35 = vadd.f32 1.4214138, %v3614_v5  ;;  %v3615_v13 = vmul.f32 %v7739_v21, %v3599_v18  ;;  %v3600_v60 = vadd.f32 -1.4531521, %v3584_v12  ;;  %v5815_v50 = vpop.eup %5814 }
 0xff3   : > { %v3659_v28 = vadd.f32 -0.28449672, %v3643_v3  ;;  %v3644_v51 = vmul.f32 %v7729_v37, %v3628_v32  ;;  %v3617_v3 = vmul.f32 %v7744_v11, %v3601_v38  ;;  %v3586_v9 = vmul.f32 1.0614054, %v7754_v22  ;;  %v5817_v18 = vpop.eup %5816 }
 0xff4   : > { %v3661_v23 = vadd.f32 -0.28449672, %v3645_v46  ;;  %v3646_v19 = vmul.f32 %v7733_v24, %v3630_v35  ;;  %v3631_v20 = vadd.f32 1.4214138, %v3615_v13  ;;  %v3616_v32 = vmul.f32 %v7748_v7, %v3600_v60  ;;  %v5819_v13 = vpop.eup %5818 }
 0xff5   : > { %v3675_v53 = vmul.f32 %v7723_v41, %v3659_v28  ;;  %v3660_v10 = vadd.f32 -0.28449672, %v3644_v51  ;;  %v3633_v28 = vadd.f32 1.4214138, %v3617_v3  ;;  %v3602_v5 = vadd.f32 -1.4531521, %v3586_v9 }
 0xff6   : > { %v3662_v49 = vadd.f32 -0.28449672, %v3646_v19  ;;  %v3677_v6 = vmul.f32 %v7725_v45, %v3661_v23  ;;  %v3647_v26 = vmul.f32 %v7739_v21, %v3631_v20  ;;  %5828 = vpow2.f32 %v3777_v44 }
 0xff7   : > { %v3691_v57 = vadd.f32 0.2548296, %v3675_v53  ;;  %v3676_v54 = vmul.f32 %v7729_v37, %v3660_v10  ;;  %v3649_v29 = vmul.f32 %v7744_v11, %v3633_v28  ;;  %v3632_v10 = vadd.f32 1.4214138, %v3616_v32 }
 0xff8   : > { %v3678_v34 = vmul.f32 %v7733_v24, %v3662_v49  ;;  %v3663_v35 = vadd.f32 -0.28449672, %v3647_v26  ;;  %v3693_v23 = vadd.f32 0.2548296, %v3677_v6  ;;  %v3618_v19 = vmul.f32 %v7754_v22, %v3602_v5 }
 0xff9   : > { %v3692_v46 = vadd.f32 0.2548296, %v3676_v54  ;;  %v3707_v15 = vmul.f32 %v7723_v41, %v3691_v57  ;;  %v3665_v12 = vadd.f32 -0.28449672, %v3649_v29  ;;  %v3648_v8 = vmul.f32 %v7748_v7, %v3632_v10  ;;  %v5821_v41 = vpop.eup %5820 }
 0xffa   : > { %v3694_v51 = vadd.f32 0.2548296, %v3678_v34  ;;  %v3679_v33 = vmul.f32 %v7739_v21, %v3663_v35  ;;  %v3634_v54 = vadd.f32 1.4214138, %v3618_v19  ;;  %v3709_v20 = vmul.f32 %v7725_v45, %v3693_v23  ;;  %v5823_v60 = vpop.eup %5822 }
 0xffb   : > { %v3708_v53 = vmul.f32 %v7729_v37, %v3692_v46  ;;  %v3787_v57 = vmul.f32 %v5815_v50, %v3707_v15  ;;  %v3681_v6 = vmul.f32 %v7744_v11, %v3665_v12  ;;  %v3664_v3 = vadd.f32 -0.28449672, %v3648_v8  ;;  %v5825_v32 = vpop.eup %5824 }
 0xffc   : > { %v3710_v37 = vmul.f32 %v7733_v24, %v3694_v51  ;;  %v3695_v49 = vadd.f32 0.2548296, %v3679_v33  ;;  %v3650_v28 = vmul.f32 %v7754_v22, %v3634_v54  ;;  %v3789_v15 = vmul.f32 %v5817_v18, %v3709_v20  ;;  %v5827_v35 = vpop.eup %5826 }
 0xffd   : > { %v3788_v38 = vmul.f32 %v5819_v13, %v3708_v53  ;;  %v3697_v34 = vadd.f32 0.2548296, %v3681_v6  ;;  %v3680_v26 = vmul.f32 %v7748_v7, %v3664_v3  ;;  %v3803_v5 = vsub.f32 1.0, %v3787_v57 }
 0xffe   : > { %v3711_v9 = vmul.f32 %v7739_v21, %v3695_v49  ;;  %v3790_v50 = vmul.f32 %v5821_v41, %v3710_v37  ;;  %v3666_v53 = vadd.f32 -0.28449672, %v3650_v28  ;;  %v3468_v37 = vmul.f32 0.5, %v7680_v39 }
 0xfff   : > { %v3804_v46 = vsub.f32 1.0, %v3788_v38  ;;  %v3713_v44 = vmul.f32 %v7744_v11, %v3697_v34  ;;  %v3696_v45 = vadd.f32 0.2548296, %v3680_v26  ;;  %v3835_v10 = vsub.f32 0.0, %v3803_v5 }
0x1000   : > { %v3791_v24 = vmul.f32 %v5823_v60, %v3711_v9  ;;  %v3806_v19 = vsub.f32 1.0, %v3790_v50  ;;  %v3682_v33 = vmul.f32 %v7754_v22, %v3666_v53  ;;  %v3805_v38 = vsub.f32 1.0, %v3789_v15 }
0x1001   : > { %v3836_v23 = vsub.f32 0.0, %v3804_v46  ;;  %v3793_v29 = vmul.f32 %v5825_v32, %v3713_v44  ;;  %v3712_v21 = vmul.f32 %v7748_v7, %v3696_v45  ;;  %v3851_v57 = vsel %vm3819_vm11, %v3835_v10, %v3803_v5 }
0x1002   : > { %v3807_v51 = vsub.f32 1.0, %v3791_v24  ;;  %v3698_v8 = vadd.f32 0.2548296, %v3682_v33  ;;  %v3838_v49 = vsub.f32 0.0, %v3806_v19  ;;  %v3837_v6 = vsub.f32 0.0, %v3805_v38 }
0x1003   : > { %v3809_v12 = vsub.f32 1.0, %v3793_v29  ;;  %v3792_v18 = vmul.f32 %v5827_v35, %v3712_v21  ;;  %v3852_v54 = vsel %vm3820_vm12, %v3836_v23, %v3804_v46  ;;  %v5829_v52 = vpop.eup %5828  ;;  %v3867_v9 = vadd.f32 1.0, %v3851_v57 }
0x1004   : > { %v3839_v13 = vsub.f32 0.0, %v3807_v51  ;;  %v3714_v20 = vmul.f32 %v7754_v22, %v3698_v8  ;;  %v3868_v16 = vadd.f32 1.0, %v3852_v54  ;;  %v3471_v46 = vmul.f32 0.5, %v7696_v4 }
0x1005   : > { %v3841_v7 = vsub.f32 0.0, %v3809_v12  ;;  %v3808_v41 = vsub.f32 1.0, %v3792_v18  ;;  %v3854_v26 = vsel %vm3822_vm14, %v3838_v49, %v3806_v19  ;;  %v3472_v22 = vmul.f32 0.5, %v7705_v27 }
0x1006   : > { %v3855_v11 = vsel %vm3823_vm10, %v3839_v13, %v3807_v51  ;;  %v3794_v60 = vmul.f32 %v5829_v52, %v3714_v20  ;;  %v3853_v5 = vsel %vm3821_vm13, %v3837_v6, %v3805_v38  ;;  %v3884_v63 = vmul.f32 %v3868_v16, %v3468_v37 }
0x1007   : > { %v3871_v36 = vadd.f32 1.0, %v3855_v11  ;;  %v3840_v3 = vsub.f32 0.0, %v3808_v41  ;;  %v3857_v34 = vsel %vm3825_vm15, %v3841_v7, %v3809_v12  ;;  %v3883_v44 = vmul.f32 %v3867_v9, %v3467_v59 }
0x1008   : > { %v3810_v32 = vsub.f32 1.0, %v3794_v60  ;;  %v3873_v24 = vadd.f32 1.0, %v3857_v34  ;;  %v3870_v45 = vadd.f32 1.0, %v3854_v26  ;;  %v3869_v4 = vadd.f32 1.0, %v3853_v5 }
0x1009   : > { %v3856_v39 = vsel %vm3824_vm0, %v3840_v3, %v3808_v41  ;;  %v3887_v50 = vmul.f32 %v3871_v36, %v3471_v46  ;;  %v3473_v53 = vmul.f32 0.5, %v7702_v25  ;;  %v3469_v29 = vmul.f32 0.5, %v7671_v48  ;;  %v3963_v25 = vld [vmem:[%s759_s22] sm:$0x3]  ;;  %s7926_s22 = sld [smem:[#allocation42_spill]] (!%p5144_p13) }
0x100a   : > { %v3872_v28 = vadd.f32 1.0, %v3856_v39  ;;  %v3842_v15 = vsub.f32 0.0, %v3810_v32  ;;  %v3886_v10 = vmul.f32 %v3870_v45, %v3470_v55  ;;  %v3968_v47 = vrot.slane %v3963_v25, %v6864_v62 }
0x100b   : > { %v3895_v23 = vpack.c.bf16 %v3887_v50, %v3883_v44  ;;  %v3889_v21 = vmul.f32 %v3873_v24, %v3473_v53  ;;  %v3885_v17 = vmul.f32 %v3869_v4, %v3469_v29  ;;  %v3972_v43 = vrot.slane %v3963_v25, %v6861_v61 }
0x100c   : > { %v3888_v42 = vmul.f32 %v3872_v28, %v3472_v22  ;;  %v3858_v27 = vsel %vm3826_vm1, %v3842_v15, %v3810_v32 }
0x100d   : > { %v3874_v35 = vadd.f32 1.0, %v3858_v27  ;;  %v3897_v33 = vpack.c.bf16 %v3889_v21, %v3885_v17 }
0x100e   : > { %v3896_v51 = vpack.c.bf16 %v3888_v42, %v3884_v63 }
0x100f   : > { %v3890_v19 = vmul.f32 %v3874_v35, %v3474_v30 }
0x1010   : > { %4337 = vmatprep.mubr.bf16.mxu1 %v3896_v51 }
0x1011   : > { %4338 = vmatmul.mubr.bf16.gmra.mxu1 %v3895_v23  ;;  %v3898_v13 = vpack.c.bf16 %v3890_v19, %v3886_v10 }
0x1013   : > { %4390 = vmatprep.mubr.bf16.mxu0 %v3898_v13 }
0x1014   : > { %4391 = vmatmul.mubr.bf16.gmra.mxu0 %v3897_v33 }
0x1045   : > { %v4329_v38 = vpop.f32.mrf.mxu1 }
0x1046   : > { %v4330_v12 = vadd.f32 %v4329_v38, %v3968_v47 }
0x1047   : > { %v4331_v18 = vpop.f32.mrf.mxu1 }
0x1048   : > { %v4332_v48 = vadd.f32 %v4331_v18, %v3972_v43  ;;  %v4382_v8 = vpop.f32.mrf.mxu0 }
0x1049   : > { %v4333_v11 = vpop.f32.mrf.mxu1  ;;  %v4383_v54 = vadd.f32 %v4382_v8, %v4330_v12 }
0x104a   : > { %v4334_v7 = vadd.f32 %v4333_v11, %v3968_v47  ;;  %v4384_v57 = vpop.f32.mrf.mxu0 }
0x104b   : > { %v4335_v41 = vpop.f32.mrf.mxu1  ;;  %v4401_v37 = vadd.f32 %v4383_v54, %v7264_v31  ;;  %v4385_v49 = vadd.f32 %v4384_v57, %v4332_v48 }
0x104c   : > { %v4336_v20 = vadd.f32 %v4335_v41, %v3972_v43  ;;  %v4386_v52 = vpop.f32.mrf.mxu0 }
0x104d   : > { %4409 = vst [vmem:[#allocation2 + $0x30] sm:$0xff] %v4401_v37  ;;  %v4402_v6 = vadd.f32 %v4385_v49, %v7261_v40  ;;  %v4387_v36 = vadd.f32 %v4386_v52, %v4334_v7 }
0x104e   : > { %v4388_v3 = vpop.f32.mrf.mxu0 }
0x104f   : > { %4410 = vst [vmem:[#allocation2] sm:$0xff] %v4402_v6  ;;  %v4403_v16 = vadd.f32 %v4387_v36, %v7271_v0  ;;  %v4389_v60 = vadd.f32 %v4388_v3, %v4336_v20 }
0x1051   : > { %4411 = vst [vmem:[#allocation2 + $0x18] sm:$0xff] %v4403_v16  ;;  %v4404_v9 = vadd.f32 %v4389_v60, %v7266_v2 }
0x1053   : > { %4412 = vst [vmem:[#allocation2 + $0x10] sm:$0xff] %v4404_v9 }
0x10d1   : > { %v4339_v46 = vpop.f32.mrf.mxu1 }
0x10d2   : > { %v4340_v34 = vadd.f32 %v4339_v46, %v3968_v47 }
0x10d3   : > { %v4341_v39 = vpop.f32.mrf.mxu1 }
0x10d4   : > { %v4342_v31 = vadd.f32 %v4341_v39, %v3972_v43  ;;  %v4392_v22 = vpop.f32.mrf.mxu0 }
0x10d5   : > { %v4343_v26 = vpop.f32.mrf.mxu1  ;;  %v4393_v28 = vadd.f32 %v4392_v22, %v4340_v34 }
0x10d6   : > { %v4344_v32 = vadd.f32 %v4343_v26, %v3968_v47  ;;  %v4394_v40 = vpop.f32.mrf.mxu0 }
0x10d7   : > { %v4345_v59 = vpop.f32.mrf.mxu1  ;;  %v4405_v5 = vadd.f32 %v4393_v28, %v7337_v58  ;;  %v4395_v50 = vadd.f32 %v4394_v40, %v4342_v31 }
0x10d8   : > { %v4346_v63 = vadd.f32 %v4345_v59, %v3972_v43  ;;  %v4396_v0 = vpop.f32.mrf.mxu0 }
0x10d9   : > { %4413 = vst [vmem:[#allocation2 + $0x8] sm:$0xff] %v4405_v5  ;;  %v4406_v24 = vadd.f32 %v4395_v50, %v7339_v1  ;;  %v4397_v2 = vadd.f32 %v4396_v0, %v4344_v32 }
0x10da   : > { %v4398_v42 = vpop.f32.mrf.mxu0 }
0x10db   : > { %4414 = vst [vmem:[#allocation2 + $0x20] sm:$0xff] %v4406_v24  ;;  %v4407_v15 = vadd.f32 %v4397_v2, %v7353_v56  ;;  %v4399_v44 = vadd.f32 %v4398_v42, %v4346_v63  ;;  %4420 = sbr.rel (%p5144_p13) target bundleno = 4639 (0x121f), region = 128 }
0x10dd   : > { %4415 = vst [vmem:[#allocation2 + $0x28] sm:$0xff] %v4407_v15  ;;  %v4408_v45 = vadd.f32 %v4399_v44, %v7355_v14 }
0x10df   : > { %4416 = vst [vmem:[#allocation2 + $0x38] sm:$0xff] %v4408_v45 }
0x10e0   : > { %v4423_v58 = vadd.f32 %v4402_v6, %v4401_v37  ;;  %v4429_v4 = vadd.f32 %v4406_v24, %v4405_v5  ;;  %v4426_v53 = vadd.f32 %v4404_v9, %v4403_v16  ;;  %v4432_v27 = vadd.f32 %v4408_v45, %v4407_v15  ;;  %v4421_v39 = vld [vmem:[%s7925_s16] sm:$0x3] }
0x10e1   : > { %v4422_v31 = vld [vmem:[%s7926_s22] sm:$0x3]  ;;  %v4491_v26 = vrot.slane %v4421_v39, %v6864_v62  ;;  %v4495_v22 = vrot.slane %v4421_v39, %v6861_v61 }
0x10e2   : > { %4424 = vadd.xlane.f32.xlu0 %v4423_v58  ;;  %4430 = vadd.xlane.f32.xlu1 %v4429_v4  ;;  %v4510_v40 = vrot.slane %v4422_v31, %v6864_v62 }
0x10e6   : > { %4427 = vadd.xlane.f32.xlu0 %v4426_v53  ;;  %4433 = vadd.xlane.f32.xlu1 %v4432_v27 }
0x116b   : > { %v4425_v1 = vpop.xlane.xlu0 %4424  ;;  %v4431_v51 = vpop.xlane.xlu1 %4430 }
0x116c   : > { %v4435_v55 = vmul.f32 0.00390625, %v4425_v1  ;;  %v4437_v56 = vmul.f32 0.00390625, %v4431_v51 }
0x116e   : > { %v4439_v30 = vsub.f32 %v4401_v37, %v4435_v55  ;;  %v4440_v35 = vsub.f32 %v4402_v6, %v4435_v55  ;;  %v4443_v23 = vsub.f32 %v4405_v5, %v4437_v56  ;;  %v4444_v14 = vsub.f32 %v4406_v24, %v4437_v56 }
0x116f   : > { %v4428_v29 = vpop.xlane.xlu0 %4427  ;;  %v4434_v21 = vpop.xlane.xlu1 %4433  ;;  %v4514_v5 = vrot.slane %v4422_v31, %v6861_v61 }
0x1170   : > { %v4436_v10 = vmul.f32 0.00390625, %v4428_v29  ;;  %v4438_v19 = vmul.f32 0.00390625, %v4434_v21  ;;  %v4447_v17 = vmul.f32 %v4439_v30, %v4439_v30  ;;  %v4448_v13 = vmul.f32 %v4440_v35, %v4440_v35 }
0x1171   : > { %v4451_v33 = vmul.f32 %v4443_v23, %v4443_v23  ;;  %v4452_v25 = vmul.f32 %v4444_v14, %v4444_v14 }
0x1172   : > { %v4441_v47 = vsub.f32 %v4403_v16, %v4436_v10  ;;  %v4442_v38 = vsub.f32 %v4404_v9, %v4436_v10  ;;  %v4445_v43 = vsub.f32 %v4407_v15, %v4438_v19  ;;  %v4446_v12 = vsub.f32 %v4408_v45, %v4438_v19 }
0x1173   : > { %v4455_v18 = vadd.f32 %v4448_v13, %v4447_v17  ;;  %v4461_v7 = vadd.f32 %v4452_v25, %v4451_v33 }
0x1174   : > { %v4449_v48 = vmul.f32 %v4441_v47, %v4441_v47  ;;  %v4450_v11 = vmul.f32 %v4442_v38, %v4442_v38  ;;  %v4453_v8 = vmul.f32 %v4445_v43, %v4445_v43  ;;  %v4454_v54 = vmul.f32 %v4446_v12, %v4446_v12 }
0x1175   : > { %4456 = vadd.xlane.f32.xlu0 %v4455_v18 }
0x1176   : > { %v4458_v41 = vadd.f32 %v4450_v11, %v4449_v48  ;;  %v4464_v57 = vadd.f32 %v4454_v54, %v4453_v8 }
0x1178   : > { %4459 = vadd.xlane.f32.xlu1 %v4458_v41 }
0x1179   : > { %4462 = vadd.xlane.f32.xlu0 %v4461_v7 }
0x117c   : > { %4465 = vadd.xlane.f32.xlu1 %v4464_v57 }
0x11fe   : > { %v4457_v37 = vpop.xlane.xlu0 %4456 }
0x11ff   : > { %v4467_v49 = vmul.f32 0.00390625, %v4457_v37 }
0x1201   : > { %v4471_v20 = vadd.f32 1e-06, %v4467_v49  ;;  %v4460_v52 = vpop.xlane.xlu1 %4459 }
0x1202   : > { %v4468_v6 = vmul.f32 0.00390625, %v4460_v52  ;;  %v4463_v36 = vpop.xlane.xlu0 %4462 }
0x1203   : > { %5838 = vrsqrt.f32 %v4471_v20  ;;  %v4469_v3 = vmul.f32 0.00390625, %v4463_v36 }
0x1204   : > { %v4472_v16 = vadd.f32 1e-06, %v4468_v6 }
0x1205   : > { %v4473_v60 = vadd.f32 1e-06, %v4469_v3  ;;  %v4466_v9 = vpop.xlane.xlu1 %4465 }
0x1206   : > { %5840 = vrsqrt.f32 %v4472_v16  ;;  %v4470_v46 = vmul.f32 0.00390625, %v4466_v9 }
0x1207   : > { %5842 = vrsqrt.f32 %v4473_v60 }
0x1208   : > { %v4474_v34 = vadd.f32 1e-06, %v4470_v46 }
0x120a   : > { %5844 = vrsqrt.f32 %v4474_v34 }
0x1210   : > { %v5839_v28 = vpop.eup %5838 }
0x1211   : > { %v4479_v32 = vmul.f32 %v5839_v28, %v4439_v30  ;;  %v4480_v59 = vmul.f32 %v5839_v28, %v4440_v35 }
0x1213   : > { %v5841_v50 = vpop.eup %5840  ;;  %v4498_v63 = vmul.f32 %v4491_v26, %v4479_v32  ;;  %v4499_v0 = vmul.f32 %v4495_v22, %v4480_v59 }
0x1214   : > { %v5843_v24 = vpop.eup %5842  ;;  %v4481_v2 = vmul.f32 %v5841_v50, %v4441_v47  ;;  %v4482_v42 = vmul.f32 %v5841_v50, %v4442_v38 }
0x1215   : > { %v4517_v15 = vadd.f32 %v4510_v40, %v4498_v63  ;;  %v4518_v44 = vadd.f32 %v4514_v5, %v4499_v0  ;;  %v4483_v45 = vmul.f32 %v5843_v24, %v4443_v23  ;;  %v4484_v58 = vmul.f32 %v5843_v24, %v4444_v14 }
0x1216   : > { %v4500_v4 = vmul.f32 %v4491_v26, %v4481_v2  ;;  %v4501_v53 = vmul.f32 %v4495_v22, %v4482_v42 }
0x1217   : > { %v5845_v27 = vpop.eup %5844  ;;  %4525 = vst [vmem:[#allocation20] sm:$0xff] %v4517_v15  ;;  %4526 = vst [vmem:[#allocation20 + $0x8] sm:$0xff] %v4518_v44  ;;  %v4502_v1 = vmul.f32 %v4491_v26, %v4483_v45  ;;  %v4503_v51 = vmul.f32 %v4495_v22, %v4484_v58 }
0x1218   : > { %v4519_v62 = vadd.f32 %v4510_v40, %v4500_v4  ;;  %v4520_v55 = vadd.f32 %v4514_v5, %v4501_v53  ;;  %v4485_v61 = vmul.f32 %v5845_v27, %v4445_v43  ;;  %v4486_v56 = vmul.f32 %v5845_v27, %v4446_v12 }
0x1219   : > { %v4521_v30 = vadd.f32 %v4510_v40, %v4502_v1  ;;  %v4522_v35 = vadd.f32 %v4514_v5, %v4503_v51 }
0x121a   : > { %4527 = vst [vmem:[#allocation20 + $0x10] sm:$0xff] %v4519_v62  ;;  %4528 = vst [vmem:[#allocation20 + $0x18] sm:$0xff] %v4520_v55  ;;  %v4504_v29 = vmul.f32 %v4491_v26, %v4485_v61  ;;  %v4505_v21 = vmul.f32 %v4495_v22, %v4486_v56 }
0x121b   : > { %4529 = vst [vmem:[#allocation20 + $0x20] sm:$0xff] %v4521_v30  ;;  %4530 = vst [vmem:[#allocation20 + $0x28] sm:$0xff] %v4522_v35 }
0x121c   : > { %v4523_v23 = vadd.f32 %v4510_v40, %v4504_v29  ;;  %v4524_v14 = vadd.f32 %v4514_v5, %v4505_v21 }
0x121e   : > { %4531 = vst [vmem:[#allocation20 + $0x30] sm:$0xff] %v4523_v23  ;;  %4532 = vst [vmem:[#allocation20 + $0x38] sm:$0xff] %v4524_v14 }
0x121f PF: > { %s7927_s13 = sld [smem:[#allocation32_spill]]  ;;  %s6227_s5 = smov [#allocation20]  }
0x1220   : > { %s4539_s20 = sshll.u32 %s6227_s5, 4  ;;  %s4540_s20 = int_to_ptr.vmem [resolvable:$true] %s4539_s20 }
0x1221   : > { %s6124_s21 = scalar_lea.vmem %s4540_s20, 1024  ;;  %p6131_p9 = scmp.lt.s32.totalorder %s4540_s20, %s4540_s20 }
0x1222   : > { %p6125_p0 = scmp.ne.s32.totalorder %s4540_s20, %s6124_s21  ;;  %p6132_p1 = scmp.lt.s32.totalorder %s6124_s21, %s6124_s21 }
0x1224   : > { %p6133_p3 = por %p6132_p1, %p6131_p9 }
0x1225   : > { %p5287_p11 = scmp.eq.s32.totalorder %s7927_s13, 1 }
0x1227   : > { %p6126_p2 = pnand %p6125_p0, %p5287_p11 }
0x1229   : > { %p6127_p6 = pneg %p6126_p2 }
0x122b   : > { %p6134_p4 = pnand %p6133_p3, %p6127_p6 }
0x122d   : > { %6137 = shalt.err (!%p6134_p4)
}
0x122e   : > { %s6228_s30 = smov 256   ;;  %s6229_s14 = smov 16  }
0x122f   : > { %s7928_s25 = sld [smem:[#allocation43_spill]] }
0x1235   : > { %5249 = dma.vmem_to_hbm [thread:$0]  (%p5287_p11), %s4540_s20, 1024, %s7928_s25, [#allocation5], %s6228_s30, %s6228_s30, %s6229_s14  }
0x1236   : > { %6189 = dma.done.wait (%p5287_p11), [#allocation5], 1024  }
0x1237   : > { %6191 = vsyncadd (%p5287_p11), [#allocation5], 4294966272 }
0x1238 PF: > { %s7929_s21 = sld [smem:[#allocation30_spill]] }
0x1239   : > { %s7930_s18 = sld [smem:[#allocation28_spill]] }
0x123a   : > { %s7931_s19 = sld [smem:[#allocation29_spill]] }
0x123b   : > { %s7932_s20 = sld [smem:[#allocation31_spill]] }
0x123e   : > { %p39_p10 = scmp.ge.s32.totalorder %s7929_s21, 4  }
0x1240   :  { %41 = sbr.rel (!%p39_p10) target bundleno = 24 (0x18), region = 235 }
0x1245   :  { %4555 = vsyncpa [#allocation4], 1 }
0x1246   :  { %4557 = vsyncpa [#allocation4 + $0x1], 1 }
0x1247   :  { %4558 = vsyncpa [#allocation7], 1 }
0x1248   :  { %4560 = vsyncpa [#allocation7 + $0x1], 1 }
0x1249   :  { %4561 = vsyncpa [#allocation10], 1 }
0x124a   :  { %4563 = vsyncpa [#allocation10 + $0x1], 1 }
0x124b   :  { %4564 = vsyncpa [#allocation13], 1 }
0x124c   :  { %4566 = vsyncpa [#allocation13 + $0x1], 1 }
0x124d   :  { %4567 = vsyncpa [#allocation16], 1 }
0x124e   :  { %4569 = vsyncpa [#allocation16 + $0x1], 1 }
0x124f   :  { %4570 = vsyncpa [#allocation19], 1 }
0x1250   :  { %4572 = vsyncpa [#allocation19 + $0x1], 1 }
0x1251   :  { %4573 = vsyncpa [#allocation5], 1 }
0x1252   :  { %4575 = vsyncpa [#allocation5 + $0x1], 1 }

</bundles_post_ra>
